<compile_context>
chip_gen: v6e
topology: v6e:2x2x1
jax: 0.10.0
libtpu: 0.0.40
codegen_flags: <defaults>
</compile_context>

<pallas_src>
import functools

import numpy as np

import jax
import jax.numpy as jnp
from jax.experimental import pallas as pl
from jax.experimental.pallas import tpu as pltpu


def _dummy_fd_kernel(chan_ref, gsize_ref,            # scalar-prefetch (SMEM)
                     x_hbm, gamma_ref,               # inputs (ANY / SMEM)
                     y_hbm,                          # output (ANY, aliases x)
                     xbuf, obuf, in_sems, out_sems,  # scratch
                     *, bt, cgp, n_chan, matmul_dtype):
    bblk = pl.program_id(0)        # batch block   ("parallel")
    g = pl.program_id(1)           # channel group ("arbitrary": in order)
    b0 = bblk * bt
    gsize = gsize_ref[g]           # number of real channels in this group
    gamma = gamma_ref[g]

    # ---- gather: Bt*Cgp rows of (1, HW) from HBM into the VMEM slab --------
    def gather_copy(bb, c):
        row = (b0 + bb) * n_chan + chan_ref[g, c]
        return pltpu.make_async_copy(
            x_hbm.at[pl.ds(row, 1)],
            xbuf.at[bb, pl.ds(c, 1)],
            in_sems.at[bb, c])

    for bb in range(bt):
        for c in range(cgp):
            gather_copy(bb, c).start()
    for bb in range(bt):
        for c in range(cgp):
            gather_copy(bb, c).wait()

    # ---- CAM channel attention on the (Bt, Cgp, HW) slab --------------------
    xb = xbuf[...].astype(jnp.float32)
    xm = xb.astype(matmul_dtype)
    # NOTE: contraction over the minor (HW) axis of both operands is the MXU
    # "trans_b" form; if a per-block vxpose ever shows up in the bundle dump
    # for very large HW, feed a pre-transposed copy instead.
    energy = jnp.einsum('bcn,bdn->bcd', xm, xm,
                        preferred_element_type=jnp.float32)     # (Bt,Cgp,Cgp)

    # Mask padded key-channels (columns >= gsize) out of the softmax.
    col = jax.lax.broadcasted_iota(jnp.int32, (cgp, cgp), 1)
    valid = (col < gsize)[None, :, :]
    energy = jnp.where(valid, energy, jnp.float32(1e30))

    # softmax(max(e) - e) over rows == exp(min(e) - e) / sum(exp(min(e) - e))
    # (shift invariance) -> a single row-reduction instead of two; padded
    # columns contribute exp(min - 1e30) == 0 exactly.
    m = jnp.min(energy, axis=-1, keepdims=True)
    p = jnp.exp(m - energy)
    denom = jnp.sum(p, axis=-1, keepdims=True)
    attn = p * pl.reciprocal(denom, approx=True)

    out = jnp.einsum('bcd,bdn->bcn', attn.astype(matmul_dtype), xm,
                     preferred_element_type=jnp.float32)        # (Bt,Cgp,HW)
    obuf[...] = (gamma * out + xb).astype(obuf.dtype)

    # ---- scatter: only the first `gsize` rows back into the aliased output --
    def scatter_copy(bb, c):
        row = (b0 + bb) * n_chan + chan_ref[g, c]
        return pltpu.make_async_copy(
            obuf.at[bb, pl.ds(c, 1)],
            y_hbm.at[pl.ds(row, 1)],
            out_sems.at[bb, c])

    for bb in range(bt):
        for c in range(cgp):
            @pl.when(c < gsize)
            def _start(bb=bb, c=c):
                scatter_copy(bb, c).start()
    for bb in range(bt):
        for c in range(cgp):
            @pl.when(c < gsize)
            def _wait(bb=bb, c=c):
                scatter_copy(bb, c).wait()


def _pick_bt(batch, cgp, hw, itemsize=4):
    """Batch elements per grid step: amortize the ~0.35us per-step overhead,
    keep the VMEM slabs modest (sized against v7x's 64 MiB per-core VMEM),
    and prefer >= 2 batch blocks so v7x's two TensorCores both get work."""
    budget = 8 * 2 ** 20                      # x-slab + out-slab budget
    per_b = 2 * cgp * hw * itemsize
    max_bt = max(1, min(batch, budget // per_b))
    best = 1
    for cand in range(1, max_bt + 1):
        if batch % cand == 0 and (batch // cand >= 2 or batch == 1):
            best = cand
    return best


def dummy_fd_forward(x, cam_modules, *, bt=None, matmul_dtype=jnp.float32):
    """DummyFD.forward.  x: (B, C, H, W); cam_modules: [(channel_indices, gamma)].

    For the full benefit of the in-place aliasing, callers should donate x
    (jax.jit(..., donate_argnums=...)); otherwise XLA inserts one defensive
    copy of x in front of the aliased pallas_call (still correct).
    """
    B, C, H, W = x.shape
    HW = H * W

    # Lane-align the flattened spatial axis.
    hw_pad = (-HW) % 128
    x2d = x.reshape(B * C, HW)
    if hw_pad:
        x2d = jnp.pad(x2d, ((0, 0), (0, hw_pad)))
    hw_p = HW + hw_pad

    G = len(cam_modules)
    sizes = [len(cs) for cs, _ in cam_modules]
    cgp = ((max(sizes) + 7) // 8) * 8          # sublane-align the group axis

    chan_tbl = np.zeros((G, cgp), dtype=np.int32)
    for gi, (cs, _) in enumerate(cam_modules):
        row = [int(c) for c in cs]
        chan_tbl[gi] = row + [row[0]] * (cgp - len(row))   # pad w/ a real chan
    gsizes = np.asarray(sizes, dtype=np.int32)
    gammas = np.asarray([float(np.asarray(gm).reshape(-1)[0])
                         for _, gm in cam_modules], dtype=np.float32)

    if bt is None:
        bt = _pick_bt(B, cgp, hw_p, x2d.dtype.itemsize)
    assert B % bt == 0, "bt must divide the batch size"

    slab_bytes = 2 * bt * cgp * hw_p * x2d.dtype.itemsize
    vmem_limit = int(min(48 * 2 ** 20, max(16 * 2 ** 20, 4 * slab_bytes)))

    kernel = functools.partial(_dummy_fd_kernel, bt=bt, cgp=cgp, n_chan=C,
                               matmul_dtype=matmul_dtype)
    y2d = pl.pallas_call(
        kernel,
        out_shape=jax.ShapeDtypeStruct((B * C, hw_p), x2d.dtype),
        grid_spec=pltpu.PrefetchScalarGridSpec(
            num_scalar_prefetch=2,                       # chan table, sizes
            grid=(B // bt, G),
            in_specs=[
                pl.BlockSpec(memory_space=pl.ANY),                   # x (HBM)
                pl.BlockSpec(memory_space=pltpu.MemorySpace.SMEM),   # gammas
            ],
            out_specs=pl.BlockSpec(memory_space=pl.ANY),   # aliases x
            scratch_shapes=[
                pltpu.VMEM((bt, cgp, hw_p), x2d.dtype),    # gathered channels
                pltpu.VMEM((bt, cgp, hw_p), x2d.dtype),    # CAM result
                pltpu.SemaphoreType.DMA((bt, cgp)),        # gather sems
                pltpu.SemaphoreType.DMA((bt, cgp)),        # scatter sems
            ],
        ),
        # call args: (chan_tbl, gsizes, x2d, gammas) -> x2d is operand 2
        input_output_aliases={2: 0},
        compiler_params=pltpu.CompilerParams(
            dimension_semantics=("parallel", "arbitrary"),
            vmem_limit_bytes=vmem_limit,
        ),
    )(jnp.asarray(chan_tbl), jnp.asarray(gsizes), x2d, jnp.asarray(gammas))

    if hw_pad:
        y2d = y2d[:, :HW]
    return y2d.reshape(B, C, H, W)


def _reference_forward(x, cam_modules):
    """Pure-JAX replica of DummyFD.forward with ABDNet CAM_Module cams."""
    B, C, H, W = x.shape
    HW = H * W
    for cs, gamma in cam_modules:
        idx = jnp.asarray([int(c) for c in cs], dtype=jnp.int32)
        f = x[:, idx].reshape(B, len(cs), HW)
        energy = jnp.einsum('bcn,bdn->bcd', f, f)
        energy_new = jnp.max(energy, axis=-1, keepdims=True) - energy
        attn = jax.nn.softmax(energy_new, axis=-1)
        out = jnp.einsum('bcd,bdn->bcn', attn, f)
        gval = jnp.float32(np.asarray(gamma).reshape(-1)[0])
        x = x.at[:, idx].set((gval * out + f).reshape(B, len(cs), H, W))
    return x


if __name__ == "__main__":
    key = jax.random.PRNGKey(0)
    B, C, H, W = 4, 8, 16, 16
    x = jax.random.normal(key, (B, C, H, W), dtype=jnp.float32)

    # Synthetic fd_getter().cam_modules: two disjoint channel groups of
    # different sizes (exercises the sublane padding + softmax-mask paths).
    # PyTorch inits gamma=0 (identity); nonzero gammas exercise the math.
    cam_modules = [
        ((0, 2, 4, 6, 7), jnp.array([0.5], dtype=jnp.float32)),
        ((1, 3, 5), jnp.array([0.25], dtype=jnp.float32)),
    ]

    ref = _reference_forward(x, cam_modules)

    fwd = jax.jit(lambda xx: dummy_fd_forward(xx, cam_modules))
    out = jax.block_until_ready(fwd(x))

    assert out.shape == (B, C, H, W)
    # Tolerance covers the EUP approx reciprocal in the softmax denominator.
    assert jnp.allclose(out, ref, atol=2e-3, rtol=2e-3), "mismatch vs reference"

    print("KERNEL_OK")
</pallas_src>

<mosaic_0001>
module attributes {stable_mosaic.version = 11 : i64} {
  func.func @_dummy_fd_kernel(%arg0: i32, %arg1: i32, %arg2: memref<2x8xi32, #tpu.memory_space<smem>>, %arg3: memref<2xi32, #tpu.memory_space<smem>>, %arg4: memref<32x256xf32, #tpu.memory_space<any>>, %arg5: memref<2xf32, #tpu.memory_space<smem>>, %arg6: memref<32x256xf32, #tpu.memory_space<any>>, %arg7: memref<2x8x256xf32, #tpu.memory_space<vmem>>, %arg8: memref<2x8x256xf32, #tpu.memory_space<vmem>>, %arg9: memref<2x8x!tpu.dma_semaphore, #tpu.memory_space<semaphore_mem>>, %arg10: memref<2x8x!tpu.dma_semaphore, #tpu.memory_space<semaphore_mem>>) attributes {dimension_semantics = [#tpu.dimension_semantics<parallel>, #tpu.dimension_semantics<arbitrary>], iteration_bounds = array<i64: 2, 2>, scalar_prefetch = 2 : i64, scratch_operands = 4 : i64, tpu.core_type = #tpu.core_type<tc>, window_params = [{}, {transform_indices = @transform_1, window_bounds = array<i64: 2>}, {}]} {
    %c2_i32 = arith.constant 2 : i32
    %0 = arith.muli %arg0, %c2_i32 : i32
    %1 = arith.index_cast %arg1 : i32 to index
    %2 = memref.load %arg3[%1] : memref<2xi32, #tpu.memory_space<smem>>
    %3 = arith.index_cast %arg1 : i32 to index
    %4 = memref.load %arg5[%3] : memref<2xf32, #tpu.memory_space<smem>>
    %c0_i32 = arith.constant 0 : i32
    %5 = arith.addi %0, %c0_i32 : i32
    %c8_i32 = arith.constant 8 : i32
    %6 = arith.muli %5, %c8_i32 : i32
    %7 = arith.index_cast %arg1 : i32 to index
    %c0 = arith.constant 0 : index
    %8 = memref.load %arg2[%7, %c0] : memref<2x8xi32, #tpu.memory_space<smem>>
    %9 = arith.addi %6, %8 : i32
    %c0_i32_0 = arith.constant 0 : i32
    %c0_i32_1 = arith.constant 0 : i32
    %c0_i32_2 = arith.constant 0 : i32
    %c0_i32_3 = arith.constant 0 : i32
    %10 = tpu.memref_slice %arg4[%9, %c0_i32_3] : memref<32x256xf32, #tpu.memory_space<any>> -> memref<1x256xf32, #tpu.memory_space<any>>
    %c0_i32_4 = arith.constant 0 : i32
    %c0_i32_5 = arith.constant 0 : i32
    %11 = tpu.memref_slice %arg7[%c0_i32_0, %c0_i32_4, %c0_i32_5] : memref<2x8x256xf32, #tpu.memory_space<vmem>> -> memref<1x1x256xf32, #tpu.memory_space<vmem>>
    %12 = tpu.memref_squeeze %11 : memref<1x1x256xf32, #tpu.memory_space<vmem>> -> memref<1x256xf32, #tpu.memory_space<vmem>>
    %13 = tpu.memref_slice %arg9[%c0_i32_1, %c0_i32_2] : memref<2x8x!tpu.dma_semaphore, #tpu.memory_space<semaphore_mem>> -> memref<1x1x!tpu.dma_semaphore, #tpu.memory_space<semaphore_mem>>
    %14 = tpu.memref_squeeze %13 : memref<1x1x!tpu.dma_semaphore, #tpu.memory_space<semaphore_mem>> -> memref<!tpu.dma_semaphore, #tpu.memory_space<semaphore_mem>>
    tpu.enqueue_dma source(%10 : memref<1x256xf32, #tpu.memory_space<any>>) target(%12 : memref<1x256xf32, #tpu.memory_space<vmem>>) target_semaphore(%14 : memref<!tpu.dma_semaphore, #tpu.memory_space<semaphore_mem>>)
    %c0_i32_6 = arith.constant 0 : i32
    %15 = arith.addi %0, %c0_i32_6 : i32
    %c8_i32_7 = arith.constant 8 : i32
    %16 = arith.muli %15, %c8_i32_7 : i32
    %17 = arith.index_cast %arg1 : i32 to index
    %c1 = arith.constant 1 : index
    %18 = memref.load %arg2[%17, %c1] : memref<2x8xi32, #tpu.memory_space<smem>>
    %19 = arith.addi %16, %18 : i32
    %c0_i32_8 = arith.constant 0 : i32
    %c0_i32_9 = arith.constant 0 : i32
    %c1_i32 = arith.constant 1 : i32
    %c0_i32_10 = arith.constant 0 : i32
    %20 = tpu.memref_slice %arg4[%19, %c0_i32_10] : memref<32x256xf32, #tpu.memory_space<any>> -> memref<1x256xf32, #tpu.memory_space<any>>
    %c1_i32_11 = arith.constant 1 : i32
    %c0_i32_12 = arith.constant 0 : i32
    %21 = tpu.memref_slice %arg7[%c0_i32_8, %c1_i32_11, %c0_i32_12] : memref<2x8x256xf32, #tpu.memory_space<vmem>> -> memref<1x1x256xf32, #tpu.memory_space<vmem>>
    %22 = tpu.memref_squeeze %21 : memref<1x1x256xf32, #tpu.memory_space<vmem>> -> memref<1x256xf32, #tpu.memory_space<vmem>>
    %23 = tpu.memref_slice %arg9[%c0_i32_9, %c1_i32] : memref<2x8x!tpu.dma_semaphore, #tpu.memory_space<semaphore_mem>> -> memref<1x1x!tpu.dma_semaphore, #tpu.memory_space<semaphore_mem>>
    %24 = tpu.memref_squeeze %23 : memref<1x1x!tpu.dma_semaphore, #tpu.memory_space<semaphore_mem>> -> memref<!tpu.dma_semaphore, #tpu.memory_space<semaphore_mem>>
    tpu.enqueue_dma source(%20 : memref<1x256xf32, #tpu.memory_space<any>>) target(%22 : memref<1x256xf32, #tpu.memory_space<vmem>>) target_semaphore(%24 : memref<!tpu.dma_semaphore, #tpu.memory_space<semaphore_mem>>)
    %c0_i32_13 = arith.constant 0 : i32
    %25 = arith.addi %0, %c0_i32_13 : i32
    %c8_i32_14 = arith.constant 8 : i32
    %26 = arith.muli %25, %c8_i32_14 : i32
    %27 = arith.index_cast %arg1 : i32 to index
    %c2 = arith.constant 2 : index
    %28 = memref.load %arg2[%27, %c2] : memref<2x8xi32, #tpu.memory_space<smem>>
    %29 = arith.addi %26, %28 : i32
    %c0_i32_15 = arith.constant 0 : i32
    %c0_i32_16 = arith.constant 0 : i32
    %c2_i32_17 = arith.constant 2 : i32
    %c0_i32_18 = arith.constant 0 : i32
    %30 = tpu.memref_slice %arg4[%29, %c0_i32_18] : memref<32x256xf32, #tpu.memory_space<any>> -> memref<1x256xf32, #tpu.memory_space<any>>
    %c2_i32_19 = arith.constant 2 : i32
    %c0_i32_20 = arith.constant 0 : i32
    %31 = tpu.memref_slice %arg7[%c0_i32_15, %c2_i32_19, %c0_i32_20] : memref<2x8x256xf32, #tpu.memory_space<vmem>> -> memref<1x1x256xf32, #tpu.memory_space<vmem>>
    %32 = tpu.memref_squeeze %31 : memref<1x1x256xf32, #tpu.memory_space<vmem>> -> memref<1x256xf32, #tpu.memory_space<vmem>>
    %33 = tpu.memref_slice %arg9[%c0_i32_16, %c2_i32_17] : memref<2x8x!tpu.dma_semaphore, #tpu.memory_space<semaphore_mem>> -> memref<1x1x!tpu.dma_semaphore, #tpu.memory_space<semaphore_mem>>
    %34 = tpu.memref_squeeze %33 : memref<1x1x!tpu.dma_semaphore, #tpu.memory_space<semaphore_mem>> -> memref<!tpu.dma_semaphore, #tpu.memory_space<semaphore_mem>>
    tpu.enqueue_dma source(%30 : memref<1x256xf32, #tpu.memory_space<any>>) target(%32 : memref<1x256xf32, #tpu.memory_space<vmem>>) target_semaphore(%34 : memref<!tpu.dma_semaphore, #tpu.memory_space<semaphore_mem>>)
    %c0_i32_21 = arith.constant 0 : i32
    %35 = arith.addi %0, %c0_i32_21 : i32
    %c8_i32_22 = arith.constant 8 : i32
    %36 = arith.muli %35, %c8_i32_22 : i32
    %37 = arith.index_cast %arg1 : i32 to index
    %c3 = arith.constant 3 : index
    %38 = memref.load %arg2[%37, %c3] : memref<2x8xi32, #tpu.memory_space<smem>>
    %39 = arith.addi %36, %38 : i32
    %c0_i32_23 = arith.constant 0 : i32
    %c0_i32_24 = arith.constant 0 : i32
    %c3_i32 = arith.constant 3 : i32
    %c0_i32_25 = arith.constant 0 : i32
    %40 = tpu.memref_slice %arg4[%39, %c0_i32_25] : memref<32x256xf32, #tpu.memory_space<any>> -> memref<1x256xf32, #tpu.memory_space<any>>
    %c3_i32_26 = arith.constant 3 : i32
    %c0_i32_27 = arith.constant 0 : i32
    %41 = tpu.memref_slice %arg7[%c0_i32_23, %c3_i32_26, %c0_i32_27] : memref<2x8x256xf32, #tpu.memory_space<vmem>> -> memref<1x1x256xf32, #tpu.memory_space<vmem>>
    %42 = tpu.memref_squeeze %41 : memref<1x1x256xf32, #tpu.memory_space<vmem>> -> memref<1x256xf32, #tpu.memory_space<vmem>>
    %43 = tpu.memref_slice %arg9[%c0_i32_24, %c3_i32] : memref<2x8x!tpu.dma_semaphore, #tpu.memory_space<semaphore_mem>> -> memref<1x1x!tpu.dma_semaphore, #tpu.memory_space<semaphore_mem>>
    %44 = tpu.memref_squeeze %43 : memref<1x1x!tpu.dma_semaphore, #tpu.memory_space<semaphore_mem>> -> memref<!tpu.dma_semaphore, #tpu.memory_space<semaphore_mem>>
    tpu.enqueue_dma source(%40 : memref<1x256xf32, #tpu.memory_space<any>>) target(%42 : memref<1x256xf32, #tpu.memory_space<vmem>>) target_semaphore(%44 : memref<!tpu.dma_semaphore, #tpu.memory_space<semaphore_mem>>)
    %c0_i32_28 = arith.constant 0 : i32
    %45 = arith.addi %0, %c0_i32_28 : i32
    %c8_i32_29 = arith.constant 8 : i32
    %46 = arith.muli %45, %c8_i32_29 : i32
    %47 = arith.index_cast %arg1 : i32 to index
    %c4 = arith.constant 4 : index
    %48 = memref.load %arg2[%47, %c4] : memref<2x8xi32, #tpu.memory_space<smem>>
    %49 = arith.addi %46, %48 : i32
    %c0_i32_30 = arith.constant 0 : i32
    %c0_i32_31 = arith.constant 0 : i32
    %c4_i32 = arith.constant 4 : i32
    %c0_i32_32 = arith.constant 0 : i32
    %50 = tpu.memref_slice %arg4[%49, %c0_i32_32] : memref<32x256xf32, #tpu.memory_space<any>> -> memref<1x256xf32, #tpu.memory_space<any>>
    %c4_i32_33 = arith.constant 4 : i32
    %c0_i32_34 = arith.constant 0 : i32
    %51 = tpu.memref_slice %arg7[%c0_i32_30, %c4_i32_33, %c0_i32_34] : memref<2x8x256xf32, #tpu.memory_space<vmem>> -> memref<1x1x256xf32, #tpu.memory_space<vmem>>
    %52 = tpu.memref_squeeze %51 : memref<1x1x256xf32, #tpu.memory_space<vmem>> -> memref<1x256xf32, #tpu.memory_space<vmem>>
    %53 = tpu.memref_slice %arg9[%c0_i32_31, %c4_i32] : memref<2x8x!tpu.dma_semaphore, #tpu.memory_space<semaphore_mem>> -> memref<1x1x!tpu.dma_semaphore, #tpu.memory_space<semaphore_mem>>
    %54 = tpu.memref_squeeze %53 : memref<1x1x!tpu.dma_semaphore, #tpu.memory_space<semaphore_mem>> -> memref<!tpu.dma_semaphore, #tpu.memory_space<semaphore_mem>>
    tpu.enqueue_dma source(%50 : memref<1x256xf32, #tpu.memory_space<any>>) target(%52 : memref<1x256xf32, #tpu.memory_space<vmem>>) target_semaphore(%54 : memref<!tpu.dma_semaphore, #tpu.memory_space<semaphore_mem>>)
    %c0_i32_35 = arith.constant 0 : i32
    %55 = arith.addi %0, %c0_i32_35 : i32
    %c8_i32_36 = arith.constant 8 : i32
    %56 = arith.muli %55, %c8_i32_36 : i32
    %57 = arith.index_cast %arg1 : i32 to index
    %c5 = arith.constant 5 : index
    %58 = memref.load %arg2[%57, %c5] : memref<2x8xi32, #tpu.memory_space<smem>>
    %59 = arith.addi %56, %58 : i32
    %c0_i32_37 = arith.constant 0 : i32
    %c0_i32_38 = arith.constant 0 : i32
    %c5_i32 = arith.constant 5 : i32
    %c0_i32_39 = arith.constant 0 : i32
    %60 = tpu.memref_slice %arg4[%59, %c0_i32_39] : memref<32x256xf32, #tpu.memory_space<any>> -> memref<1x256xf32, #tpu.memory_space<any>>
    %c5_i32_40 = arith.constant 5 : i32
    %c0_i32_41 = arith.constant 0 : i32
    %61 = tpu.memref_slice %arg7[%c0_i32_37, %c5_i32_40, %c0_i32_41] : memref<2x8x256xf32, #tpu.memory_space<vmem>> -> memref<1x1x256xf32, #tpu.memory_space<vmem>>
    %62 = tpu.memref_squeeze %61 : memref<1x1x256xf32, #tpu.memory_space<vmem>> -> memref<1x256xf32, #tpu.memory_space<vmem>>
    %63 = tpu.memref_slice %arg9[%c0_i32_38, %c5_i32] : memref<2x8x!tpu.dma_semaphore, #tpu.memory_space<semaphore_mem>> -> memref<1x1x!tpu.dma_semaphore, #tpu.memory_space<semaphore_mem>>
    %64 = tpu.memref_squeeze %63 : memref<1x1x!tpu.dma_semaphore, #tpu.memory_space<semaphore_mem>> -> memref<!tpu.dma_semaphore, #tpu.memory_space<semaphore_mem>>
    tpu.enqueue_dma source(%60 : memref<1x256xf32, #tpu.memory_space<any>>) target(%62 : memref<1x256xf32, #tpu.memory_space<vmem>>) target_semaphore(%64 : memref<!tpu.dma_semaphore, #tpu.memory_space<semaphore_mem>>)
    %c0_i32_42 = arith.constant 0 : i32
    %65 = arith.addi %0, %c0_i32_42 : i32
    %c8_i32_43 = arith.constant 8 : i32
    %66 = arith.muli %65, %c8_i32_43 : i32
    %67 = arith.index_cast %arg1 : i32 to index
    %c6 = arith.constant 6 : index
    %68 = memref.load %arg2[%67, %c6] : memref<2x8xi32, #tpu.memory_space<smem>>
    %69 = arith.addi %66, %68 : i32
    %c0_i32_44 = arith.constant 0 : i32
    %c0_i32_45 = arith.constant 0 : i32
    %c6_i32 = arith.constant 6 : i32
    %c0_i32_46 = arith.constant 0 : i32
    %70 = tpu.memref_slice %arg4[%69, %c0_i32_46] : memref<32x256xf32, #tpu.memory_space<any>> -> memref<1x256xf32, #tpu.memory_space<any>>
    %c6_i32_47 = arith.constant 6 : i32
    %c0_i32_48 = arith.constant 0 : i32
    %71 = tpu.memref_slice %arg7[%c0_i32_44, %c6_i32_47, %c0_i32_48] : memref<2x8x256xf32, #tpu.memory_space<vmem>> -> memref<1x1x256xf32, #tpu.memory_space<vmem>>
    %72 = tpu.memref_squeeze %71 : memref<1x1x256xf32, #tpu.memory_space<vmem>> -> memref<1x256xf32, #tpu.memory_space<vmem>>
    %73 = tpu.memref_slice %arg9[%c0_i32_45, %c6_i32] : memref<2x8x!tpu.dma_semaphore, #tpu.memory_space<semaphore_mem>> -> memref<1x1x!tpu.dma_semaphore, #tpu.memory_space<semaphore_mem>>
    %74 = tpu.memref_squeeze %73 : memref<1x1x!tpu.dma_semaphore, #tpu.memory_space<semaphore_mem>> -> memref<!tpu.dma_semaphore, #tpu.memory_space<semaphore_mem>>
    tpu.enqueue_dma source(%70 : memref<1x256xf32, #tpu.memory_space<any>>) target(%72 : memref<1x256xf32, #tpu.memory_space<vmem>>) target_semaphore(%74 : memref<!tpu.dma_semaphore, #tpu.memory_space<semaphore_mem>>)
    %c0_i32_49 = arith.constant 0 : i32
    %75 = arith.addi %0, %c0_i32_49 : i32
    %c8_i32_50 = arith.constant 8 : i32
    %76 = arith.muli %75, %c8_i32_50 : i32
    %77 = arith.index_cast %arg1 : i32 to index
    %c7 = arith.constant 7 : index
    %78 = memref.load %arg2[%77, %c7] : memref<2x8xi32, #tpu.memory_space<smem>>
    %79 = arith.addi %76, %78 : i32
    %c0_i32_51 = arith.constant 0 : i32
    %c0_i32_52 = arith.constant 0 : i32
    %c7_i32 = arith.constant 7 : i32
    %c0_i32_53 = arith.constant 0 : i32
    %80 = tpu.memref_slice %arg4[%79, %c0_i32_53] : memref<32x256xf32, #tpu.memory_space<any>> -> memref<1x256xf32, #tpu.memory_space<any>>
    %c7_i32_54 = arith.constant 7 : i32
    %c0_i32_55 = arith.constant 0 : i32
    %81 = tpu.memref_slice %arg7[%c0_i32_51, %c7_i32_54, %c0_i32_55] : memref<2x8x256xf32, #tpu.memory_space<vmem>> -> memref<1x1x256xf32, #tpu.memory_space<vmem>>
    %82 = tpu.memref_squeeze %81 : memref<1x1x256xf32, #tpu.memory_space<vmem>> -> memref<1x256xf32, #tpu.memory_space<vmem>>
    %83 = tpu.memref_slice %arg9[%c0_i32_52, %c7_i32] : memref<2x8x!tpu.dma_semaphore, #tpu.memory_space<semaphore_mem>> -> memref<1x1x!tpu.dma_semaphore, #tpu.memory_space<semaphore_mem>>
    %84 = tpu.memref_squeeze %83 : memref<1x1x!tpu.dma_semaphore, #tpu.memory_space<semaphore_mem>> -> memref<!tpu.dma_semaphore, #tpu.memory_space<semaphore_mem>>
    tpu.enqueue_dma source(%80 : memref<1x256xf32, #tpu.memory_space<any>>) target(%82 : memref<1x256xf32, #tpu.memory_space<vmem>>) target_semaphore(%84 : memref<!tpu.dma_semaphore, #tpu.memory_space<semaphore_mem>>)
    %c1_i32_56 = arith.constant 1 : i32
    %85 = arith.addi %0, %c1_i32_56 : i32
    %c8_i32_57 = arith.constant 8 : i32
    %86 = arith.muli %85, %c8_i32_57 : i32
    %87 = arith.index_cast %arg1 : i32 to index
    %c0_58 = arith.constant 0 : index
    %88 = memref.load %arg2[%87, %c0_58] : memref<2x8xi32, #tpu.memory_space<smem>>
    %89 = arith.addi %86, %88 : i32
    %c1_i32_59 = arith.constant 1 : i32
    %c1_i32_60 = arith.constant 1 : i32
    %c0_i32_61 = arith.constant 0 : i32
    %c0_i32_62 = arith.constant 0 : i32
    %90 = tpu.memref_slice %arg4[%89, %c0_i32_62] : memref<32x256xf32, #tpu.memory_space<any>> -> memref<1x256xf32, #tpu.memory_space<any>>
    %c0_i32_63 = arith.constant 0 : i32
    %c0_i32_64 = arith.constant 0 : i32
    %91 = tpu.memref_slice %arg7[%c1_i32_59, %c0_i32_63, %c0_i32_64] : memref<2x8x256xf32, #tpu.memory_space<vmem>> -> memref<1x1x256xf32, #tpu.memory_space<vmem>>
    %92 = tpu.memref_squeeze %91 : memref<1x1x256xf32, #tpu.memory_space<vmem>> -> memref<1x256xf32, #tpu.memory_space<vmem>>
    %93 = tpu.memref_slice %arg9[%c1_i32_60, %c0_i32_61] : memref<2x8x!tpu.dma_semaphore, #tpu.memory_space<semaphore_mem>> -> memref<1x1x!tpu.dma_semaphore, #tpu.memory_space<semaphore_mem>>
    %94 = tpu.memref_squeeze %93 : memref<1x1x!tpu.dma_semaphore, #tpu.memory_space<semaphore_mem>> -> memref<!tpu.dma_semaphore, #tpu.memory_space<semaphore_mem>>
    tpu.enqueue_dma source(%90 : memref<1x256xf32, #tpu.memory_space<any>>) target(%92 : memref<1x256xf32, #tpu.memory_space<vmem>>) target_semaphore(%94 : memref<!tpu.dma_semaphore, #tpu.memory_space<semaphore_mem>>)
    %c1_i32_65 = arith.constant 1 : i32
    %95 = arith.addi %0, %c1_i32_65 : i32
    %c8_i32_66 = arith.constant 8 : i32
    %96 = arith.muli %95, %c8_i32_66 : i32
    %97 = arith.index_cast %arg1 : i32 to index
    %c1_67 = arith.constant 1 : index
    %98 = memref.load %arg2[%97, %c1_67] : memref<2x8xi32, #tpu.memory_space<smem>>
    %99 = arith.addi %96, %98 : i32
    %c1_i32_68 = arith.constant 1 : i32
    %c1_i32_69 = arith.constant 1 : i32
    %c1_i32_70 = arith.constant 1 : i32
    %c0_i32_71 = arith.constant 0 : i32
    %100 = tpu.memref_slice %arg4[%99, %c0_i32_71] : memref<32x256xf32, #tpu.memory_space<any>> -> memref<1x256xf32, #tpu.memory_space<any>>
    %c1_i32_72 = arith.constant 1 : i32
    %c0_i32_73 = arith.constant 0 : i32
    %101 = tpu.memref_slice %arg7[%c1_i32_68, %c1_i32_72, %c0_i32_73] : memref<2x8x256xf32, #tpu.memory_space<vmem>> -> memref<1x1x256xf32, #tpu.memory_space<vmem>>
    %102 = tpu.memref_squeeze %101 : memref<1x1x256xf32, #tpu.memory_space<vmem>> -> memref<1x256xf32, #tpu.memory_space<vmem>>
    %103 = tpu.memref_slice %arg9[%c1_i32_69, %c1_i32_70] : memref<2x8x!tpu.dma_semaphore, #tpu.memory_space<semaphore_mem>> -> memref<1x1x!tpu.dma_semaphore, #tpu.memory_space<semaphore_mem>>
    %104 = tpu.memref_squeeze %103 : memref<1x1x!tpu.dma_semaphore, #tpu.memory_space<semaphore_mem>> -> memref<!tpu.dma_semaphore, #tpu.memory_space<semaphore_mem>>
    tpu.enqueue_dma source(%100 : memref<1x256xf32, #tpu.memory_space<any>>) target(%102 : memref<1x256xf32, #tpu.memory_space<vmem>>) target_semaphore(%104 : memref<!tpu.dma_semaphore, #tpu.memory_space<semaphore_mem>>)
    %c1_i32_74 = arith.constant 1 : i32
    %105 = arith.addi %0, %c1_i32_74 : i32
    %c8_i32_75 = arith.constant 8 : i32
    %106 = arith.muli %105, %c8_i32_75 : i32
    %107 = arith.index_cast %arg1 : i32 to index
    %c2_76 = arith.constant 2 : index
    %108 = memref.load %arg2[%107, %c2_76] : memref<2x8xi32, #tpu.memory_space<smem>>
    %109 = arith.addi %106, %108 : i32
    %c1_i32_77 = arith.constant 1 : i32
    %c1_i32_78 = arith.constant 1 : i32
    %c2_i32_79 = arith.constant 2 : i32
    %c0_i32_80 = arith.constant 0 : i32
    %110 = tpu.memref_slice %arg4[%109, %c0_i32_80] : memref<32x256xf32, #tpu.memory_space<any>> -> memref<1x256xf32, #tpu.memory_space<any>>
    %c2_i32_81 = arith.constant 2 : i32
    %c0_i32_82 = arith.constant 0 : i32
    %111 = tpu.memref_slice %arg7[%c1_i32_77, %c2_i32_81, %c0_i32_82] : memref<2x8x256xf32, #tpu.memory_space<vmem>> -> memref<1x1x256xf32, #tpu.memory_space<vmem>>
    %112 = tpu.memref_squeeze %111 : memref<1x1x256xf32, #tpu.memory_space<vmem>> -> memref<1x256xf32, #tpu.memory_space<vmem>>
    %113 = tpu.memref_slice %arg9[%c1_i32_78, %c2_i32_79] : memref<2x8x!tpu.dma_semaphore, #tpu.memory_space<semaphore_mem>> -> memref<1x1x!tpu.dma_semaphore, #tpu.memory_space<semaphore_mem>>
    %114 = tpu.memref_squeeze %113 : memref<1x1x!tpu.dma_semaphore, #tpu.memory_space<semaphore_mem>> -> memref<!tpu.dma_semaphore, #tpu.memory_space<semaphore_mem>>
    tpu.enqueue_dma source(%110 : memref<1x256xf32, #tpu.memory_space<any>>) target(%112 : memref<1x256xf32, #tpu.memory_space<vmem>>) target_semaphore(%114 : memref<!tpu.dma_semaphore, #tpu.memory_space<semaphore_mem>>)
    %c1_i32_83 = arith.constant 1 : i32
    %115 = arith.addi %0, %c1_i32_83 : i32
    %c8_i32_84 = arith.constant 8 : i32
    %116 = arith.muli %115, %c8_i32_84 : i32
    %117 = arith.index_cast %arg1 : i32 to index
    %c3_85 = arith.constant 3 : index
    %118 = memref.load %arg2[%117, %c3_85] : memref<2x8xi32, #tpu.memory_space<smem>>
    %119 = arith.addi %116, %118 : i32
    %c1_i32_86 = arith.constant 1 : i32
    %c1_i32_87 = arith.constant 1 : i32
    %c3_i32_88 = arith.constant 3 : i32
    %c0_i32_89 = arith.constant 0 : i32
    %120 = tpu.memref_slice %arg4[%119, %c0_i32_89] : memref<32x256xf32, #tpu.memory_space<any>> -> memref<1x256xf32, #tpu.memory_space<any>>
    %c3_i32_90 = arith.constant 3 : i32
    %c0_i32_91 = arith.constant 0 : i32
    %121 = tpu.memref_slice %arg7[%c1_i32_86, %c3_i32_90, %c0_i32_91] : memref<2x8x256xf32, #tpu.memory_space<vmem>> -> memref<1x1x256xf32, #tpu.memory_space<vmem>>
    %122 = tpu.memref_squeeze %121 : memref<1x1x256xf32, #tpu.memory_space<vmem>> -> memref<1x256xf32, #tpu.memory_space<vmem>>
    %123 = tpu.memref_slice %arg9[%c1_i32_87, %c3_i32_88] : memref<2x8x!tpu.dma_semaphore, #tpu.memory_space<semaphore_mem>> -> memref<1x1x!tpu.dma_semaphore, #tpu.memory_space<semaphore_mem>>
    %124 = tpu.memref_squeeze %123 : memref<1x1x!tpu.dma_semaphore, #tpu.memory_space<semaphore_mem>> -> memref<!tpu.dma_semaphore, #tpu.memory_space<semaphore_mem>>
    tpu.enqueue_dma source(%120 : memref<1x256xf32, #tpu.memory_space<any>>) target(%122 : memref<1x256xf32, #tpu.memory_space<vmem>>) target_semaphore(%124 : memref<!tpu.dma_semaphore, #tpu.memory_space<semaphore_mem>>)
    %c1_i32_92 = arith.constant 1 : i32
    %125 = arith.addi %0, %c1_i32_92 : i32
    %c8_i32_93 = arith.constant 8 : i32
    %126 = arith.muli %125, %c8_i32_93 : i32
    %127 = arith.index_cast %arg1 : i32 to index
    %c4_94 = arith.constant 4 : index
    %128 = memref.load %arg2[%127, %c4_94] : memref<2x8xi32, #tpu.memory_space<smem>>
    %129 = arith.addi %126, %128 : i32
    %c1_i32_95 = arith.constant 1 : i32
    %c1_i32_96 = arith.constant 1 : i32
    %c4_i32_97 = arith.constant 4 : i32
    %c0_i32_98 = arith.constant 0 : i32
    %130 = tpu.memref_slice %arg4[%129, %c0_i32_98] : memref<32x256xf32, #tpu.memory_space<any>> -> memref<1x256xf32, #tpu.memory_space<any>>
    %c4_i32_99 = arith.constant 4 : i32
    %c0_i32_100 = arith.constant 0 : i32
    %131 = tpu.memref_slice %arg7[%c1_i32_95, %c4_i32_99, %c0_i32_100] : memref<2x8x256xf32, #tpu.memory_space<vmem>> -> memref<1x1x256xf32, #tpu.memory_space<vmem>>
    %132 = tpu.memref_squeeze %131 : memref<1x1x256xf32, #tpu.memory_space<vmem>> -> memref<1x256xf32, #tpu.memory_space<vmem>>
    %133 = tpu.memref_slice %arg9[%c1_i32_96, %c4_i32_97] : memref<2x8x!tpu.dma_semaphore, #tpu.memory_space<semaphore_mem>> -> memref<1x1x!tpu.dma_semaphore, #tpu.memory_space<semaphore_mem>>
    %134 = tpu.memref_squeeze %133 : memref<1x1x!tpu.dma_semaphore, #tpu.memory_space<semaphore_mem>> -> memref<!tpu.dma_semaphore, #tpu.memory_space<semaphore_mem>>
    tpu.enqueue_dma source(%130 : memref<1x256xf32, #tpu.memory_space<any>>) target(%132 : memref<1x256xf32, #tpu.memory_space<vmem>>) target_semaphore(%134 : memref<!tpu.dma_semaphore, #tpu.memory_space<semaphore_mem>>)
    %c1_i32_101 = arith.constant 1 : i32
    %135 = arith.addi %0, %c1_i32_101 : i32
    %c8_i32_102 = arith.constant 8 : i32
    %136 = arith.muli %135, %c8_i32_102 : i32
    %137 = arith.index_cast %arg1 : i32 to index
    %c5_103 = arith.constant 5 : index
    %138 = memref.load %arg2[%137, %c5_103] : memref<2x8xi32, #tpu.memory_space<smem>>
    %139 = arith.addi %136, %138 : i32
    %c1_i32_104 = arith.constant 1 : i32
    %c1_i32_105 = arith.constant 1 : i32
    %c5_i32_106 = arith.constant 5 : i32
    %c0_i32_107 = arith.constant 0 : i32
    %140 = tpu.memref_slice %arg4[%139, %c0_i32_107] : memref<32x256xf32, #tpu.memory_space<any>> -> memref<1x256xf32, #tpu.memory_space<any>>
    %c5_i32_108 = arith.constant 5 : i32
    %c0_i32_109 = arith.constant 0 : i32
    %141 = tpu.memref_slice %arg7[%c1_i32_104, %c5_i32_108, %c0_i32_109] : memref<2x8x256xf32, #tpu.memory_space<vmem>> -> memref<1x1x256xf32, #tpu.memory_space<vmem>>
    %142 = tpu.memref_squeeze %141 : memref<1x1x256xf32, #tpu.memory_space<vmem>> -> memref<1x256xf32, #tpu.memory_space<vmem>>
    %143 = tpu.memref_slice %arg9[%c1_i32_105, %c5_i32_106] : memref<2x8x!tpu.dma_semaphore, #tpu.memory_space<semaphore_mem>> -> memref<1x1x!tpu.dma_semaphore, #tpu.memory_space<semaphore_mem>>
    %144 = tpu.memref_squeeze %143 : memref<1x1x!tpu.dma_semaphore, #tpu.memory_space<semaphore_mem>> -> memref<!tpu.dma_semaphore, #tpu.memory_space<semaphore_mem>>
    tpu.enqueue_dma source(%140 : memref<1x256xf32, #tpu.memory_space<any>>) target(%142 : memref<1x256xf32, #tpu.memory_space<vmem>>) target_semaphore(%144 : memref<!tpu.dma_semaphore, #tpu.memory_space<semaphore_mem>>)
    %c1_i32_110 = arith.constant 1 : i32
    %145 = arith.addi %0, %c1_i32_110 : i32
    %c8_i32_111 = arith.constant 8 : i32
    %146 = arith.muli %145, %c8_i32_111 : i32
    %147 = arith.index_cast %arg1 : i32 to index
    %c6_112 = arith.constant 6 : index
    %148 = memref.load %arg2[%147, %c6_112] : memref<2x8xi32, #tpu.memory_space<smem>>
    %149 = arith.addi %146, %148 : i32
    %c1_i32_113 = arith.constant 1 : i32
    %c1_i32_114 = arith.constant 1 : i32
    %c6_i32_115 = arith.constant 6 : i32
    %c0_i32_116 = arith.constant 0 : i32
    %150 = tpu.memref_slice %arg4[%149, %c0_i32_116] : memref<32x256xf32, #tpu.memory_space<any>> -> memref<1x256xf32, #tpu.memory_space<any>>
    %c6_i32_117 = arith.constant 6 : i32
    %c0_i32_118 = arith.constant 0 : i32
    %151 = tpu.memref_slice %arg7[%c1_i32_113, %c6_i32_117, %c0_i32_118] : memref<2x8x256xf32, #tpu.memory_space<vmem>> -> memref<1x1x256xf32, #tpu.memory_space<vmem>>
    %152 = tpu.memref_squeeze %151 : memref<1x1x256xf32, #tpu.memory_space<vmem>> -> memref<1x256xf32, #tpu.memory_space<vmem>>
    %153 = tpu.memref_slice %arg9[%c1_i32_114, %c6_i32_115] : memref<2x8x!tpu.dma_semaphore, #tpu.memory_space<semaphore_mem>> -> memref<1x1x!tpu.dma_semaphore, #tpu.memory_space<semaphore_mem>>
    %154 = tpu.memref_squeeze %153 : memref<1x1x!tpu.dma_semaphore, #tpu.memory_space<semaphore_mem>> -> memref<!tpu.dma_semaphore, #tpu.memory_space<semaphore_mem>>
    tpu.enqueue_dma source(%150 : memref<1x256xf32, #tpu.memory_space<any>>) target(%152 : memref<1x256xf32, #tpu.memory_space<vmem>>) target_semaphore(%154 : memref<!tpu.dma_semaphore, #tpu.memory_space<semaphore_mem>>)
    %c1_i32_119 = arith.constant 1 : i32
    %155 = arith.addi %0, %c1_i32_119 : i32
    %c8_i32_120 = arith.constant 8 : i32
    %156 = arith.muli %155, %c8_i32_120 : i32
    %157 = arith.index_cast %arg1 : i32 to index
    %c7_121 = arith.constant 7 : index
    %158 = memref.load %arg2[%157, %c7_121] : memref<2x8xi32, #tpu.memory_space<smem>>
    %159 = arith.addi %156, %158 : i32
    %c1_i32_122 = arith.constant 1 : i32
    %c1_i32_123 = arith.constant 1 : i32
    %c7_i32_124 = arith.constant 7 : i32
    %c0_i32_125 = arith.constant 0 : i32
    %160 = tpu.memref_slice %arg4[%159, %c0_i32_125] : memref<32x256xf32, #tpu.memory_space<any>> -> memref<1x256xf32, #tpu.memory_space<any>>
    %c7_i32_126 = arith.constant 7 : i32
    %c0_i32_127 = arith.constant 0 : i32
    %161 = tpu.memref_slice %arg7[%c1_i32_122, %c7_i32_126, %c0_i32_127] : memref<2x8x256xf32, #tpu.memory_space<vmem>> -> memref<1x1x256xf32, #tpu.memory_space<vmem>>
    %162 = tpu.memref_squeeze %161 : memref<1x1x256xf32, #tpu.memory_space<vmem>> -> memref<1x256xf32, #tpu.memory_space<vmem>>
    %163 = tpu.memref_slice %arg9[%c1_i32_123, %c7_i32_124] : memref<2x8x!tpu.dma_semaphore, #tpu.memory_space<semaphore_mem>> -> memref<1x1x!tpu.dma_semaphore, #tpu.memory_space<semaphore_mem>>
    %164 = tpu.memref_squeeze %163 : memref<1x1x!tpu.dma_semaphore, #tpu.memory_space<semaphore_mem>> -> memref<!tpu.dma_semaphore, #tpu.memory_space<semaphore_mem>>
    tpu.enqueue_dma source(%160 : memref<1x256xf32, #tpu.memory_space<any>>) target(%162 : memref<1x256xf32, #tpu.memory_space<vmem>>) target_semaphore(%164 : memref<!tpu.dma_semaphore, #tpu.memory_space<semaphore_mem>>)
    %c0_i32_128 = arith.constant 0 : i32
    %165 = arith.addi %0, %c0_i32_128 : i32
    %c8_i32_129 = arith.constant 8 : i32
    %166 = arith.muli %165, %c8_i32_129 : i32
    %167 = arith.index_cast %arg1 : i32 to index
    %c0_130 = arith.constant 0 : index
    %168 = memref.load %arg2[%167, %c0_130] : memref<2x8xi32, #tpu.memory_space<smem>>
    %169 = arith.addi %166, %168 : i32
    %c0_i32_131 = arith.constant 0 : i32
    %c0_i32_132 = arith.constant 0 : i32
    %c0_i32_133 = arith.constant 0 : i32
    %c0_i32_134 = arith.constant 0 : i32
    %170 = tpu.memref_slice %arg4[%169, %c0_i32_134] : memref<32x256xf32, #tpu.memory_space<any>> -> memref<1x256xf32, #tpu.memory_space<any>>
    %c0_i32_135 = arith.constant 0 : i32
    %c0_i32_136 = arith.constant 0 : i32
    %171 = tpu.memref_slice %arg7[%c0_i32_131, %c0_i32_135, %c0_i32_136] : memref<2x8x256xf32, #tpu.memory_space<vmem>> -> memref<1x1x256xf32, #tpu.memory_space<vmem>>
    %172 = tpu.memref_squeeze %171 : memref<1x1x256xf32, #tpu.memory_space<vmem>> -> memref<1x256xf32, #tpu.memory_space<vmem>>
    %173 = tpu.memref_slice %arg9[%c0_i32_132, %c0_i32_133] : memref<2x8x!tpu.dma_semaphore, #tpu.memory_space<semaphore_mem>> -> memref<1x1x!tpu.dma_semaphore, #tpu.memory_space<semaphore_mem>>
    %174 = tpu.memref_squeeze %173 : memref<1x1x!tpu.dma_semaphore, #tpu.memory_space<semaphore_mem>> -> memref<!tpu.dma_semaphore, #tpu.memory_space<semaphore_mem>>
    tpu.wait_dma2 semaphore(%174 : memref<!tpu.dma_semaphore, #tpu.memory_space<semaphore_mem>>) src(%170 : memref<1x256xf32, #tpu.memory_space<any>>) dst(%172 : memref<1x256xf32, #tpu.memory_space<vmem>>)
    %c0_i32_137 = arith.constant 0 : i32
    %175 = arith.addi %0, %c0_i32_137 : i32
    %c8_i32_138 = arith.constant 8 : i32
    %176 = arith.muli %175, %c8_i32_138 : i32
    %177 = arith.index_cast %arg1 : i32 to index
    %c1_139 = arith.constant 1 : index
    %178 = memref.load %arg2[%177, %c1_139] : memref<2x8xi32, #tpu.memory_space<smem>>
    %179 = arith.addi %176, %178 : i32
    %c0_i32_140 = arith.constant 0 : i32
    %c0_i32_141 = arith.constant 0 : i32
    %c1_i32_142 = arith.constant 1 : i32
    %c0_i32_143 = arith.constant 0 : i32
    %180 = tpu.memref_slice %arg4[%179, %c0_i32_143] : memref<32x256xf32, #tpu.memory_space<any>> -> memref<1x256xf32, #tpu.memory_space<any>>
    %c1_i32_144 = arith.constant 1 : i32
    %c0_i32_145 = arith.constant 0 : i32
    %181 = tpu.memref_slice %arg7[%c0_i32_140, %c1_i32_144, %c0_i32_145] : memref<2x8x256xf32, #tpu.memory_space<vmem>> -> memref<1x1x256xf32, #tpu.memory_space<vmem>>
    %182 = tpu.memref_squeeze %181 : memref<1x1x256xf32, #tpu.memory_space<vmem>> -> memref<1x256xf32, #tpu.memory_space<vmem>>
    %183 = tpu.memref_slice %arg9[%c0_i32_141, %c1_i32_142] : memref<2x8x!tpu.dma_semaphore, #tpu.memory_space<semaphore_mem>> -> memref<1x1x!tpu.dma_semaphore, #tpu.memory_space<semaphore_mem>>
    %184 = tpu.memref_squeeze %183 : memref<1x1x!tpu.dma_semaphore, #tpu.memory_space<semaphore_mem>> -> memref<!tpu.dma_semaphore, #tpu.memory_space<semaphore_mem>>
    tpu.wait_dma2 semaphore(%184 : memref<!tpu.dma_semaphore, #tpu.memory_space<semaphore_mem>>) src(%180 : memref<1x256xf32, #tpu.memory_space<any>>) dst(%182 : memref<1x256xf32, #tpu.memory_space<vmem>>)
    %c0_i32_146 = arith.constant 0 : i32
    %185 = arith.addi %0, %c0_i32_146 : i32
    %c8_i32_147 = arith.constant 8 : i32
    %186 = arith.muli %185, %c8_i32_147 : i32
    %187 = arith.index_cast %arg1 : i32 to index
    %c2_148 = arith.constant 2 : index
    %188 = memref.load %arg2[%187, %c2_148] : memref<2x8xi32, #tpu.memory_space<smem>>
    %189 = arith.addi %186, %188 : i32
    %c0_i32_149 = arith.constant 0 : i32
    %c0_i32_150 = arith.constant 0 : i32
    %c2_i32_151 = arith.constant 2 : i32
    %c0_i32_152 = arith.constant 0 : i32
    %190 = tpu.memref_slice %arg4[%189, %c0_i32_152] : memref<32x256xf32, #tpu.memory_space<any>> -> memref<1x256xf32, #tpu.memory_space<any>>
    %c2_i32_153 = arith.constant 2 : i32
    %c0_i32_154 = arith.constant 0 : i32
    %191 = tpu.memref_slice %arg7[%c0_i32_149, %c2_i32_153, %c0_i32_154] : memref<2x8x256xf32, #tpu.memory_space<vmem>> -> memref<1x1x256xf32, #tpu.memory_space<vmem>>
    %192 = tpu.memref_squeeze %191 : memref<1x1x256xf32, #tpu.memory_space<vmem>> -> memref<1x256xf32, #tpu.memory_space<vmem>>
    %193 = tpu.memref_slice %arg9[%c0_i32_150, %c2_i32_151] : memref<2x8x!tpu.dma_semaphore, #tpu.memory_space<semaphore_mem>> -> memref<1x1x!tpu.dma_semaphore, #tpu.memory_space<semaphore_mem>>
    %194 = tpu.memref_squeeze %193 : memref<1x1x!tpu.dma_semaphore, #tpu.memory_space<semaphore_mem>> -> memref<!tpu.dma_semaphore, #tpu.memory_space<semaphore_mem>>
    tpu.wait_dma2 semaphore(%194 : memref<!tpu.dma_semaphore, #tpu.memory_space<semaphore_mem>>) src(%190 : memref<1x256xf32, #tpu.memory_space<any>>) dst(%192 : memref<1x256xf32, #tpu.memory_space<vmem>>)
    %c0_i32_155 = arith.constant 0 : i32
    %195 = arith.addi %0, %c0_i32_155 : i32
    %c8_i32_156 = arith.constant 8 : i32
    %196 = arith.muli %195, %c8_i32_156 : i32
    %197 = arith.index_cast %arg1 : i32 to index
    %c3_157 = arith.constant 3 : index
    %198 = memref.load %arg2[%197, %c3_157] : memref<2x8xi32, #tpu.memory_space<smem>>
    %199 = arith.addi %196, %198 : i32
    %c0_i32_158 = arith.constant 0 : i32
    %c0_i32_159 = arith.constant 0 : i32
    %c3_i32_160 = arith.constant 3 : i32
    %c0_i32_161 = arith.constant 0 : i32
    %200 = tpu.memref_slice %arg4[%199, %c0_i32_161] : memref<32x256xf32, #tpu.memory_space<any>> -> memref<1x256xf32, #tpu.memory_space<any>>
    %c3_i32_162 = arith.constant 3 : i32
    %c0_i32_163 = arith.constant 0 : i32
    %201 = tpu.memref_slice %arg7[%c0_i32_158, %c3_i32_162, %c0_i32_163] : memref<2x8x256xf32, #tpu.memory_space<vmem>> -> memref<1x1x256xf32, #tpu.memory_space<vmem>>
    %202 = tpu.memref_squeeze %201 : memref<1x1x256xf32, #tpu.memory_space<vmem>> -> memref<1x256xf32, #tpu.memory_space<vmem>>
    %203 = tpu.memref_slice %arg9[%c0_i32_159, %c3_i32_160] : memref<2x8x!tpu.dma_semaphore, #tpu.memory_space<semaphore_mem>> -> memref<1x1x!tpu.dma_semaphore, #tpu.memory_space<semaphore_mem>>
    %204 = tpu.memref_squeeze %203 : memref<1x1x!tpu.dma_semaphore, #tpu.memory_space<semaphore_mem>> -> memref<!tpu.dma_semaphore, #tpu.memory_space<semaphore_mem>>
    tpu.wait_dma2 semaphore(%204 : memref<!tpu.dma_semaphore, #tpu.memory_space<semaphore_mem>>) src(%200 : memref<1x256xf32, #tpu.memory_space<any>>) dst(%202 : memref<1x256xf32, #tpu.memory_space<vmem>>)
    %c0_i32_164 = arith.constant 0 : i32
    %205 = arith.addi %0, %c0_i32_164 : i32
    %c8_i32_165 = arith.constant 8 : i32
    %206 = arith.muli %205, %c8_i32_165 : i32
    %207 = arith.index_cast %arg1 : i32 to index
    %c4_166 = arith.constant 4 : index
    %208 = memref.load %arg2[%207, %c4_166] : memref<2x8xi32, #tpu.memory_space<smem>>
    %209 = arith.addi %206, %208 : i32
    %c0_i32_167 = arith.constant 0 : i32
    %c0_i32_168 = arith.constant 0 : i32
    %c4_i32_169 = arith.constant 4 : i32
    %c0_i32_170 = arith.constant 0 : i32
    %210 = tpu.memref_slice %arg4[%209, %c0_i32_170] : memref<32x256xf32, #tpu.memory_space<any>> -> memref<1x256xf32, #tpu.memory_space<any>>
    %c4_i32_171 = arith.constant 4 : i32
    %c0_i32_172 = arith.constant 0 : i32
    %211 = tpu.memref_slice %arg7[%c0_i32_167, %c4_i32_171, %c0_i32_172] : memref<2x8x256xf32, #tpu.memory_space<vmem>> -> memref<1x1x256xf32, #tpu.memory_space<vmem>>
    %212 = tpu.memref_squeeze %211 : memref<1x1x256xf32, #tpu.memory_space<vmem>> -> memref<1x256xf32, #tpu.memory_space<vmem>>
    %213 = tpu.memref_slice %arg9[%c0_i32_168, %c4_i32_169] : memref<2x8x!tpu.dma_semaphore, #tpu.memory_space<semaphore_mem>> -> memref<1x1x!tpu.dma_semaphore, #tpu.memory_space<semaphore_mem>>
    %214 = tpu.memref_squeeze %213 : memref<1x1x!tpu.dma_semaphore, #tpu.memory_space<semaphore_mem>> -> memref<!tpu.dma_semaphore, #tpu.memory_space<semaphore_mem>>
    tpu.wait_dma2 semaphore(%214 : memref<!tpu.dma_semaphore, #tpu.memory_space<semaphore_mem>>) src(%210 : memref<1x256xf32, #tpu.memory_space<any>>) dst(%212 : memref<1x256xf32, #tpu.memory_space<vmem>>)
    %c0_i32_173 = arith.constant 0 : i32
    %215 = arith.addi %0, %c0_i32_173 : i32
    %c8_i32_174 = arith.constant 8 : i32
    %216 = arith.muli %215, %c8_i32_174 : i32
    %217 = arith.index_cast %arg1 : i32 to index
    %c5_175 = arith.constant 5 : index
    %218 = memref.load %arg2[%217, %c5_175] : memref<2x8xi32, #tpu.memory_space<smem>>
    %219 = arith.addi %216, %218 : i32
    %c0_i32_176 = arith.constant 0 : i32
    %c0_i32_177 = arith.constant 0 : i32
    %c5_i32_178 = arith.constant 5 : i32
    %c0_i32_179 = arith.constant 0 : i32
    %220 = tpu.memref_slice %arg4[%219, %c0_i32_179] : memref<32x256xf32, #tpu.memory_space<any>> -> memref<1x256xf32, #tpu.memory_space<any>>
    %c5_i32_180 = arith.constant 5 : i32
    %c0_i32_181 = arith.constant 0 : i32
    %221 = tpu.memref_slice %arg7[%c0_i32_176, %c5_i32_180, %c0_i32_181] : memref<2x8x256xf32, #tpu.memory_space<vmem>> -> memref<1x1x256xf32, #tpu.memory_space<vmem>>
    %222 = tpu.memref_squeeze %221 : memref<1x1x256xf32, #tpu.memory_space<vmem>> -> memref<1x256xf32, #tpu.memory_space<vmem>>
    %223 = tpu.memref_slice %arg9[%c0_i32_177, %c5_i32_178] : memref<2x8x!tpu.dma_semaphore, #tpu.memory_space<semaphore_mem>> -> memref<1x1x!tpu.dma_semaphore, #tpu.memory_space<semaphore_mem>>
    %224 = tpu.memref_squeeze %223 : memref<1x1x!tpu.dma_semaphore, #tpu.memory_space<semaphore_mem>> -> memref<!tpu.dma_semaphore, #tpu.memory_space<semaphore_mem>>
    tpu.wait_dma2 semaphore(%224 : memref<!tpu.dma_semaphore, #tpu.memory_space<semaphore_mem>>) src(%220 : memref<1x256xf32, #tpu.memory_space<any>>) dst(%222 : memref<1x256xf32, #tpu.memory_space<vmem>>)
    %c0_i32_182 = arith.constant 0 : i32
    %225 = arith.addi %0, %c0_i32_182 : i32
    %c8_i32_183 = arith.constant 8 : i32
    %226 = arith.muli %225, %c8_i32_183 : i32
    %227 = arith.index_cast %arg1 : i32 to index
    %c6_184 = arith.constant 6 : index
    %228 = memref.load %arg2[%227, %c6_184] : memref<2x8xi32, #tpu.memory_space<smem>>
    %229 = arith.addi %226, %228 : i32
    %c0_i32_185 = arith.constant 0 : i32
    %c0_i32_186 = arith.constant 0 : i32
    %c6_i32_187 = arith.constant 6 : i32
    %c0_i32_188 = arith.constant 0 : i32
    %230 = tpu.memref_slice %arg4[%229, %c0_i32_188] : memref<32x256xf32, #tpu.memory_space<any>> -> memref<1x256xf32, #tpu.memory_space<any>>
    %c6_i32_189 = arith.constant 6 : i32
    %c0_i32_190 = arith.constant 0 : i32
    %231 = tpu.memref_slice %arg7[%c0_i32_185, %c6_i32_189, %c0_i32_190] : memref<2x8x256xf32, #tpu.memory_space<vmem>> -> memref<1x1x256xf32, #tpu.memory_space<vmem>>
    %232 = tpu.memref_squeeze %231 : memref<1x1x256xf32, #tpu.memory_space<vmem>> -> memref<1x256xf32, #tpu.memory_space<vmem>>
    %233 = tpu.memref_slice %arg9[%c0_i32_186, %c6_i32_187] : memref<2x8x!tpu.dma_semaphore, #tpu.memory_space<semaphore_mem>> -> memref<1x1x!tpu.dma_semaphore, #tpu.memory_space<semaphore_mem>>
    %234 = tpu.memref_squeeze %233 : memref<1x1x!tpu.dma_semaphore, #tpu.memory_space<semaphore_mem>> -> memref<!tpu.dma_semaphore, #tpu.memory_space<semaphore_mem>>
    tpu.wait_dma2 semaphore(%234 : memref<!tpu.dma_semaphore, #tpu.memory_space<semaphore_mem>>) src(%230 : memref<1x256xf32, #tpu.memory_space<any>>) dst(%232 : memref<1x256xf32, #tpu.memory_space<vmem>>)
    %c0_i32_191 = arith.constant 0 : i32
    %235 = arith.addi %0, %c0_i32_191 : i32
    %c8_i32_192 = arith.constant 8 : i32
    %236 = arith.muli %235, %c8_i32_192 : i32
    %237 = arith.index_cast %arg1 : i32 to index
    %c7_193 = arith.constant 7 : index
    %238 = memref.load %arg2[%237, %c7_193] : memref<2x8xi32, #tpu.memory_space<smem>>
    %239 = arith.addi %236, %238 : i32
    %c0_i32_194 = arith.constant 0 : i32
    %c0_i32_195 = arith.constant 0 : i32
    %c7_i32_196 = arith.constant 7 : i32
    %c0_i32_197 = arith.constant 0 : i32
    %240 = tpu.memref_slice %arg4[%239, %c0_i32_197] : memref<32x256xf32, #tpu.memory_space<any>> -> memref<1x256xf32, #tpu.memory_space<any>>
    %c7_i32_198 = arith.constant 7 : i32
    %c0_i32_199 = arith.constant 0 : i32
    %241 = tpu.memref_slice %arg7[%c0_i32_194, %c7_i32_198, %c0_i32_199] : memref<2x8x256xf32, #tpu.memory_space<vmem>> -> memref<1x1x256xf32, #tpu.memory_space<vmem>>
    %242 = tpu.memref_squeeze %241 : memref<1x1x256xf32, #tpu.memory_space<vmem>> -> memref<1x256xf32, #tpu.memory_space<vmem>>
    %243 = tpu.memref_slice %arg9[%c0_i32_195, %c7_i32_196] : memref<2x8x!tpu.dma_semaphore, #tpu.memory_space<semaphore_mem>> -> memref<1x1x!tpu.dma_semaphore, #tpu.memory_space<semaphore_mem>>
    %244 = tpu.memref_squeeze %243 : memref<1x1x!tpu.dma_semaphore, #tpu.memory_space<semaphore_mem>> -> memref<!tpu.dma_semaphore, #tpu.memory_space<semaphore_mem>>
    tpu.wait_dma2 semaphore(%244 : memref<!tpu.dma_semaphore, #tpu.memory_space<semaphore_mem>>) src(%240 : memref<1x256xf32, #tpu.memory_space<any>>) dst(%242 : memref<1x256xf32, #tpu.memory_space<vmem>>)
    %c1_i32_200 = arith.constant 1 : i32
    %245 = arith.addi %0, %c1_i32_200 : i32
    %c8_i32_201 = arith.constant 8 : i32
    %246 = arith.muli %245, %c8_i32_201 : i32
    %247 = arith.index_cast %arg1 : i32 to index
    %c0_202 = arith.constant 0 : index
    %248 = memref.load %arg2[%247, %c0_202] : memref<2x8xi32, #tpu.memory_space<smem>>
    %249 = arith.addi %246, %248 : i32
    %c1_i32_203 = arith.constant 1 : i32
    %c1_i32_204 = arith.constant 1 : i32
    %c0_i32_205 = arith.constant 0 : i32
    %c0_i32_206 = arith.constant 0 : i32
    %250 = tpu.memref_slice %arg4[%249, %c0_i32_206] : memref<32x256xf32, #tpu.memory_space<any>> -> memref<1x256xf32, #tpu.memory_space<any>>
    %c0_i32_207 = arith.constant 0 : i32
    %c0_i32_208 = arith.constant 0 : i32
    %251 = tpu.memref_slice %arg7[%c1_i32_203, %c0_i32_207, %c0_i32_208] : memref<2x8x256xf32, #tpu.memory_space<vmem>> -> memref<1x1x256xf32, #tpu.memory_space<vmem>>
    %252 = tpu.memref_squeeze %251 : memref<1x1x256xf32, #tpu.memory_space<vmem>> -> memref<1x256xf32, #tpu.memory_space<vmem>>
    %253 = tpu.memref_slice %arg9[%c1_i32_204, %c0_i32_205] : memref<2x8x!tpu.dma_semaphore, #tpu.memory_space<semaphore_mem>> -> memref<1x1x!tpu.dma_semaphore, #tpu.memory_space<semaphore_mem>>
    %254 = tpu.memref_squeeze %253 : memref<1x1x!tpu.dma_semaphore, #tpu.memory_space<semaphore_mem>> -> memref<!tpu.dma_semaphore, #tpu.memory_space<semaphore_mem>>
    tpu.wait_dma2 semaphore(%254 : memref<!tpu.dma_semaphore, #tpu.memory_space<semaphore_mem>>) src(%250 : memref<1x256xf32, #tpu.memory_space<any>>) dst(%252 : memref<1x256xf32, #tpu.memory_space<vmem>>)
    %c1_i32_209 = arith.constant 1 : i32
    %255 = arith.addi %0, %c1_i32_209 : i32
    %c8_i32_210 = arith.constant 8 : i32
    %256 = arith.muli %255, %c8_i32_210 : i32
    %257 = arith.index_cast %arg1 : i32 to index
    %c1_211 = arith.constant 1 : index
    %258 = memref.load %arg2[%257, %c1_211] : memref<2x8xi32, #tpu.memory_space<smem>>
    %259 = arith.addi %256, %258 : i32
    %c1_i32_212 = arith.constant 1 : i32
    %c1_i32_213 = arith.constant 1 : i32
    %c1_i32_214 = arith.constant 1 : i32
    %c0_i32_215 = arith.constant 0 : i32
    %260 = tpu.memref_slice %arg4[%259, %c0_i32_215] : memref<32x256xf32, #tpu.memory_space<any>> -> memref<1x256xf32, #tpu.memory_space<any>>
    %c1_i32_216 = arith.constant 1 : i32
    %c0_i32_217 = arith.constant 0 : i32
    %261 = tpu.memref_slice %arg7[%c1_i32_212, %c1_i32_216, %c0_i32_217] : memref<2x8x256xf32, #tpu.memory_space<vmem>> -> memref<1x1x256xf32, #tpu.memory_space<vmem>>
    %262 = tpu.memref_squeeze %261 : memref<1x1x256xf32, #tpu.memory_space<vmem>> -> memref<1x256xf32, #tpu.memory_space<vmem>>
    %263 = tpu.memref_slice %arg9[%c1_i32_213, %c1_i32_214] : memref<2x8x!tpu.dma_semaphore, #tpu.memory_space<semaphore_mem>> -> memref<1x1x!tpu.dma_semaphore, #tpu.memory_space<semaphore_mem>>
    %264 = tpu.memref_squeeze %263 : memref<1x1x!tpu.dma_semaphore, #tpu.memory_space<semaphore_mem>> -> memref<!tpu.dma_semaphore, #tpu.memory_space<semaphore_mem>>
    tpu.wait_dma2 semaphore(%264 : memref<!tpu.dma_semaphore, #tpu.memory_space<semaphore_mem>>) src(%260 : memref<1x256xf32, #tpu.memory_space<any>>) dst(%262 : memref<1x256xf32, #tpu.memory_space<vmem>>)
    %c1_i32_218 = arith.constant 1 : i32
    %265 = arith.addi %0, %c1_i32_218 : i32
    %c8_i32_219 = arith.constant 8 : i32
    %266 = arith.muli %265, %c8_i32_219 : i32
    %267 = arith.index_cast %arg1 : i32 to index
    %c2_220 = arith.constant 2 : index
    %268 = memref.load %arg2[%267, %c2_220] : memref<2x8xi32, #tpu.memory_space<smem>>
    %269 = arith.addi %266, %268 : i32
    %c1_i32_221 = arith.constant 1 : i32
    %c1_i32_222 = arith.constant 1 : i32
    %c2_i32_223 = arith.constant 2 : i32
    %c0_i32_224 = arith.constant 0 : i32
    %270 = tpu.memref_slice %arg4[%269, %c0_i32_224] : memref<32x256xf32, #tpu.memory_space<any>> -> memref<1x256xf32, #tpu.memory_space<any>>
    %c2_i32_225 = arith.constant 2 : i32
    %c0_i32_226 = arith.constant 0 : i32
    %271 = tpu.memref_slice %arg7[%c1_i32_221, %c2_i32_225, %c0_i32_226] : memref<2x8x256xf32, #tpu.memory_space<vmem>> -> memref<1x1x256xf32, #tpu.memory_space<vmem>>
    %272 = tpu.memref_squeeze %271 : memref<1x1x256xf32, #tpu.memory_space<vmem>> -> memref<1x256xf32, #tpu.memory_space<vmem>>
    %273 = tpu.memref_slice %arg9[%c1_i32_222, %c2_i32_223] : memref<2x8x!tpu.dma_semaphore, #tpu.memory_space<semaphore_mem>> -> memref<1x1x!tpu.dma_semaphore, #tpu.memory_space<semaphore_mem>>
    %274 = tpu.memref_squeeze %273 : memref<1x1x!tpu.dma_semaphore, #tpu.memory_space<semaphore_mem>> -> memref<!tpu.dma_semaphore, #tpu.memory_space<semaphore_mem>>
    tpu.wait_dma2 semaphore(%274 : memref<!tpu.dma_semaphore, #tpu.memory_space<semaphore_mem>>) src(%270 : memref<1x256xf32, #tpu.memory_space<any>>) dst(%272 : memref<1x256xf32, #tpu.memory_space<vmem>>)
    %c1_i32_227 = arith.constant 1 : i32
    %275 = arith.addi %0, %c1_i32_227 : i32
    %c8_i32_228 = arith.constant 8 : i32
    %276 = arith.muli %275, %c8_i32_228 : i32
    %277 = arith.index_cast %arg1 : i32 to index
    %c3_229 = arith.constant 3 : index
    %278 = memref.load %arg2[%277, %c3_229] : memref<2x8xi32, #tpu.memory_space<smem>>
    %279 = arith.addi %276, %278 : i32
    %c1_i32_230 = arith.constant 1 : i32
    %c1_i32_231 = arith.constant 1 : i32
    %c3_i32_232 = arith.constant 3 : i32
    %c0_i32_233 = arith.constant 0 : i32
    %280 = tpu.memref_slice %arg4[%279, %c0_i32_233] : memref<32x256xf32, #tpu.memory_space<any>> -> memref<1x256xf32, #tpu.memory_space<any>>
    %c3_i32_234 = arith.constant 3 : i32
    %c0_i32_235 = arith.constant 0 : i32
    %281 = tpu.memref_slice %arg7[%c1_i32_230, %c3_i32_234, %c0_i32_235] : memref<2x8x256xf32, #tpu.memory_space<vmem>> -> memref<1x1x256xf32, #tpu.memory_space<vmem>>
    %282 = tpu.memref_squeeze %281 : memref<1x1x256xf32, #tpu.memory_space<vmem>> -> memref<1x256xf32, #tpu.memory_space<vmem>>
    %283 = tpu.memref_slice %arg9[%c1_i32_231, %c3_i32_232] : memref<2x8x!tpu.dma_semaphore, #tpu.memory_space<semaphore_mem>> -> memref<1x1x!tpu.dma_semaphore, #tpu.memory_space<semaphore_mem>>
    %284 = tpu.memref_squeeze %283 : memref<1x1x!tpu.dma_semaphore, #tpu.memory_space<semaphore_mem>> -> memref<!tpu.dma_semaphore, #tpu.memory_space<semaphore_mem>>
    tpu.wait_dma2 semaphore(%284 : memref<!tpu.dma_semaphore, #tpu.memory_space<semaphore_mem>>) src(%280 : memref<1x256xf32, #tpu.memory_space<any>>) dst(%282 : memref<1x256xf32, #tpu.memory_space<vmem>>)
    %c1_i32_236 = arith.constant 1 : i32
    %285 = arith.addi %0, %c1_i32_236 : i32
    %c8_i32_237 = arith.constant 8 : i32
    %286 = arith.muli %285, %c8_i32_237 : i32
    %287 = arith.index_cast %arg1 : i32 to index
    %c4_238 = arith.constant 4 : index
    %288 = memref.load %arg2[%287, %c4_238] : memref<2x8xi32, #tpu.memory_space<smem>>
    %289 = arith.addi %286, %288 : i32
    %c1_i32_239 = arith.constant 1 : i32
    %c1_i32_240 = arith.constant 1 : i32
    %c4_i32_241 = arith.constant 4 : i32
    %c0_i32_242 = arith.constant 0 : i32
    %290 = tpu.memref_slice %arg4[%289, %c0_i32_242] : memref<32x256xf32, #tpu.memory_space<any>> -> memref<1x256xf32, #tpu.memory_space<any>>
    %c4_i32_243 = arith.constant 4 : i32
    %c0_i32_244 = arith.constant 0 : i32
    %291 = tpu.memref_slice %arg7[%c1_i32_239, %c4_i32_243, %c0_i32_244] : memref<2x8x256xf32, #tpu.memory_space<vmem>> -> memref<1x1x256xf32, #tpu.memory_space<vmem>>
    %292 = tpu.memref_squeeze %291 : memref<1x1x256xf32, #tpu.memory_space<vmem>> -> memref<1x256xf32, #tpu.memory_space<vmem>>
    %293 = tpu.memref_slice %arg9[%c1_i32_240, %c4_i32_241] : memref<2x8x!tpu.dma_semaphore, #tpu.memory_space<semaphore_mem>> -> memref<1x1x!tpu.dma_semaphore, #tpu.memory_space<semaphore_mem>>
    %294 = tpu.memref_squeeze %293 : memref<1x1x!tpu.dma_semaphore, #tpu.memory_space<semaphore_mem>> -> memref<!tpu.dma_semaphore, #tpu.memory_space<semaphore_mem>>
    tpu.wait_dma2 semaphore(%294 : memref<!tpu.dma_semaphore, #tpu.memory_space<semaphore_mem>>) src(%290 : memref<1x256xf32, #tpu.memory_space<any>>) dst(%292 : memref<1x256xf32, #tpu.memory_space<vmem>>)
    %c1_i32_245 = arith.constant 1 : i32
    %295 = arith.addi %0, %c1_i32_245 : i32
    %c8_i32_246 = arith.constant 8 : i32
    %296 = arith.muli %295, %c8_i32_246 : i32
    %297 = arith.index_cast %arg1 : i32 to index
    %c5_247 = arith.constant 5 : index
    %298 = memref.load %arg2[%297, %c5_247] : memref<2x8xi32, #tpu.memory_space<smem>>
    %299 = arith.addi %296, %298 : i32
    %c1_i32_248 = arith.constant 1 : i32
    %c1_i32_249 = arith.constant 1 : i32
    %c5_i32_250 = arith.constant 5 : i32
    %c0_i32_251 = arith.constant 0 : i32
    %300 = tpu.memref_slice %arg4[%299, %c0_i32_251] : memref<32x256xf32, #tpu.memory_space<any>> -> memref<1x256xf32, #tpu.memory_space<any>>
    %c5_i32_252 = arith.constant 5 : i32
    %c0_i32_253 = arith.constant 0 : i32
    %301 = tpu.memref_slice %arg7[%c1_i32_248, %c5_i32_252, %c0_i32_253] : memref<2x8x256xf32, #tpu.memory_space<vmem>> -> memref<1x1x256xf32, #tpu.memory_space<vmem>>
    %302 = tpu.memref_squeeze %301 : memref<1x1x256xf32, #tpu.memory_space<vmem>> -> memref<1x256xf32, #tpu.memory_space<vmem>>
    %303 = tpu.memref_slice %arg9[%c1_i32_249, %c5_i32_250] : memref<2x8x!tpu.dma_semaphore, #tpu.memory_space<semaphore_mem>> -> memref<1x1x!tpu.dma_semaphore, #tpu.memory_space<semaphore_mem>>
    %304 = tpu.memref_squeeze %303 : memref<1x1x!tpu.dma_semaphore, #tpu.memory_space<semaphore_mem>> -> memref<!tpu.dma_semaphore, #tpu.memory_space<semaphore_mem>>
    tpu.wait_dma2 semaphore(%304 : memref<!tpu.dma_semaphore, #tpu.memory_space<semaphore_mem>>) src(%300 : memref<1x256xf32, #tpu.memory_space<any>>) dst(%302 : memref<1x256xf32, #tpu.memory_space<vmem>>)
    %c1_i32_254 = arith.constant 1 : i32
    %305 = arith.addi %0, %c1_i32_254 : i32
    %c8_i32_255 = arith.constant 8 : i32
    %306 = arith.muli %305, %c8_i32_255 : i32
    %307 = arith.index_cast %arg1 : i32 to index
    %c6_256 = arith.constant 6 : index
    %308 = memref.load %arg2[%307, %c6_256] : memref<2x8xi32, #tpu.memory_space<smem>>
    %309 = arith.addi %306, %308 : i32
    %c1_i32_257 = arith.constant 1 : i32
    %c1_i32_258 = arith.constant 1 : i32
    %c6_i32_259 = arith.constant 6 : i32
    %c0_i32_260 = arith.constant 0 : i32
    %310 = tpu.memref_slice %arg4[%309, %c0_i32_260] : memref<32x256xf32, #tpu.memory_space<any>> -> memref<1x256xf32, #tpu.memory_space<any>>
    %c6_i32_261 = arith.constant 6 : i32
    %c0_i32_262 = arith.constant 0 : i32
    %311 = tpu.memref_slice %arg7[%c1_i32_257, %c6_i32_261, %c0_i32_262] : memref<2x8x256xf32, #tpu.memory_space<vmem>> -> memref<1x1x256xf32, #tpu.memory_space<vmem>>
    %312 = tpu.memref_squeeze %311 : memref<1x1x256xf32, #tpu.memory_space<vmem>> -> memref<1x256xf32, #tpu.memory_space<vmem>>
    %313 = tpu.memref_slice %arg9[%c1_i32_258, %c6_i32_259] : memref<2x8x!tpu.dma_semaphore, #tpu.memory_space<semaphore_mem>> -> memref<1x1x!tpu.dma_semaphore, #tpu.memory_space<semaphore_mem>>
    %314 = tpu.memref_squeeze %313 : memref<1x1x!tpu.dma_semaphore, #tpu.memory_space<semaphore_mem>> -> memref<!tpu.dma_semaphore, #tpu.memory_space<semaphore_mem>>
    tpu.wait_dma2 semaphore(%314 : memref<!tpu.dma_semaphore, #tpu.memory_space<semaphore_mem>>) src(%310 : memref<1x256xf32, #tpu.memory_space<any>>) dst(%312 : memref<1x256xf32, #tpu.memory_space<vmem>>)
    %c1_i32_263 = arith.constant 1 : i32
    %315 = arith.addi %0, %c1_i32_263 : i32
    %c8_i32_264 = arith.constant 8 : i32
    %316 = arith.muli %315, %c8_i32_264 : i32
    %317 = arith.index_cast %arg1 : i32 to index
    %c7_265 = arith.constant 7 : index
    %318 = memref.load %arg2[%317, %c7_265] : memref<2x8xi32, #tpu.memory_space<smem>>
    %319 = arith.addi %316, %318 : i32
    %c1_i32_266 = arith.constant 1 : i32
    %c1_i32_267 = arith.constant 1 : i32
    %c7_i32_268 = arith.constant 7 : i32
    %c0_i32_269 = arith.constant 0 : i32
    %320 = tpu.memref_slice %arg4[%319, %c0_i32_269] : memref<32x256xf32, #tpu.memory_space<any>> -> memref<1x256xf32, #tpu.memory_space<any>>
    %c7_i32_270 = arith.constant 7 : i32
    %c0_i32_271 = arith.constant 0 : i32
    %321 = tpu.memref_slice %arg7[%c1_i32_266, %c7_i32_270, %c0_i32_271] : memref<2x8x256xf32, #tpu.memory_space<vmem>> -> memref<1x1x256xf32, #tpu.memory_space<vmem>>
    %322 = tpu.memref_squeeze %321 : memref<1x1x256xf32, #tpu.memory_space<vmem>> -> memref<1x256xf32, #tpu.memory_space<vmem>>
    %323 = tpu.memref_slice %arg9[%c1_i32_267, %c7_i32_268] : memref<2x8x!tpu.dma_semaphore, #tpu.memory_space<semaphore_mem>> -> memref<1x1x!tpu.dma_semaphore, #tpu.memory_space<semaphore_mem>>
    %324 = tpu.memref_squeeze %323 : memref<1x1x!tpu.dma_semaphore, #tpu.memory_space<semaphore_mem>> -> memref<!tpu.dma_semaphore, #tpu.memory_space<semaphore_mem>>
    tpu.wait_dma2 semaphore(%324 : memref<!tpu.dma_semaphore, #tpu.memory_space<semaphore_mem>>) src(%320 : memref<1x256xf32, #tpu.memory_space<any>>) dst(%322 : memref<1x256xf32, #tpu.memory_space<vmem>>)
    %c0_272 = arith.constant 0 : index
    %c0_273 = arith.constant 0 : index
    %c0_274 = arith.constant 0 : index
    %325 = vector.load %arg7[%c0_272, %c0_273, %c0_274] : memref<2x8x256xf32, #tpu.memory_space<vmem>>, vector<2x8x256xf32>
    "tpu.trace_start"() <{level = 10 : i32, message = "bcn,bdn->bcd"}> : () -> ()
    %cst = arith.constant dense<0.000000e+00> : vector<2x8x8xf32>
    %326 = tpu.matmul %325, %325, %cst {dimension_numbers = #tpu.dot_dimension_numbers<[2], [2], [1], [1], [0, 0, 0, 1, 1, 1], [0], [0]>} : vector<2x8x256xf32>, vector<2x8x256xf32>, vector<2x8x8xf32> -> vector<2x8x8xf32>
    "tpu.trace_stop"() : () -> ()
    %327 = tpu.iota {dimensions = array<i32: 1>} : vector<8x8xi32>
    %328 = vector.broadcast %2 : i32 to vector<8x8xi32>
    %329 = arith.cmpi slt, %327, %328 : vector<8x8xi32>
    %330 = vector.shape_cast %329 : vector<8x8xi1> to vector<1x8x8xi1>
    %cst_275 = arith.constant 1.000000e+30 : f32
    %331 = vector.shape_cast %330 : vector<1x8x8xi1> to vector<1x8x8xi1>
    %332 = vector.broadcast %331 : vector<1x8x8xi1> to vector<2x8x8xi1>
    %333 = vector.broadcast %cst_275 : f32 to vector<2x8x8xf32>
    %334 = arith.select %332, %326, %333 : vector<2x8x8xi1>, vector<2x8x8xf32>
    %cst_276 = arith.constant dense<0x7F800000> : vector<2x8xf32>
    %335 = vector.multi_reduction <minimumf>, %334, %cst_276 [2] : vector<2x8x8xf32> to vector<2x8xf32>
    %336 = vector.shape_cast %335 : vector<2x8xf32> to vector<2x8x1xf32>
    %337 = vector.broadcast %336 : vector<2x8x1xf32> to vector<2x8x8xf32>
    %338 = arith.subf %337, %334 : vector<2x8x8xf32>
    %339 = math.exp %338 : vector<2x8x8xf32>
    %cst_277 = arith.constant dense<0.000000e+00> : vector<2x8xf32>
    %340 = vector.multi_reduction <add>, %339, %cst_277 [2] : vector<2x8x8xf32> to vector<2x8xf32>
    %341 = vector.shape_cast %340 : vector<2x8xf32> to vector<2x8x1xf32>
    %342 = tpu.reciprocal %341 {approx = true} : vector<2x8x1xf32> -> vector<2x8x1xf32>
    %343 = vector.broadcast %342 : vector<2x8x1xf32> to vector<2x8x8xf32>
    %344 = arith.mulf %339, %343 : vector<2x8x8xf32>
    "tpu.trace_start"() <{level = 10 : i32, message = "bcd,bdn->bcn"}> : () -> ()
    %cst_278 = arith.constant dense<0.000000e+00> : vector<2x8x256xf32>
    %345 = tpu.matmul %344, %325, %cst_278 {dimension_numbers = #tpu.dot_dimension_numbers<[2], [1], [1], [2], [0, 0, 0, 1, 1, 2], [0], [0]>} : vector<2x8x8xf32>, vector<2x8x256xf32>, vector<2x8x256xf32> -> vector<2x8x256xf32>
    "tpu.trace_stop"() : () -> ()
    %346 = vector.broadcast %4 : f32 to vector<2x8x256xf32>
    %347 = arith.mulf %346, %345 : vector<2x8x256xf32>
    %348 = arith.addf %347, %325 : vector<2x8x256xf32>
    %c0_279 = arith.constant 0 : index
    %c0_280 = arith.constant 0 : index
    %c0_281 = arith.constant 0 : index
    %349 = vector.load %arg8[%c0_279, %c0_280, %c0_281] : memref<2x8x256xf32, #tpu.memory_space<vmem>>, vector<2x8x256xf32>
    tpu.vector_store %arg8[%c0_279, %c0_280, %c0_281], %348 {strides = array<i32>} : memref<2x8x256xf32, #tpu.memory_space<vmem>>, vector<2x8x256xf32>,
    %c0_i32_282 = arith.constant 0 : i32
    %350 = arith.cmpi sgt, %2, %c0_i32_282 : i32
    %351 = arith.extui %350 : i1 to i32
    %c0_i32_283 = arith.constant 0 : i32
    %352 = arith.cmpi ne, %351, %c0_i32_283 : i32
    scf.if %352 {
      %c0_i32_346 = arith.constant 0 : i32
      %446 = arith.addi %0, %c0_i32_346 : i32
      %c8_i32_347 = arith.constant 8 : i32
      %447 = arith.muli %446, %c8_i32_347 : i32
      %448 = arith.index_cast %arg1 : i32 to index
      %c0_348 = arith.constant 0 : index
      %449 = memref.load %arg2[%448, %c0_348] : memref<2x8xi32, #tpu.memory_space<smem>>
      %450 = arith.addi %447, %449 : i32
      %c0_i32_349 = arith.constant 0 : i32
      %c0_i32_350 = arith.constant 0 : i32
      %c0_i32_351 = arith.constant 0 : i32
      %c0_i32_352 = arith.constant 0 : i32
      %c0_i32_353 = arith.constant 0 : i32
      %451 = tpu.memref_slice %arg8[%c0_i32_349, %c0_i32_352, %c0_i32_353] : memref<2x8x256xf32, #tpu.memory_space<vmem>> -> memref<1x1x256xf32, #tpu.memory_space<vmem>>
      %452 = tpu.memref_squeeze %451 : memref<1x1x256xf32, #tpu.memory_space<vmem>> -> memref<1x256xf32, #tpu.memory_space<vmem>>
      %c0_i32_354 = arith.constant 0 : i32
      %453 = tpu.memref_slice %arg6[%450, %c0_i32_354] : memref<32x256xf32, #tpu.memory_space<any>> -> memref<1x256xf32, #tpu.memory_space<any>>
      %454 = tpu.memref_slice %arg10[%c0_i32_350, %c0_i32_351] : memref<2x8x!tpu.dma_semaphore, #tpu.memory_space<semaphore_mem>> -> memref<1x1x!tpu.dma_semaphore, #tpu.memory_space<semaphore_mem>>
      %455 = tpu.memref_squeeze %454 : memref<1x1x!tpu.dma_semaphore, #tpu.memory_space<semaphore_mem>> -> memref<!tpu.dma_semaphore, #tpu.memory_space<semaphore_mem>>
      tpu.enqueue_dma source(%452 : memref<1x256xf32, #tpu.memory_space<vmem>>) target(%453 : memref<1x256xf32, #tpu.memory_space<any>>) target_semaphore(%455 : memref<!tpu.dma_semaphore, #tpu.memory_space<semaphore_mem>>)
    } else {
    }
    %c1_i32_284 = arith.constant 1 : i32
    %353 = arith.cmpi sgt, %2, %c1_i32_284 : i32
    %354 = arith.extui %353 : i1 to i32
    %c0_i32_285 = arith.constant 0 : i32
    %355 = arith.cmpi ne, %354, %c0_i32_285 : i32
    scf.if %355 {
      %c0_i32_346 = arith.constant 0 : i32
      %446 = arith.addi %0, %c0_i32_346 : i32
      %c8_i32_347 = arith.constant 8 : i32
      %447 = arith.muli %446, %c8_i32_347 : i32
      %448 = arith.index_cast %arg1 : i32 to index
      %c1_348 = arith.constant 1 : index
      %449 = memref.load %arg2[%448, %c1_348] : memref<2x8xi32, #tpu.memory_space<smem>>
      %450 = arith.addi %447, %449 : i32
      %c0_i32_349 = arith.constant 0 : i32
      %c0_i32_350 = arith.constant 0 : i32
      %c1_i32_351 = arith.constant 1 : i32
      %c1_i32_352 = arith.constant 1 : i32
      %c0_i32_353 = arith.constant 0 : i32
      %451 = tpu.memref_slice %arg8[%c0_i32_349, %c1_i32_352, %c0_i32_353] : memref<2x8x256xf32, #tpu.memory_space<vmem>> -> memref<1x1x256xf32, #tpu.memory_space<vmem>>
      %452 = tpu.memref_squeeze %451 : memref<1x1x256xf32, #tpu.memory_space<vmem>> -> memref<1x256xf32, #tpu.memory_space<vmem>>
      %c0_i32_354 = arith.constant 0 : i32
      %453 = tpu.memref_slice %arg6[%450, %c0_i32_354] : memref<32x256xf32, #tpu.memory_space<any>> -> memref<1x256xf32, #tpu.memory_space<any>>
      %454 = tpu.memref_slice %arg10[%c0_i32_350, %c1_i32_351] : memref<2x8x!tpu.dma_semaphore, #tpu.memory_space<semaphore_mem>> -> memref<1x1x!tpu.dma_semaphore, #tpu.memory_space<semaphore_mem>>
      %455 = tpu.memref_squeeze %454 : memref<1x1x!tpu.dma_semaphore, #tpu.memory_space<semaphore_mem>> -> memref<!tpu.dma_semaphore, #tpu.memory_space<semaphore_mem>>
      tpu.enqueue_dma source(%452 : memref<1x256xf32, #tpu.memory_space<vmem>>) target(%453 : memref<1x256xf32, #tpu.memory_space<any>>) target_semaphore(%455 : memref<!tpu.dma_semaphore, #tpu.memory_space<semaphore_mem>>)
    } else {
    }
    %c2_i32_286 = arith.constant 2 : i32
    %356 = arith.cmpi sgt, %2, %c2_i32_286 : i32
    %357 = arith.extui %356 : i1 to i32
    %c0_i32_287 = arith.constant 0 : i32
    %358 = arith.cmpi ne, %357, %c0_i32_287 : i32
    scf.if %358 {
      %c0_i32_346 = arith.constant 0 : i32
      %446 = arith.addi %0, %c0_i32_346 : i32
      %c8_i32_347 = arith.constant 8 : i32
      %447 = arith.muli %446, %c8_i32_347 : i32
      %448 = arith.index_cast %arg1 : i32 to index
      %c2_348 = arith.constant 2 : index
      %449 = memref.load %arg2[%448, %c2_348] : memref<2x8xi32, #tpu.memory_space<smem>>
      %450 = arith.addi %447, %449 : i32
      %c0_i32_349 = arith.constant 0 : i32
      %c0_i32_350 = arith.constant 0 : i32
      %c2_i32_351 = arith.constant 2 : i32
      %c2_i32_352 = arith.constant 2 : i32
      %c0_i32_353 = arith.constant 0 : i32
      %451 = tpu.memref_slice %arg8[%c0_i32_349, %c2_i32_352, %c0_i32_353] : memref<2x8x256xf32, #tpu.memory_space<vmem>> -> memref<1x1x256xf32, #tpu.memory_space<vmem>>
      %452 = tpu.memref_squeeze %451 : memref<1x1x256xf32, #tpu.memory_space<vmem>> -> memref<1x256xf32, #tpu.memory_space<vmem>>
      %c0_i32_354 = arith.constant 0 : i32
      %453 = tpu.memref_slice %arg6[%450, %c0_i32_354] : memref<32x256xf32, #tpu.memory_space<any>> -> memref<1x256xf32, #tpu.memory_space<any>>
      %454 = tpu.memref_slice %arg10[%c0_i32_350, %c2_i32_351] : memref<2x8x!tpu.dma_semaphore, #tpu.memory_space<semaphore_mem>> -> memref<1x1x!tpu.dma_semaphore, #tpu.memory_space<semaphore_mem>>
      %455 = tpu.memref_squeeze %454 : memref<1x1x!tpu.dma_semaphore, #tpu.memory_space<semaphore_mem>> -> memref<!tpu.dma_semaphore, #tpu.memory_space<semaphore_mem>>
      tpu.enqueue_dma source(%452 : memref<1x256xf32, #tpu.memory_space<vmem>>) target(%453 : memref<1x256xf32, #tpu.memory_space<any>>) target_semaphore(%455 : memref<!tpu.dma_semaphore, #tpu.memory_space<semaphore_mem>>)
    } else {
    }
    %c3_i32_288 = arith.constant 3 : i32
    %359 = arith.cmpi sgt, %2, %c3_i32_288 : i32
    %360 = arith.extui %359 : i1 to i32
    %c0_i32_289 = arith.constant 0 : i32
    %361 = arith.cmpi ne, %360, %c0_i32_289 : i32
    scf.if %361 {
      %c0_i32_346 = arith.constant 0 : i32
      %446 = arith.addi %0, %c0_i32_346 : i32
      %c8_i32_347 = arith.constant 8 : i32
      %447 = arith.muli %446, %c8_i32_347 : i32
      %448 = arith.index_cast %arg1 : i32 to index
      %c3_348 = arith.constant 3 : index
      %449 = memref.load %arg2[%448, %c3_348] : memref<2x8xi32, #tpu.memory_space<smem>>
      %450 = arith.addi %447, %449 : i32
      %c0_i32_349 = arith.constant 0 : i32
      %c0_i32_350 = arith.constant 0 : i32
      %c3_i32_351 = arith.constant 3 : i32
      %c3_i32_352 = arith.constant 3 : i32
      %c0_i32_353 = arith.constant 0 : i32
      %451 = tpu.memref_slice %arg8[%c0_i32_349, %c3_i32_352, %c0_i32_353] : memref<2x8x256xf32, #tpu.memory_space<vmem>> -> memref<1x1x256xf32, #tpu.memory_space<vmem>>
      %452 = tpu.memref_squeeze %451 : memref<1x1x256xf32, #tpu.memory_space<vmem>> -> memref<1x256xf32, #tpu.memory_space<vmem>>
      %c0_i32_354 = arith.constant 0 : i32
      %453 = tpu.memref_slice %arg6[%450, %c0_i32_354] : memref<32x256xf32, #tpu.memory_space<any>> -> memref<1x256xf32, #tpu.memory_space<any>>
      %454 = tpu.memref_slice %arg10[%c0_i32_350, %c3_i32_351] : memref<2x8x!tpu.dma_semaphore, #tpu.memory_space<semaphore_mem>> -> memref<1x1x!tpu.dma_semaphore, #tpu.memory_space<semaphore_mem>>
      %455 = tpu.memref_squeeze %454 : memref<1x1x!tpu.dma_semaphore, #tpu.memory_space<semaphore_mem>> -> memref<!tpu.dma_semaphore, #tpu.memory_space<semaphore_mem>>
      tpu.enqueue_dma source(%452 : memref<1x256xf32, #tpu.memory_space<vmem>>) target(%453 : memref<1x256xf32, #tpu.memory_space<any>>) target_semaphore(%455 : memref<!tpu.dma_semaphore, #tpu.memory_space<semaphore_mem>>)
    } else {
    }
    %c4_i32_290 = arith.constant 4 : i32
    %362 = arith.cmpi sgt, %2, %c4_i32_290 : i32
    %363 = arith.extui %362 : i1 to i32
    %c0_i32_291 = arith.constant 0 : i32
    %364 = arith.cmpi ne, %363, %c0_i32_291 : i32
    scf.if %364 {
      %c0_i32_346 = arith.constant 0 : i32
      %446 = arith.addi %0, %c0_i32_346 : i32
      %c8_i32_347 = arith.constant 8 : i32
      %447 = arith.muli %446, %c8_i32_347 : i32
      %448 = arith.index_cast %arg1 : i32 to index
      %c4_348 = arith.constant 4 : index
      %449 = memref.load %arg2[%448, %c4_348] : memref<2x8xi32, #tpu.memory_space<smem>>
      %450 = arith.addi %447, %449 : i32
      %c0_i32_349 = arith.constant 0 : i32
      %c0_i32_350 = arith.constant 0 : i32
      %c4_i32_351 = arith.constant 4 : i32
      %c4_i32_352 = arith.constant 4 : i32
      %c0_i32_353 = arith.constant 0 : i32
      %451 = tpu.memref_slice %arg8[%c0_i32_349, %c4_i32_352, %c0_i32_353] : memref<2x8x256xf32, #tpu.memory_space<vmem>> -> memref<1x1x256xf32, #tpu.memory_space<vmem>>
      %452 = tpu.memref_squeeze %451 : memref<1x1x256xf32, #tpu.memory_space<vmem>> -> memref<1x256xf32, #tpu.memory_space<vmem>>
      %c0_i32_354 = arith.constant 0 : i32
      %453 = tpu.memref_slice %arg6[%450, %c0_i32_354] : memref<32x256xf32, #tpu.memory_space<any>> -> memref<1x256xf32, #tpu.memory_space<any>>
      %454 = tpu.memref_slice %arg10[%c0_i32_350, %c4_i32_351] : memref<2x8x!tpu.dma_semaphore, #tpu.memory_space<semaphore_mem>> -> memref<1x1x!tpu.dma_semaphore, #tpu.memory_space<semaphore_mem>>
      %455 = tpu.memref_squeeze %454 : memref<1x1x!tpu.dma_semaphore, #tpu.memory_space<semaphore_mem>> -> memref<!tpu.dma_semaphore, #tpu.memory_space<semaphore_mem>>
      tpu.enqueue_dma source(%452 : memref<1x256xf32, #tpu.memory_space<vmem>>) target(%453 : memref<1x256xf32, #tpu.memory_space<any>>) target_semaphore(%455 : memref<!tpu.dma_semaphore, #tpu.memory_space<semaphore_mem>>)
    } else {
    }
    %c5_i32_292 = arith.constant 5 : i32
    %365 = arith.cmpi sgt, %2, %c5_i32_292 : i32
    %366 = arith.extui %365 : i1 to i32
    %c0_i32_293 = arith.constant 0 : i32
    %367 = arith.cmpi ne, %366, %c0_i32_293 : i32
    scf.if %367 {
      %c0_i32_346 = arith.constant 0 : i32
      %446 = arith.addi %0, %c0_i32_346 : i32
      %c8_i32_347 = arith.constant 8 : i32
      %447 = arith.muli %446, %c8_i32_347 : i32
      %448 = arith.index_cast %arg1 : i32 to index
      %c5_348 = arith.constant 5 : index
      %449 = memref.load %arg2[%448, %c5_348] : memref<2x8xi32, #tpu.memory_space<smem>>
      %450 = arith.addi %447, %449 : i32
      %c0_i32_349 = arith.constant 0 : i32
      %c0_i32_350 = arith.constant 0 : i32
      %c5_i32_351 = arith.constant 5 : i32
      %c5_i32_352 = arith.constant 5 : i32
      %c0_i32_353 = arith.constant 0 : i32
      %451 = tpu.memref_slice %arg8[%c0_i32_349, %c5_i32_352, %c0_i32_353] : memref<2x8x256xf32, #tpu.memory_space<vmem>> -> memref<1x1x256xf32, #tpu.memory_space<vmem>>
      %452 = tpu.memref_squeeze %451 : memref<1x1x256xf32, #tpu.memory_space<vmem>> -> memref<1x256xf32, #tpu.memory_space<vmem>>
      %c0_i32_354 = arith.constant 0 : i32
      %453 = tpu.memref_slice %arg6[%450, %c0_i32_354] : memref<32x256xf32, #tpu.memory_space<any>> -> memref<1x256xf32, #tpu.memory_space<any>>
      %454 = tpu.memref_slice %arg10[%c0_i32_350, %c5_i32_351] : memref<2x8x!tpu.dma_semaphore, #tpu.memory_space<semaphore_mem>> -> memref<1x1x!tpu.dma_semaphore, #tpu.memory_space<semaphore_mem>>
      %455 = tpu.memref_squeeze %454 : memref<1x1x!tpu.dma_semaphore, #tpu.memory_space<semaphore_mem>> -> memref<!tpu.dma_semaphore, #tpu.memory_space<semaphore_mem>>
      tpu.enqueue_dma source(%452 : memref<1x256xf32, #tpu.memory_space<vmem>>) target(%453 : memref<1x256xf32, #tpu.memory_space<any>>) target_semaphore(%455 : memref<!tpu.dma_semaphore, #tpu.memory_space<semaphore_mem>>)
    } else {
    }
    %c6_i32_294 = arith.constant 6 : i32
    %368 = arith.cmpi sgt, %2, %c6_i32_294 : i32
    %369 = arith.extui %368 : i1 to i32
    %c0_i32_295 = arith.constant 0 : i32
    %370 = arith.cmpi ne, %369, %c0_i32_295 : i32
    scf.if %370 {
      %c0_i32_346 = arith.constant 0 : i32
      %446 = arith.addi %0, %c0_i32_346 : i32
      %c8_i32_347 = arith.constant 8 : i32
      %447 = arith.muli %446, %c8_i32_347 : i32
      %448 = arith.index_cast %arg1 : i32 to index
      %c6_348 = arith.constant 6 : index
      %449 = memref.load %arg2[%448, %c6_348] : memref<2x8xi32, #tpu.memory_space<smem>>
      %450 = arith.addi %447, %449 : i32
      %c0_i32_349 = arith.constant 0 : i32
      %c0_i32_350 = arith.constant 0 : i32
      %c6_i32_351 = arith.constant 6 : i32
      %c6_i32_352 = arith.constant 6 : i32
      %c0_i32_353 = arith.constant 0 : i32
      %451 = tpu.memref_slice %arg8[%c0_i32_349, %c6_i32_352, %c0_i32_353] : memref<2x8x256xf32, #tpu.memory_space<vmem>> -> memref<1x1x256xf32, #tpu.memory_space<vmem>>
      %452 = tpu.memref_squeeze %451 : memref<1x1x256xf32, #tpu.memory_space<vmem>> -> memref<1x256xf32, #tpu.memory_space<vmem>>
      %c0_i32_354 = arith.constant 0 : i32
      %453 = tpu.memref_slice %arg6[%450, %c0_i32_354] : memref<32x256xf32, #tpu.memory_space<any>> -> memref<1x256xf32, #tpu.memory_space<any>>
      %454 = tpu.memref_slice %arg10[%c0_i32_350, %c6_i32_351] : memref<2x8x!tpu.dma_semaphore, #tpu.memory_space<semaphore_mem>> -> memref<1x1x!tpu.dma_semaphore, #tpu.memory_space<semaphore_mem>>
      %455 = tpu.memref_squeeze %454 : memref<1x1x!tpu.dma_semaphore, #tpu.memory_space<semaphore_mem>> -> memref<!tpu.dma_semaphore, #tpu.memory_space<semaphore_mem>>
      tpu.enqueue_dma source(%452 : memref<1x256xf32, #tpu.memory_space<vmem>>) target(%453 : memref<1x256xf32, #tpu.memory_space<any>>) target_semaphore(%455 : memref<!tpu.dma_semaphore, #tpu.memory_space<semaphore_mem>>)
    } else {
    }
    %c7_i32_296 = arith.constant 7 : i32
    %371 = arith.cmpi sgt, %2, %c7_i32_296 : i32
    %372 = arith.extui %371 : i1 to i32
    %c0_i32_297 = arith.constant 0 : i32
    %373 = arith.cmpi ne, %372, %c0_i32_297 : i32
    scf.if %373 {
      %c0_i32_346 = arith.constant 0 : i32
      %446 = arith.addi %0, %c0_i32_346 : i32
      %c8_i32_347 = arith.constant 8 : i32
      %447 = arith.muli %446, %c8_i32_347 : i32
      %448 = arith.index_cast %arg1 : i32 to index
      %c7_348 = arith.constant 7 : index
      %449 = memref.load %arg2[%448, %c7_348] : memref<2x8xi32, #tpu.memory_space<smem>>
      %450 = arith.addi %447, %449 : i32
      %c0_i32_349 = arith.constant 0 : i32
      %c0_i32_350 = arith.constant 0 : i32
      %c7_i32_351 = arith.constant 7 : i32
      %c7_i32_352 = arith.constant 7 : i32
      %c0_i32_353 = arith.constant 0 : i32
      %451 = tpu.memref_slice %arg8[%c0_i32_349, %c7_i32_352, %c0_i32_353] : memref<2x8x256xf32, #tpu.memory_space<vmem>> -> memref<1x1x256xf32, #tpu.memory_space<vmem>>
      %452 = tpu.memref_squeeze %451 : memref<1x1x256xf32, #tpu.memory_space<vmem>> -> memref<1x256xf32, #tpu.memory_space<vmem>>
      %c0_i32_354 = arith.constant 0 : i32
      %453 = tpu.memref_slice %arg6[%450, %c0_i32_354] : memref<32x256xf32, #tpu.memory_space<any>> -> memref<1x256xf32, #tpu.memory_space<any>>
      %454 = tpu.memref_slice %arg10[%c0_i32_350, %c7_i32_351] : memref<2x8x!tpu.dma_semaphore, #tpu.memory_space<semaphore_mem>> -> memref<1x1x!tpu.dma_semaphore, #tpu.memory_space<semaphore_mem>>
      %455 = tpu.memref_squeeze %454 : memref<1x1x!tpu.dma_semaphore, #tpu.memory_space<semaphore_mem>> -> memref<!tpu.dma_semaphore, #tpu.memory_space<semaphore_mem>>
      tpu.enqueue_dma source(%452 : memref<1x256xf32, #tpu.memory_space<vmem>>) target(%453 : memref<1x256xf32, #tpu.memory_space<any>>) target_semaphore(%455 : memref<!tpu.dma_semaphore, #tpu.memory_space<semaphore_mem>>)
    } else {
    }
    %c0_i32_298 = arith.constant 0 : i32
    %374 = arith.cmpi sgt, %2, %c0_i32_298 : i32
    %375 = arith.extui %374 : i1 to i32
    %c0_i32_299 = arith.constant 0 : i32
    %376 = arith.cmpi ne, %375, %c0_i32_299 : i32
    scf.if %376 {
      %c1_i32_346 = arith.constant 1 : i32
      %446 = arith.addi %0, %c1_i32_346 : i32
      %c8_i32_347 = arith.constant 8 : i32
      %447 = arith.muli %446, %c8_i32_347 : i32
      %448 = arith.index_cast %arg1 : i32 to index
      %c0_348 = arith.constant 0 : index
      %449 = memref.load %arg2[%448, %c0_348] : memref<2x8xi32, #tpu.memory_space<smem>>
      %450 = arith.addi %447, %449 : i32
      %c1_i32_349 = arith.constant 1 : i32
      %c1_i32_350 = arith.constant 1 : i32
      %c0_i32_351 = arith.constant 0 : i32
      %c0_i32_352 = arith.constant 0 : i32
      %c0_i32_353 = arith.constant 0 : i32
      %451 = tpu.memref_slice %arg8[%c1_i32_349, %c0_i32_352, %c0_i32_353] : memref<2x8x256xf32, #tpu.memory_space<vmem>> -> memref<1x1x256xf32, #tpu.memory_space<vmem>>
      %452 = tpu.memref_squeeze %451 : memref<1x1x256xf32, #tpu.memory_space<vmem>> -> memref<1x256xf32, #tpu.memory_space<vmem>>
      %c0_i32_354 = arith.constant 0 : i32
      %453 = tpu.memref_slice %arg6[%450, %c0_i32_354] : memref<32x256xf32, #tpu.memory_space<any>> -> memref<1x256xf32, #tpu.memory_space<any>>
      %454 = tpu.memref_slice %arg10[%c1_i32_350, %c0_i32_351] : memref<2x8x!tpu.dma_semaphore, #tpu.memory_space<semaphore_mem>> -> memref<1x1x!tpu.dma_semaphore, #tpu.memory_space<semaphore_mem>>
      %455 = tpu.memref_squeeze %454 : memref<1x1x!tpu.dma_semaphore, #tpu.memory_space<semaphore_mem>> -> memref<!tpu.dma_semaphore, #tpu.memory_space<semaphore_mem>>
      tpu.enqueue_dma source(%452 : memref<1x256xf32, #tpu.memory_space<vmem>>) target(%453 : memref<1x256xf32, #tpu.memory_space<any>>) target_semaphore(%455 : memref<!tpu.dma_semaphore, #tpu.memory_space<semaphore_mem>>)
    } else {
    }
    %c1_i32_300 = arith.constant 1 : i32
    %377 = arith.cmpi sgt, %2, %c1_i32_300 : i32
    %378 = arith.extui %377 : i1 to i32
    %c0_i32_301 = arith.constant 0 : i32
    %379 = arith.cmpi ne, %378, %c0_i32_301 : i32
    scf.if %379 {
      %c1_i32_346 = arith.constant 1 : i32
      %446 = arith.addi %0, %c1_i32_346 : i32
      %c8_i32_347 = arith.constant 8 : i32
      %447 = arith.muli %446, %c8_i32_347 : i32
      %448 = arith.index_cast %arg1 : i32 to index
      %c1_348 = arith.constant 1 : index
      %449 = memref.load %arg2[%448, %c1_348] : memref<2x8xi32, #tpu.memory_space<smem>>
      %450 = arith.addi %447, %449 : i32
      %c1_i32_349 = arith.constant 1 : i32
      %c1_i32_350 = arith.constant 1 : i32
      %c1_i32_351 = arith.constant 1 : i32
      %c1_i32_352 = arith.constant 1 : i32
      %c0_i32_353 = arith.constant 0 : i32
      %451 = tpu.memref_slice %arg8[%c1_i32_349, %c1_i32_352, %c0_i32_353] : memref<2x8x256xf32, #tpu.memory_space<vmem>> -> memref<1x1x256xf32, #tpu.memory_space<vmem>>
      %452 = tpu.memref_squeeze %451 : memref<1x1x256xf32, #tpu.memory_space<vmem>> -> memref<1x256xf32, #tpu.memory_space<vmem>>
      %c0_i32_354 = arith.constant 0 : i32
      %453 = tpu.memref_slice %arg6[%450, %c0_i32_354] : memref<32x256xf32, #tpu.memory_space<any>> -> memref<1x256xf32, #tpu.memory_space<any>>
      %454 = tpu.memref_slice %arg10[%c1_i32_350, %c1_i32_351] : memref<2x8x!tpu.dma_semaphore, #tpu.memory_space<semaphore_mem>> -> memref<1x1x!tpu.dma_semaphore, #tpu.memory_space<semaphore_mem>>
      %455 = tpu.memref_squeeze %454 : memref<1x1x!tpu.dma_semaphore, #tpu.memory_space<semaphore_mem>> -> memref<!tpu.dma_semaphore, #tpu.memory_space<semaphore_mem>>
      tpu.enqueue_dma source(%452 : memref<1x256xf32, #tpu.memory_space<vmem>>) target(%453 : memref<1x256xf32, #tpu.memory_space<any>>) target_semaphore(%455 : memref<!tpu.dma_semaphore, #tpu.memory_space<semaphore_mem>>)
    } else {
    }
    %c2_i32_302 = arith.constant 2 : i32
    %380 = arith.cmpi sgt, %2, %c2_i32_302 : i32
    %381 = arith.extui %380 : i1 to i32
    %c0_i32_303 = arith.constant 0 : i32
    %382 = arith.cmpi ne, %381, %c0_i32_303 : i32
    scf.if %382 {
      %c1_i32_346 = arith.constant 1 : i32
      %446 = arith.addi %0, %c1_i32_346 : i32
      %c8_i32_347 = arith.constant 8 : i32
      %447 = arith.muli %446, %c8_i32_347 : i32
      %448 = arith.index_cast %arg1 : i32 to index
      %c2_348 = arith.constant 2 : index
      %449 = memref.load %arg2[%448, %c2_348] : memref<2x8xi32, #tpu.memory_space<smem>>
      %450 = arith.addi %447, %449 : i32
      %c1_i32_349 = arith.constant 1 : i32
      %c1_i32_350 = arith.constant 1 : i32
      %c2_i32_351 = arith.constant 2 : i32
      %c2_i32_352 = arith.constant 2 : i32
      %c0_i32_353 = arith.constant 0 : i32
      %451 = tpu.memref_slice %arg8[%c1_i32_349, %c2_i32_352, %c0_i32_353] : memref<2x8x256xf32, #tpu.memory_space<vmem>> -> memref<1x1x256xf32, #tpu.memory_space<vmem>>
      %452 = tpu.memref_squeeze %451 : memref<1x1x256xf32, #tpu.memory_space<vmem>> -> memref<1x256xf32, #tpu.memory_space<vmem>>
      %c0_i32_354 = arith.constant 0 : i32
      %453 = tpu.memref_slice %arg6[%450, %c0_i32_354] : memref<32x256xf32, #tpu.memory_space<any>> -> memref<1x256xf32, #tpu.memory_space<any>>
      %454 = tpu.memref_slice %arg10[%c1_i32_350, %c2_i32_351] : memref<2x8x!tpu.dma_semaphore, #tpu.memory_space<semaphore_mem>> -> memref<1x1x!tpu.dma_semaphore, #tpu.memory_space<semaphore_mem>>
      %455 = tpu.memref_squeeze %454 : memref<1x1x!tpu.dma_semaphore, #tpu.memory_space<semaphore_mem>> -> memref<!tpu.dma_semaphore, #tpu.memory_space<semaphore_mem>>
      tpu.enqueue_dma source(%452 : memref<1x256xf32, #tpu.memory_space<vmem>>) target(%453 : memref<1x256xf32, #tpu.memory_space<any>>) target_semaphore(%455 : memref<!tpu.dma_semaphore, #tpu.memory_space<semaphore_mem>>)
    } else {
    }
    %c3_i32_304 = arith.constant 3 : i32
    %383 = arith.cmpi sgt, %2, %c3_i32_304 : i32
    %384 = arith.extui %383 : i1 to i32
    %c0_i32_305 = arith.constant 0 : i32
    %385 = arith.cmpi ne, %384, %c0_i32_305 : i32
    scf.if %385 {
      %c1_i32_346 = arith.constant 1 : i32
      %446 = arith.addi %0, %c1_i32_346 : i32
      %c8_i32_347 = arith.constant 8 : i32
      %447 = arith.muli %446, %c8_i32_347 : i32
      %448 = arith.index_cast %arg1 : i32 to index
      %c3_348 = arith.constant 3 : index
      %449 = memref.load %arg2[%448, %c3_348] : memref<2x8xi32, #tpu.memory_space<smem>>
      %450 = arith.addi %447, %449 : i32
      %c1_i32_349 = arith.constant 1 : i32
      %c1_i32_350 = arith.constant 1 : i32
      %c3_i32_351 = arith.constant 3 : i32
      %c3_i32_352 = arith.constant 3 : i32
      %c0_i32_353 = arith.constant 0 : i32
      %451 = tpu.memref_slice %arg8[%c1_i32_349, %c3_i32_352, %c0_i32_353] : memref<2x8x256xf32, #tpu.memory_space<vmem>> -> memref<1x1x256xf32, #tpu.memory_space<vmem>>
      %452 = tpu.memref_squeeze %451 : memref<1x1x256xf32, #tpu.memory_space<vmem>> -> memref<1x256xf32, #tpu.memory_space<vmem>>
      %c0_i32_354 = arith.constant 0 : i32
      %453 = tpu.memref_slice %arg6[%450, %c0_i32_354] : memref<32x256xf32, #tpu.memory_space<any>> -> memref<1x256xf32, #tpu.memory_space<any>>
      %454 = tpu.memref_slice %arg10[%c1_i32_350, %c3_i32_351] : memref<2x8x!tpu.dma_semaphore, #tpu.memory_space<semaphore_mem>> -> memref<1x1x!tpu.dma_semaphore, #tpu.memory_space<semaphore_mem>>
      %455 = tpu.memref_squeeze %454 : memref<1x1x!tpu.dma_semaphore, #tpu.memory_space<semaphore_mem>> -> memref<!tpu.dma_semaphore, #tpu.memory_space<semaphore_mem>>
      tpu.enqueue_dma source(%452 : memref<1x256xf32, #tpu.memory_space<vmem>>) target(%453 : memref<1x256xf32, #tpu.memory_space<any>>) target_semaphore(%455 : memref<!tpu.dma_semaphore, #tpu.memory_space<semaphore_mem>>)
    } else {
    }
    %c4_i32_306 = arith.constant 4 : i32
    %386 = arith.cmpi sgt, %2, %c4_i32_306 : i32
    %387 = arith.extui %386 : i1 to i32
    %c0_i32_307 = arith.constant 0 : i32
    %388 = arith.cmpi ne, %387, %c0_i32_307 : i32
    scf.if %388 {
      %c1_i32_346 = arith.constant 1 : i32
      %446 = arith.addi %0, %c1_i32_346 : i32
      %c8_i32_347 = arith.constant 8 : i32
      %447 = arith.muli %446, %c8_i32_347 : i32
      %448 = arith.index_cast %arg1 : i32 to index
      %c4_348 = arith.constant 4 : index
      %449 = memref.load %arg2[%448, %c4_348] : memref<2x8xi32, #tpu.memory_space<smem>>
      %450 = arith.addi %447, %449 : i32
      %c1_i32_349 = arith.constant 1 : i32
      %c1_i32_350 = arith.constant 1 : i32
      %c4_i32_351 = arith.constant 4 : i32
      %c4_i32_352 = arith.constant 4 : i32
      %c0_i32_353 = arith.constant 0 : i32
      %451 = tpu.memref_slice %arg8[%c1_i32_349, %c4_i32_352, %c0_i32_353] : memref<2x8x256xf32, #tpu.memory_space<vmem>> -> memref<1x1x256xf32, #tpu.memory_space<vmem>>
      %452 = tpu.memref_squeeze %451 : memref<1x1x256xf32, #tpu.memory_space<vmem>> -> memref<1x256xf32, #tpu.memory_space<vmem>>
      %c0_i32_354 = arith.constant 0 : i32
      %453 = tpu.memref_slice %arg6[%450, %c0_i32_354] : memref<32x256xf32, #tpu.memory_space<any>> -> memref<1x256xf32, #tpu.memory_space<any>>
      %454 = tpu.memref_slice %arg10[%c1_i32_350, %c4_i32_351] : memref<2x8x!tpu.dma_semaphore, #tpu.memory_space<semaphore_mem>> -> memref<1x1x!tpu.dma_semaphore, #tpu.memory_space<semaphore_mem>>
      %455 = tpu.memref_squeeze %454 : memref<1x1x!tpu.dma_semaphore, #tpu.memory_space<semaphore_mem>> -> memref<!tpu.dma_semaphore, #tpu.memory_space<semaphore_mem>>
      tpu.enqueue_dma source(%452 : memref<1x256xf32, #tpu.memory_space<vmem>>) target(%453 : memref<1x256xf32, #tpu.memory_space<any>>) target_semaphore(%455 : memref<!tpu.dma_semaphore, #tpu.memory_space<semaphore_mem>>)
    } else {
    }
    %c5_i32_308 = arith.constant 5 : i32
    %389 = arith.cmpi sgt, %2, %c5_i32_308 : i32
    %390 = arith.extui %389 : i1 to i32
    %c0_i32_309 = arith.constant 0 : i32
    %391 = arith.cmpi ne, %390, %c0_i32_309 : i32
    scf.if %391 {
      %c1_i32_346 = arith.constant 1 : i32
      %446 = arith.addi %0, %c1_i32_346 : i32
      %c8_i32_347 = arith.constant 8 : i32
      %447 = arith.muli %446, %c8_i32_347 : i32
      %448 = arith.index_cast %arg1 : i32 to index
      %c5_348 = arith.constant 5 : index
      %449 = memref.load %arg2[%448, %c5_348] : memref<2x8xi32, #tpu.memory_space<smem>>
      %450 = arith.addi %447, %449 : i32
      %c1_i32_349 = arith.constant 1 : i32
      %c1_i32_350 = arith.constant 1 : i32
      %c5_i32_351 = arith.constant 5 : i32
      %c5_i32_352 = arith.constant 5 : i32
      %c0_i32_353 = arith.constant 0 : i32
      %451 = tpu.memref_slice %arg8[%c1_i32_349, %c5_i32_352, %c0_i32_353] : memref<2x8x256xf32, #tpu.memory_space<vmem>> -> memref<1x1x256xf32, #tpu.memory_space<vmem>>
      %452 = tpu.memref_squeeze %451 : memref<1x1x256xf32, #tpu.memory_space<vmem>> -> memref<1x256xf32, #tpu.memory_space<vmem>>
      %c0_i32_354 = arith.constant 0 : i32
      %453 = tpu.memref_slice %arg6[%450, %c0_i32_354] : memref<32x256xf32, #tpu.memory_space<any>> -> memref<1x256xf32, #tpu.memory_space<any>>
      %454 = tpu.memref_slice %arg10[%c1_i32_350, %c5_i32_351] : memref<2x8x!tpu.dma_semaphore, #tpu.memory_space<semaphore_mem>> -> memref<1x1x!tpu.dma_semaphore, #tpu.memory_space<semaphore_mem>>
      %455 = tpu.memref_squeeze %454 : memref<1x1x!tpu.dma_semaphore, #tpu.memory_space<semaphore_mem>> -> memref<!tpu.dma_semaphore, #tpu.memory_space<semaphore_mem>>
      tpu.enqueue_dma source(%452 : memref<1x256xf32, #tpu.memory_space<vmem>>) target(%453 : memref<1x256xf32, #tpu.memory_space<any>>) target_semaphore(%455 : memref<!tpu.dma_semaphore, #tpu.memory_space<semaphore_mem>>)
    } else {
    }
    %c6_i32_310 = arith.constant 6 : i32
    %392 = arith.cmpi sgt, %2, %c6_i32_310 : i32
    %393 = arith.extui %392 : i1 to i32
    %c0_i32_311 = arith.constant 0 : i32
    %394 = arith.cmpi ne, %393, %c0_i32_311 : i32
    scf.if %394 {
      %c1_i32_346 = arith.constant 1 : i32
      %446 = arith.addi %0, %c1_i32_346 : i32
      %c8_i32_347 = arith.constant 8 : i32
      %447 = arith.muli %446, %c8_i32_347 : i32
      %448 = arith.index_cast %arg1 : i32 to index
      %c6_348 = arith.constant 6 : index
      %449 = memref.load %arg2[%448, %c6_348] : memref<2x8xi32, #tpu.memory_space<smem>>
      %450 = arith.addi %447, %449 : i32
      %c1_i32_349 = arith.constant 1 : i32
      %c1_i32_350 = arith.constant 1 : i32
      %c6_i32_351 = arith.constant 6 : i32
      %c6_i32_352 = arith.constant 6 : i32
      %c0_i32_353 = arith.constant 0 : i32
      %451 = tpu.memref_slice %arg8[%c1_i32_349, %c6_i32_352, %c0_i32_353] : memref<2x8x256xf32, #tpu.memory_space<vmem>> -> memref<1x1x256xf32, #tpu.memory_space<vmem>>
      %452 = tpu.memref_squeeze %451 : memref<1x1x256xf32, #tpu.memory_space<vmem>> -> memref<1x256xf32, #tpu.memory_space<vmem>>
      %c0_i32_354 = arith.constant 0 : i32
      %453 = tpu.memref_slice %arg6[%450, %c0_i32_354] : memref<32x256xf32, #tpu.memory_space<any>> -> memref<1x256xf32, #tpu.memory_space<any>>
      %454 = tpu.memref_slice %arg10[%c1_i32_350, %c6_i32_351] : memref<2x8x!tpu.dma_semaphore, #tpu.memory_space<semaphore_mem>> -> memref<1x1x!tpu.dma_semaphore, #tpu.memory_space<semaphore_mem>>
      %455 = tpu.memref_squeeze %454 : memref<1x1x!tpu.dma_semaphore, #tpu.memory_space<semaphore_mem>> -> memref<!tpu.dma_semaphore, #tpu.memory_space<semaphore_mem>>
      tpu.enqueue_dma source(%452 : memref<1x256xf32, #tpu.memory_space<vmem>>) target(%453 : memref<1x256xf32, #tpu.memory_space<any>>) target_semaphore(%455 : memref<!tpu.dma_semaphore, #tpu.memory_space<semaphore_mem>>)
    } else {
    }
    %c7_i32_312 = arith.constant 7 : i32
    %395 = arith.cmpi sgt, %2, %c7_i32_312 : i32
    %396 = arith.extui %395 : i1 to i32
    %c0_i32_313 = arith.constant 0 : i32
    %397 = arith.cmpi ne, %396, %c0_i32_313 : i32
    scf.if %397 {
      %c1_i32_346 = arith.constant 1 : i32
      %446 = arith.addi %0, %c1_i32_346 : i32
      %c8_i32_347 = arith.constant 8 : i32
      %447 = arith.muli %446, %c8_i32_347 : i32
      %448 = arith.index_cast %arg1 : i32 to index
      %c7_348 = arith.constant 7 : index
      %449 = memref.load %arg2[%448, %c7_348] : memref<2x8xi32, #tpu.memory_space<smem>>
      %450 = arith.addi %447, %449 : i32
      %c1_i32_349 = arith.constant 1 : i32
      %c1_i32_350 = arith.constant 1 : i32
      %c7_i32_351 = arith.constant 7 : i32
      %c7_i32_352 = arith.constant 7 : i32
      %c0_i32_353 = arith.constant 0 : i32
      %451 = tpu.memref_slice %arg8[%c1_i32_349, %c7_i32_352, %c0_i32_353] : memref<2x8x256xf32, #tpu.memory_space<vmem>> -> memref<1x1x256xf32, #tpu.memory_space<vmem>>
      %452 = tpu.memref_squeeze %451 : memref<1x1x256xf32, #tpu.memory_space<vmem>> -> memref<1x256xf32, #tpu.memory_space<vmem>>
      %c0_i32_354 = arith.constant 0 : i32
      %453 = tpu.memref_slice %arg6[%450, %c0_i32_354] : memref<32x256xf32, #tpu.memory_space<any>> -> memref<1x256xf32, #tpu.memory_space<any>>
      %454 = tpu.memref_slice %arg10[%c1_i32_350, %c7_i32_351] : memref<2x8x!tpu.dma_semaphore, #tpu.memory_space<semaphore_mem>> -> memref<1x1x!tpu.dma_semaphore, #tpu.memory_space<semaphore_mem>>
      %455 = tpu.memref_squeeze %454 : memref<1x1x!tpu.dma_semaphore, #tpu.memory_space<semaphore_mem>> -> memref<!tpu.dma_semaphore, #tpu.memory_space<semaphore_mem>>
      tpu.enqueue_dma source(%452 : memref<1x256xf32, #tpu.memory_space<vmem>>) target(%453 : memref<1x256xf32, #tpu.memory_space<any>>) target_semaphore(%455 : memref<!tpu.dma_semaphore, #tpu.memory_space<semaphore_mem>>)
    } else {
    }
    %c0_i32_314 = arith.constant 0 : i32
    %398 = arith.cmpi sgt, %2, %c0_i32_314 : i32
    %399 = arith.extui %398 : i1 to i32
    %c0_i32_315 = arith.constant 0 : i32
    %400 = arith.cmpi ne, %399, %c0_i32_315 : i32
    scf.if %400 {
      %c0_i32_346 = arith.constant 0 : i32
      %446 = arith.addi %0, %c0_i32_346 : i32
      %c8_i32_347 = arith.constant 8 : i32
      %447 = arith.muli %446, %c8_i32_347 : i32
      %448 = arith.index_cast %arg1 : i32 to index
      %c0_348 = arith.constant 0 : index
      %449 = memref.load %arg2[%448, %c0_348] : memref<2x8xi32, #tpu.memory_space<smem>>
      %450 = arith.addi %447, %449 : i32
      %c0_i32_349 = arith.constant 0 : i32
      %c0_i32_350 = arith.constant 0 : i32
      %c0_i32_351 = arith.constant 0 : i32
      %c0_i32_352 = arith.constant 0 : i32
      %c0_i32_353 = arith.constant 0 : i32
      %451 = tpu.memref_slice %arg8[%c0_i32_349, %c0_i32_352, %c0_i32_353] : memref<2x8x256xf32, #tpu.memory_space<vmem>> -> memref<1x1x256xf32, #tpu.memory_space<vmem>>
      %452 = tpu.memref_squeeze %451 : memref<1x1x256xf32, #tpu.memory_space<vmem>> -> memref<1x256xf32, #tpu.memory_space<vmem>>
      %c0_i32_354 = arith.constant 0 : i32
      %453 = tpu.memref_slice %arg6[%450, %c0_i32_354] : memref<32x256xf32, #tpu.memory_space<any>> -> memref<1x256xf32, #tpu.memory_space<any>>
      %454 = tpu.memref_slice %arg10[%c0_i32_350, %c0_i32_351] : memref<2x8x!tpu.dma_semaphore, #tpu.memory_space<semaphore_mem>> -> memref<1x1x!tpu.dma_semaphore, #tpu.memory_space<semaphore_mem>>
      %455 = tpu.memref_squeeze %454 : memref<1x1x!tpu.dma_semaphore, #tpu.memory_space<semaphore_mem>> -> memref<!tpu.dma_semaphore, #tpu.memory_space<semaphore_mem>>
      tpu.wait_dma2 semaphore(%455 : memref<!tpu.dma_semaphore, #tpu.memory_space<semaphore_mem>>) src(%452 : memref<1x256xf32, #tpu.memory_space<vmem>>) dst(%453 : memref<1x256xf32, #tpu.memory_space<any>>)
    } else {
    }
    %c1_i32_316 = arith.constant 1 : i32
    %401 = arith.cmpi sgt, %2, %c1_i32_316 : i32
    %402 = arith.extui %401 : i1 to i32
    %c0_i32_317 = arith.constant 0 : i32
    %403 = arith.cmpi ne, %402, %c0_i32_317 : i32
    scf.if %403 {
      %c0_i32_346 = arith.constant 0 : i32
      %446 = arith.addi %0, %c0_i32_346 : i32
      %c8_i32_347 = arith.constant 8 : i32
      %447 = arith.muli %446, %c8_i32_347 : i32
      %448 = arith.index_cast %arg1 : i32 to index
      %c1_348 = arith.constant 1 : index
      %449 = memref.load %arg2[%448, %c1_348] : memref<2x8xi32, #tpu.memory_space<smem>>
      %450 = arith.addi %447, %449 : i32
      %c0_i32_349 = arith.constant 0 : i32
      %c0_i32_350 = arith.constant 0 : i32
      %c1_i32_351 = arith.constant 1 : i32
      %c1_i32_352 = arith.constant 1 : i32
      %c0_i32_353 = arith.constant 0 : i32
      %451 = tpu.memref_slice %arg8[%c0_i32_349, %c1_i32_352, %c0_i32_353] : memref<2x8x256xf32, #tpu.memory_space<vmem>> -> memref<1x1x256xf32, #tpu.memory_space<vmem>>
      %452 = tpu.memref_squeeze %451 : memref<1x1x256xf32, #tpu.memory_space<vmem>> -> memref<1x256xf32, #tpu.memory_space<vmem>>
      %c0_i32_354 = arith.constant 0 : i32
      %453 = tpu.memref_slice %arg6[%450, %c0_i32_354] : memref<32x256xf32, #tpu.memory_space<any>> -> memref<1x256xf32, #tpu.memory_space<any>>
      %454 = tpu.memref_slice %arg10[%c0_i32_350, %c1_i32_351] : memref<2x8x!tpu.dma_semaphore, #tpu.memory_space<semaphore_mem>> -> memref<1x1x!tpu.dma_semaphore, #tpu.memory_space<semaphore_mem>>
      %455 = tpu.memref_squeeze %454 : memref<1x1x!tpu.dma_semaphore, #tpu.memory_space<semaphore_mem>> -> memref<!tpu.dma_semaphore, #tpu.memory_space<semaphore_mem>>
      tpu.wait_dma2 semaphore(%455 : memref<!tpu.dma_semaphore, #tpu.memory_space<semaphore_mem>>) src(%452 : memref<1x256xf32, #tpu.memory_space<vmem>>) dst(%453 : memref<1x256xf32, #tpu.memory_space<any>>)
    } else {
    }
    %c2_i32_318 = arith.constant 2 : i32
    %404 = arith.cmpi sgt, %2, %c2_i32_318 : i32
    %405 = arith.extui %404 : i1 to i32
    %c0_i32_319 = arith.constant 0 : i32
    %406 = arith.cmpi ne, %405, %c0_i32_319 : i32
    scf.if %406 {
      %c0_i32_346 = arith.constant 0 : i32
      %446 = arith.addi %0, %c0_i32_346 : i32
      %c8_i32_347 = arith.constant 8 : i32
      %447 = arith.muli %446, %c8_i32_347 : i32
      %448 = arith.index_cast %arg1 : i32 to index
      %c2_348 = arith.constant 2 : index
      %449 = memref.load %arg2[%448, %c2_348] : memref<2x8xi32, #tpu.memory_space<smem>>
      %450 = arith.addi %447, %449 : i32
      %c0_i32_349 = arith.constant 0 : i32
      %c0_i32_350 = arith.constant 0 : i32
      %c2_i32_351 = arith.constant 2 : i32
      %c2_i32_352 = arith.constant 2 : i32
      %c0_i32_353 = arith.constant 0 : i32
      %451 = tpu.memref_slice %arg8[%c0_i32_349, %c2_i32_352, %c0_i32_353] : memref<2x8x256xf32, #tpu.memory_space<vmem>> -> memref<1x1x256xf32, #tpu.memory_space<vmem>>
      %452 = tpu.memref_squeeze %451 : memref<1x1x256xf32, #tpu.memory_space<vmem>> -> memref<1x256xf32, #tpu.memory_space<vmem>>
      %c0_i32_354 = arith.constant 0 : i32
      %453 = tpu.memref_slice %arg6[%450, %c0_i32_354] : memref<32x256xf32, #tpu.memory_space<any>> -> memref<1x256xf32, #tpu.memory_space<any>>
      %454 = tpu.memref_slice %arg10[%c0_i32_350, %c2_i32_351] : memref<2x8x!tpu.dma_semaphore, #tpu.memory_space<semaphore_mem>> -> memref<1x1x!tpu.dma_semaphore, #tpu.memory_space<semaphore_mem>>
      %455 = tpu.memref_squeeze %454 : memref<1x1x!tpu.dma_semaphore, #tpu.memory_space<semaphore_mem>> -> memref<!tpu.dma_semaphore, #tpu.memory_space<semaphore_mem>>
      tpu.wait_dma2 semaphore(%455 : memref<!tpu.dma_semaphore, #tpu.memory_space<semaphore_mem>>) src(%452 : memref<1x256xf32, #tpu.memory_space<vmem>>) dst(%453 : memref<1x256xf32, #tpu.memory_space<any>>)
    } else {
    }
    %c3_i32_320 = arith.constant 3 : i32
    %407 = arith.cmpi sgt, %2, %c3_i32_320 : i32
    %408 = arith.extui %407 : i1 to i32
    %c0_i32_321 = arith.constant 0 : i32
    %409 = arith.cmpi ne, %408, %c0_i32_321 : i32
    scf.if %409 {
      %c0_i32_346 = arith.constant 0 : i32
      %446 = arith.addi %0, %c0_i32_346 : i32
      %c8_i32_347 = arith.constant 8 : i32
      %447 = arith.muli %446, %c8_i32_347 : i32
      %448 = arith.index_cast %arg1 : i32 to index
      %c3_348 = arith.constant 3 : index
      %449 = memref.load %arg2[%448, %c3_348] : memref<2x8xi32, #tpu.memory_space<smem>>
      %450 = arith.addi %447, %449 : i32
      %c0_i32_349 = arith.constant 0 : i32
      %c0_i32_350 = arith.constant 0 : i32
      %c3_i32_351 = arith.constant 3 : i32
      %c3_i32_352 = arith.constant 3 : i32
      %c0_i32_353 = arith.constant 0 : i32
      %451 = tpu.memref_slice %arg8[%c0_i32_349, %c3_i32_352, %c0_i32_353] : memref<2x8x256xf32, #tpu.memory_space<vmem>> -> memref<1x1x256xf32, #tpu.memory_space<vmem>>
      %452 = tpu.memref_squeeze %451 : memref<1x1x256xf32, #tpu.memory_space<vmem>> -> memref<1x256xf32, #tpu.memory_space<vmem>>
      %c0_i32_354 = arith.constant 0 : i32
      %453 = tpu.memref_slice %arg6[%450, %c0_i32_354] : memref<32x256xf32, #tpu.memory_space<any>> -> memref<1x256xf32, #tpu.memory_space<any>>
      %454 = tpu.memref_slice %arg10[%c0_i32_350, %c3_i32_351] : memref<2x8x!tpu.dma_semaphore, #tpu.memory_space<semaphore_mem>> -> memref<1x1x!tpu.dma_semaphore, #tpu.memory_space<semaphore_mem>>
      %455 = tpu.memref_squeeze %454 : memref<1x1x!tpu.dma_semaphore, #tpu.memory_space<semaphore_mem>> -> memref<!tpu.dma_semaphore, #tpu.memory_space<semaphore_mem>>
      tpu.wait_dma2 semaphore(%455 : memref<!tpu.dma_semaphore, #tpu.memory_space<semaphore_mem>>) src(%452 : memref<1x256xf32, #tpu.memory_space<vmem>>) dst(%453 : memref<1x256xf32, #tpu.memory_space<any>>)
    } else {
    }
    %c4_i32_322 = arith.constant 4 : i32
    %410 = arith.cmpi sgt, %2, %c4_i32_322 : i32
    %411 = arith.extui %410 : i1 to i32
    %c0_i32_323 = arith.constant 0 : i32
    %412 = arith.cmpi ne, %411, %c0_i32_323 : i32
    scf.if %412 {
      %c0_i32_346 = arith.constant 0 : i32
      %446 = arith.addi %0, %c0_i32_346 : i32
      %c8_i32_347 = arith.constant 8 : i32
      %447 = arith.muli %446, %c8_i32_347 : i32
      %448 = arith.index_cast %arg1 : i32 to index
      %c4_348 = arith.constant 4 : index
      %449 = memref.load %arg2[%448, %c4_348] : memref<2x8xi32, #tpu.memory_space<smem>>
      %450 = arith.addi %447, %449 : i32
      %c0_i32_349 = arith.constant 0 : i32
      %c0_i32_350 = arith.constant 0 : i32
      %c4_i32_351 = arith.constant 4 : i32
      %c4_i32_352 = arith.constant 4 : i32
      %c0_i32_353 = arith.constant 0 : i32
      %451 = tpu.memref_slice %arg8[%c0_i32_349, %c4_i32_352, %c0_i32_353] : memref<2x8x256xf32, #tpu.memory_space<vmem>> -> memref<1x1x256xf32, #tpu.memory_space<vmem>>
      %452 = tpu.memref_squeeze %451 : memref<1x1x256xf32, #tpu.memory_space<vmem>> -> memref<1x256xf32, #tpu.memory_space<vmem>>
      %c0_i32_354 = arith.constant 0 : i32
      %453 = tpu.memref_slice %arg6[%450, %c0_i32_354] : memref<32x256xf32, #tpu.memory_space<any>> -> memref<1x256xf32, #tpu.memory_space<any>>
      %454 = tpu.memref_slice %arg10[%c0_i32_350, %c4_i32_351] : memref<2x8x!tpu.dma_semaphore, #tpu.memory_space<semaphore_mem>> -> memref<1x1x!tpu.dma_semaphore, #tpu.memory_space<semaphore_mem>>
      %455 = tpu.memref_squeeze %454 : memref<1x1x!tpu.dma_semaphore, #tpu.memory_space<semaphore_mem>> -> memref<!tpu.dma_semaphore, #tpu.memory_space<semaphore_mem>>
      tpu.wait_dma2 semaphore(%455 : memref<!tpu.dma_semaphore, #tpu.memory_space<semaphore_mem>>) src(%452 : memref<1x256xf32, #tpu.memory_space<vmem>>) dst(%453 : memref<1x256xf32, #tpu.memory_space<any>>)
    } else {
    }
    %c5_i32_324 = arith.constant 5 : i32
    %413 = arith.cmpi sgt, %2, %c5_i32_324 : i32
    %414 = arith.extui %413 : i1 to i32
    %c0_i32_325 = arith.constant 0 : i32
    %415 = arith.cmpi ne, %414, %c0_i32_325 : i32
    scf.if %415 {
      %c0_i32_346 = arith.constant 0 : i32
      %446 = arith.addi %0, %c0_i32_346 : i32
      %c8_i32_347 = arith.constant 8 : i32
      %447 = arith.muli %446, %c8_i32_347 : i32
      %448 = arith.index_cast %arg1 : i32 to index
      %c5_348 = arith.constant 5 : index
      %449 = memref.load %arg2[%448, %c5_348] : memref<2x8xi32, #tpu.memory_space<smem>>
      %450 = arith.addi %447, %449 : i32
      %c0_i32_349 = arith.constant 0 : i32
      %c0_i32_350 = arith.constant 0 : i32
      %c5_i32_351 = arith.constant 5 : i32
      %c5_i32_352 = arith.constant 5 : i32
      %c0_i32_353 = arith.constant 0 : i32
      %451 = tpu.memref_slice %arg8[%c0_i32_349, %c5_i32_352, %c0_i32_353] : memref<2x8x256xf32, #tpu.memory_space<vmem>> -> memref<1x1x256xf32, #tpu.memory_space<vmem>>
      %452 = tpu.memref_squeeze %451 : memref<1x1x256xf32, #tpu.memory_space<vmem>> -> memref<1x256xf32, #tpu.memory_space<vmem>>
      %c0_i32_354 = arith.constant 0 : i32
      %453 = tpu.memref_slice %arg6[%450, %c0_i32_354] : memref<32x256xf32, #tpu.memory_space<any>> -> memref<1x256xf32, #tpu.memory_space<any>>
      %454 = tpu.memref_slice %arg10[%c0_i32_350, %c5_i32_351] : memref<2x8x!tpu.dma_semaphore, #tpu.memory_space<semaphore_mem>> -> memref<1x1x!tpu.dma_semaphore, #tpu.memory_space<semaphore_mem>>
      %455 = tpu.memref_squeeze %454 : memref<1x1x!tpu.dma_semaphore, #tpu.memory_space<semaphore_mem>> -> memref<!tpu.dma_semaphore, #tpu.memory_space<semaphore_mem>>
      tpu.wait_dma2 semaphore(%455 : memref<!tpu.dma_semaphore, #tpu.memory_space<semaphore_mem>>) src(%452 : memref<1x256xf32, #tpu.memory_space<vmem>>) dst(%453 : memref<1x256xf32, #tpu.memory_space<any>>)
    } else {
    }
    %c6_i32_326 = arith.constant 6 : i32
    %416 = arith.cmpi sgt, %2, %c6_i32_326 : i32
    %417 = arith.extui %416 : i1 to i32
    %c0_i32_327 = arith.constant 0 : i32
    %418 = arith.cmpi ne, %417, %c0_i32_327 : i32
    scf.if %418 {
      %c0_i32_346 = arith.constant 0 : i32
      %446 = arith.addi %0, %c0_i32_346 : i32
      %c8_i32_347 = arith.constant 8 : i32
      %447 = arith.muli %446, %c8_i32_347 : i32
      %448 = arith.index_cast %arg1 : i32 to index
      %c6_348 = arith.constant 6 : index
      %449 = memref.load %arg2[%448, %c6_348] : memref<2x8xi32, #tpu.memory_space<smem>>
      %450 = arith.addi %447, %449 : i32
      %c0_i32_349 = arith.constant 0 : i32
      %c0_i32_350 = arith.constant 0 : i32
      %c6_i32_351 = arith.constant 6 : i32
      %c6_i32_352 = arith.constant 6 : i32
      %c0_i32_353 = arith.constant 0 : i32
      %451 = tpu.memref_slice %arg8[%c0_i32_349, %c6_i32_352, %c0_i32_353] : memref<2x8x256xf32, #tpu.memory_space<vmem>> -> memref<1x1x256xf32, #tpu.memory_space<vmem>>
      %452 = tpu.memref_squeeze %451 : memref<1x1x256xf32, #tpu.memory_space<vmem>> -> memref<1x256xf32, #tpu.memory_space<vmem>>
      %c0_i32_354 = arith.constant 0 : i32
      %453 = tpu.memref_slice %arg6[%450, %c0_i32_354] : memref<32x256xf32, #tpu.memory_space<any>> -> memref<1x256xf32, #tpu.memory_space<any>>
      %454 = tpu.memref_slice %arg10[%c0_i32_350, %c6_i32_351] : memref<2x8x!tpu.dma_semaphore, #tpu.memory_space<semaphore_mem>> -> memref<1x1x!tpu.dma_semaphore, #tpu.memory_space<semaphore_mem>>
      %455 = tpu.memref_squeeze %454 : memref<1x1x!tpu.dma_semaphore, #tpu.memory_space<semaphore_mem>> -> memref<!tpu.dma_semaphore, #tpu.memory_space<semaphore_mem>>
      tpu.wait_dma2 semaphore(%455 : memref<!tpu.dma_semaphore, #tpu.memory_space<semaphore_mem>>) src(%452 : memref<1x256xf32, #tpu.memory_space<vmem>>) dst(%453 : memref<1x256xf32, #tpu.memory_space<any>>)
    } else {
    }
    %c7_i32_328 = arith.constant 7 : i32
    %419 = arith.cmpi sgt, %2, %c7_i32_328 : i32
    %420 = arith.extui %419 : i1 to i32
    %c0_i32_329 = arith.constant 0 : i32
    %421 = arith.cmpi ne, %420, %c0_i32_329 : i32
    scf.if %421 {
      %c0_i32_346 = arith.constant 0 : i32
      %446 = arith.addi %0, %c0_i32_346 : i32
      %c8_i32_347 = arith.constant 8 : i32
      %447 = arith.muli %446, %c8_i32_347 : i32
      %448 = arith.index_cast %arg1 : i32 to index
      %c7_348 = arith.constant 7 : index
      %449 = memref.load %arg2[%448, %c7_348] : memref<2x8xi32, #tpu.memory_space<smem>>
      %450 = arith.addi %447, %449 : i32
      %c0_i32_349 = arith.constant 0 : i32
      %c0_i32_350 = arith.constant 0 : i32
      %c7_i32_351 = arith.constant 7 : i32
      %c7_i32_352 = arith.constant 7 : i32
      %c0_i32_353 = arith.constant 0 : i32
      %451 = tpu.memref_slice %arg8[%c0_i32_349, %c7_i32_352, %c0_i32_353] : memref<2x8x256xf32, #tpu.memory_space<vmem>> -> memref<1x1x256xf32, #tpu.memory_space<vmem>>
      %452 = tpu.memref_squeeze %451 : memref<1x1x256xf32, #tpu.memory_space<vmem>> -> memref<1x256xf32, #tpu.memory_space<vmem>>
      %c0_i32_354 = arith.constant 0 : i32
      %453 = tpu.memref_slice %arg6[%450, %c0_i32_354] : memref<32x256xf32, #tpu.memory_space<any>> -> memref<1x256xf32, #tpu.memory_space<any>>
      %454 = tpu.memref_slice %arg10[%c0_i32_350, %c7_i32_351] : memref<2x8x!tpu.dma_semaphore, #tpu.memory_space<semaphore_mem>> -> memref<1x1x!tpu.dma_semaphore, #tpu.memory_space<semaphore_mem>>
      %455 = tpu.memref_squeeze %454 : memref<1x1x!tpu.dma_semaphore, #tpu.memory_space<semaphore_mem>> -> memref<!tpu.dma_semaphore, #tpu.memory_space<semaphore_mem>>
      tpu.wait_dma2 semaphore(%455 : memref<!tpu.dma_semaphore, #tpu.memory_space<semaphore_mem>>) src(%452 : memref<1x256xf32, #tpu.memory_space<vmem>>) dst(%453 : memref<1x256xf32, #tpu.memory_space<any>>)
    } else {
    }
    %c0_i32_330 = arith.constant 0 : i32
    %422 = arith.cmpi sgt, %2, %c0_i32_330 : i32
    %423 = arith.extui %422 : i1 to i32
    %c0_i32_331 = arith.constant 0 : i32
    %424 = arith.cmpi ne, %423, %c0_i32_331 : i32
    scf.if %424 {
      %c1_i32_346 = arith.constant 1 : i32
      %446 = arith.addi %0, %c1_i32_346 : i32
      %c8_i32_347 = arith.constant 8 : i32
      %447 = arith.muli %446, %c8_i32_347 : i32
      %448 = arith.index_cast %arg1 : i32 to index
      %c0_348 = arith.constant 0 : index
      %449 = memref.load %arg2[%448, %c0_348] : memref<2x8xi32, #tpu.memory_space<smem>>
      %450 = arith.addi %447, %449 : i32
      %c1_i32_349 = arith.constant 1 : i32
      %c1_i32_350 = arith.constant 1 : i32
      %c0_i32_351 = arith.constant 0 : i32
      %c0_i32_352 = arith.constant 0 : i32
      %c0_i32_353 = arith.constant 0 : i32
      %451 = tpu.memref_slice %arg8[%c1_i32_349, %c0_i32_352, %c0_i32_353] : memref<2x8x256xf32, #tpu.memory_space<vmem>> -> memref<1x1x256xf32, #tpu.memory_space<vmem>>
      %452 = tpu.memref_squeeze %451 : memref<1x1x256xf32, #tpu.memory_space<vmem>> -> memref<1x256xf32, #tpu.memory_space<vmem>>
      %c0_i32_354 = arith.constant 0 : i32
      %453 = tpu.memref_slice %arg6[%450, %c0_i32_354] : memref<32x256xf32, #tpu.memory_space<any>> -> memref<1x256xf32, #tpu.memory_space<any>>
      %454 = tpu.memref_slice %arg10[%c1_i32_350, %c0_i32_351] : memref<2x8x!tpu.dma_semaphore, #tpu.memory_space<semaphore_mem>> -> memref<1x1x!tpu.dma_semaphore, #tpu.memory_space<semaphore_mem>>
      %455 = tpu.memref_squeeze %454 : memref<1x1x!tpu.dma_semaphore, #tpu.memory_space<semaphore_mem>> -> memref<!tpu.dma_semaphore, #tpu.memory_space<semaphore_mem>>
      tpu.wait_dma2 semaphore(%455 : memref<!tpu.dma_semaphore, #tpu.memory_space<semaphore_mem>>) src(%452 : memref<1x256xf32, #tpu.memory_space<vmem>>) dst(%453 : memref<1x256xf32, #tpu.memory_space<any>>)
    } else {
    }
    %c1_i32_332 = arith.constant 1 : i32
    %425 = arith.cmpi sgt, %2, %c1_i32_332 : i32
    %426 = arith.extui %425 : i1 to i32
    %c0_i32_333 = arith.constant 0 : i32
    %427 = arith.cmpi ne, %426, %c0_i32_333 : i32
    scf.if %427 {
      %c1_i32_346 = arith.constant 1 : i32
      %446 = arith.addi %0, %c1_i32_346 : i32
      %c8_i32_347 = arith.constant 8 : i32
      %447 = arith.muli %446, %c8_i32_347 : i32
      %448 = arith.index_cast %arg1 : i32 to index
      %c1_348 = arith.constant 1 : index
      %449 = memref.load %arg2[%448, %c1_348] : memref<2x8xi32, #tpu.memory_space<smem>>
      %450 = arith.addi %447, %449 : i32
      %c1_i32_349 = arith.constant 1 : i32
      %c1_i32_350 = arith.constant 1 : i32
      %c1_i32_351 = arith.constant 1 : i32
      %c1_i32_352 = arith.constant 1 : i32
      %c0_i32_353 = arith.constant 0 : i32
      %451 = tpu.memref_slice %arg8[%c1_i32_349, %c1_i32_352, %c0_i32_353] : memref<2x8x256xf32, #tpu.memory_space<vmem>> -> memref<1x1x256xf32, #tpu.memory_space<vmem>>
      %452 = tpu.memref_squeeze %451 : memref<1x1x256xf32, #tpu.memory_space<vmem>> -> memref<1x256xf32, #tpu.memory_space<vmem>>
      %c0_i32_354 = arith.constant 0 : i32
      %453 = tpu.memref_slice %arg6[%450, %c0_i32_354] : memref<32x256xf32, #tpu.memory_space<any>> -> memref<1x256xf32, #tpu.memory_space<any>>
      %454 = tpu.memref_slice %arg10[%c1_i32_350, %c1_i32_351] : memref<2x8x!tpu.dma_semaphore, #tpu.memory_space<semaphore_mem>> -> memref<1x1x!tpu.dma_semaphore, #tpu.memory_space<semaphore_mem>>
      %455 = tpu.memref_squeeze %454 : memref<1x1x!tpu.dma_semaphore, #tpu.memory_space<semaphore_mem>> -> memref<!tpu.dma_semaphore, #tpu.memory_space<semaphore_mem>>
      tpu.wait_dma2 semaphore(%455 : memref<!tpu.dma_semaphore, #tpu.memory_space<semaphore_mem>>) src(%452 : memref<1x256xf32, #tpu.memory_space<vmem>>) dst(%453 : memref<1x256xf32, #tpu.memory_space<any>>)
    } else {
    }
    %c2_i32_334 = arith.constant 2 : i32
    %428 = arith.cmpi sgt, %2, %c2_i32_334 : i32
    %429 = arith.extui %428 : i1 to i32
    %c0_i32_335 = arith.constant 0 : i32
    %430 = arith.cmpi ne, %429, %c0_i32_335 : i32
    scf.if %430 {
      %c1_i32_346 = arith.constant 1 : i32
      %446 = arith.addi %0, %c1_i32_346 : i32
      %c8_i32_347 = arith.constant 8 : i32
      %447 = arith.muli %446, %c8_i32_347 : i32
      %448 = arith.index_cast %arg1 : i32 to index
      %c2_348 = arith.constant 2 : index
      %449 = memref.load %arg2[%448, %c2_348] : memref<2x8xi32, #tpu.memory_space<smem>>
      %450 = arith.addi %447, %449 : i32
      %c1_i32_349 = arith.constant 1 : i32
      %c1_i32_350 = arith.constant 1 : i32
      %c2_i32_351 = arith.constant 2 : i32
      %c2_i32_352 = arith.constant 2 : i32
      %c0_i32_353 = arith.constant 0 : i32
      %451 = tpu.memref_slice %arg8[%c1_i32_349, %c2_i32_352, %c0_i32_353] : memref<2x8x256xf32, #tpu.memory_space<vmem>> -> memref<1x1x256xf32, #tpu.memory_space<vmem>>
      %452 = tpu.memref_squeeze %451 : memref<1x1x256xf32, #tpu.memory_space<vmem>> -> memref<1x256xf32, #tpu.memory_space<vmem>>
      %c0_i32_354 = arith.constant 0 : i32
      %453 = tpu.memref_slice %arg6[%450, %c0_i32_354] : memref<32x256xf32, #tpu.memory_space<any>> -> memref<1x256xf32, #tpu.memory_space<any>>
      %454 = tpu.memref_slice %arg10[%c1_i32_350, %c2_i32_351] : memref<2x8x!tpu.dma_semaphore, #tpu.memory_space<semaphore_mem>> -> memref<1x1x!tpu.dma_semaphore, #tpu.memory_space<semaphore_mem>>
      %455 = tpu.memref_squeeze %454 : memref<1x1x!tpu.dma_semaphore, #tpu.memory_space<semaphore_mem>> -> memref<!tpu.dma_semaphore, #tpu.memory_space<semaphore_mem>>
      tpu.wait_dma2 semaphore(%455 : memref<!tpu.dma_semaphore, #tpu.memory_space<semaphore_mem>>) src(%452 : memref<1x256xf32, #tpu.memory_space<vmem>>) dst(%453 : memref<1x256xf32, #tpu.memory_space<any>>)
    } else {
    }
    %c3_i32_336 = arith.constant 3 : i32
    %431 = arith.cmpi sgt, %2, %c3_i32_336 : i32
    %432 = arith.extui %431 : i1 to i32
    %c0_i32_337 = arith.constant 0 : i32
    %433 = arith.cmpi ne, %432, %c0_i32_337 : i32
    scf.if %433 {
      %c1_i32_346 = arith.constant 1 : i32
      %446 = arith.addi %0, %c1_i32_346 : i32
      %c8_i32_347 = arith.constant 8 : i32
      %447 = arith.muli %446, %c8_i32_347 : i32
      %448 = arith.index_cast %arg1 : i32 to index
      %c3_348 = arith.constant 3 : index
      %449 = memref.load %arg2[%448, %c3_348] : memref<2x8xi32, #tpu.memory_space<smem>>
      %450 = arith.addi %447, %449 : i32
      %c1_i32_349 = arith.constant 1 : i32
      %c1_i32_350 = arith.constant 1 : i32
      %c3_i32_351 = arith.constant 3 : i32
      %c3_i32_352 = arith.constant 3 : i32
      %c0_i32_353 = arith.constant 0 : i32
      %451 = tpu.memref_slice %arg8[%c1_i32_349, %c3_i32_352, %c0_i32_353] : memref<2x8x256xf32, #tpu.memory_space<vmem>> -> memref<1x1x256xf32, #tpu.memory_space<vmem>>
      %452 = tpu.memref_squeeze %451 : memref<1x1x256xf32, #tpu.memory_space<vmem>> -> memref<1x256xf32, #tpu.memory_space<vmem>>
      %c0_i32_354 = arith.constant 0 : i32
      %453 = tpu.memref_slice %arg6[%450, %c0_i32_354] : memref<32x256xf32, #tpu.memory_space<any>> -> memref<1x256xf32, #tpu.memory_space<any>>
      %454 = tpu.memref_slice %arg10[%c1_i32_350, %c3_i32_351] : memref<2x8x!tpu.dma_semaphore, #tpu.memory_space<semaphore_mem>> -> memref<1x1x!tpu.dma_semaphore, #tpu.memory_space<semaphore_mem>>
      %455 = tpu.memref_squeeze %454 : memref<1x1x!tpu.dma_semaphore, #tpu.memory_space<semaphore_mem>> -> memref<!tpu.dma_semaphore, #tpu.memory_space<semaphore_mem>>
      tpu.wait_dma2 semaphore(%455 : memref<!tpu.dma_semaphore, #tpu.memory_space<semaphore_mem>>) src(%452 : memref<1x256xf32, #tpu.memory_space<vmem>>) dst(%453 : memref<1x256xf32, #tpu.memory_space<any>>)
    } else {
    }
    %c4_i32_338 = arith.constant 4 : i32
    %434 = arith.cmpi sgt, %2, %c4_i32_338 : i32
    %435 = arith.extui %434 : i1 to i32
    %c0_i32_339 = arith.constant 0 : i32
    %436 = arith.cmpi ne, %435, %c0_i32_339 : i32
    scf.if %436 {
      %c1_i32_346 = arith.constant 1 : i32
      %446 = arith.addi %0, %c1_i32_346 : i32
      %c8_i32_347 = arith.constant 8 : i32
      %447 = arith.muli %446, %c8_i32_347 : i32
      %448 = arith.index_cast %arg1 : i32 to index
      %c4_348 = arith.constant 4 : index
      %449 = memref.load %arg2[%448, %c4_348] : memref<2x8xi32, #tpu.memory_space<smem>>
      %450 = arith.addi %447, %449 : i32
      %c1_i32_349 = arith.constant 1 : i32
      %c1_i32_350 = arith.constant 1 : i32
      %c4_i32_351 = arith.constant 4 : i32
      %c4_i32_352 = arith.constant 4 : i32
      %c0_i32_353 = arith.constant 0 : i32
      %451 = tpu.memref_slice %arg8[%c1_i32_349, %c4_i32_352, %c0_i32_353] : memref<2x8x256xf32, #tpu.memory_space<vmem>> -> memref<1x1x256xf32, #tpu.memory_space<vmem>>
      %452 = tpu.memref_squeeze %451 : memref<1x1x256xf32, #tpu.memory_space<vmem>> -> memref<1x256xf32, #tpu.memory_space<vmem>>
      %c0_i32_354 = arith.constant 0 : i32
      %453 = tpu.memref_slice %arg6[%450, %c0_i32_354] : memref<32x256xf32, #tpu.memory_space<any>> -> memref<1x256xf32, #tpu.memory_space<any>>
      %454 = tpu.memref_slice %arg10[%c1_i32_350, %c4_i32_351] : memref<2x8x!tpu.dma_semaphore, #tpu.memory_space<semaphore_mem>> -> memref<1x1x!tpu.dma_semaphore, #tpu.memory_space<semaphore_mem>>
      %455 = tpu.memref_squeeze %454 : memref<1x1x!tpu.dma_semaphore, #tpu.memory_space<semaphore_mem>> -> memref<!tpu.dma_semaphore, #tpu.memory_space<semaphore_mem>>
      tpu.wait_dma2 semaphore(%455 : memref<!tpu.dma_semaphore, #tpu.memory_space<semaphore_mem>>) src(%452 : memref<1x256xf32, #tpu.memory_space<vmem>>) dst(%453 : memref<1x256xf32, #tpu.memory_space<any>>)
    } else {
    }
    %c5_i32_340 = arith.constant 5 : i32
    %437 = arith.cmpi sgt, %2, %c5_i32_340 : i32
    %438 = arith.extui %437 : i1 to i32
    %c0_i32_341 = arith.constant 0 : i32
    %439 = arith.cmpi ne, %438, %c0_i32_341 : i32
    scf.if %439 {
      %c1_i32_346 = arith.constant 1 : i32
      %446 = arith.addi %0, %c1_i32_346 : i32
      %c8_i32_347 = arith.constant 8 : i32
      %447 = arith.muli %446, %c8_i32_347 : i32
      %448 = arith.index_cast %arg1 : i32 to index
      %c5_348 = arith.constant 5 : index
      %449 = memref.load %arg2[%448, %c5_348] : memref<2x8xi32, #tpu.memory_space<smem>>
      %450 = arith.addi %447, %449 : i32
      %c1_i32_349 = arith.constant 1 : i32
      %c1_i32_350 = arith.constant 1 : i32
      %c5_i32_351 = arith.constant 5 : i32
      %c5_i32_352 = arith.constant 5 : i32
      %c0_i32_353 = arith.constant 0 : i32
      %451 = tpu.memref_slice %arg8[%c1_i32_349, %c5_i32_352, %c0_i32_353] : memref<2x8x256xf32, #tpu.memory_space<vmem>> -> memref<1x1x256xf32, #tpu.memory_space<vmem>>
      %452 = tpu.memref_squeeze %451 : memref<1x1x256xf32, #tpu.memory_space<vmem>> -> memref<1x256xf32, #tpu.memory_space<vmem>>
      %c0_i32_354 = arith.constant 0 : i32
      %453 = tpu.memref_slice %arg6[%450, %c0_i32_354] : memref<32x256xf32, #tpu.memory_space<any>> -> memref<1x256xf32, #tpu.memory_space<any>>
      %454 = tpu.memref_slice %arg10[%c1_i32_350, %c5_i32_351] : memref<2x8x!tpu.dma_semaphore, #tpu.memory_space<semaphore_mem>> -> memref<1x1x!tpu.dma_semaphore, #tpu.memory_space<semaphore_mem>>
      %455 = tpu.memref_squeeze %454 : memref<1x1x!tpu.dma_semaphore, #tpu.memory_space<semaphore_mem>> -> memref<!tpu.dma_semaphore, #tpu.memory_space<semaphore_mem>>
      tpu.wait_dma2 semaphore(%455 : memref<!tpu.dma_semaphore, #tpu.memory_space<semaphore_mem>>) src(%452 : memref<1x256xf32, #tpu.memory_space<vmem>>) dst(%453 : memref<1x256xf32, #tpu.memory_space<any>>)
    } else {
    }
    %c6_i32_342 = arith.constant 6 : i32
    %440 = arith.cmpi sgt, %2, %c6_i32_342 : i32
    %441 = arith.extui %440 : i1 to i32
    %c0_i32_343 = arith.constant 0 : i32
    %442 = arith.cmpi ne, %441, %c0_i32_343 : i32
    scf.if %442 {
      %c1_i32_346 = arith.constant 1 : i32
      %446 = arith.addi %0, %c1_i32_346 : i32
      %c8_i32_347 = arith.constant 8 : i32
      %447 = arith.muli %446, %c8_i32_347 : i32
      %448 = arith.index_cast %arg1 : i32 to index
      %c6_348 = arith.constant 6 : index
      %449 = memref.load %arg2[%448, %c6_348] : memref<2x8xi32, #tpu.memory_space<smem>>
      %450 = arith.addi %447, %449 : i32
      %c1_i32_349 = arith.constant 1 : i32
      %c1_i32_350 = arith.constant 1 : i32
      %c6_i32_351 = arith.constant 6 : i32
      %c6_i32_352 = arith.constant 6 : i32
      %c0_i32_353 = arith.constant 0 : i32
      %451 = tpu.memref_slice %arg8[%c1_i32_349, %c6_i32_352, %c0_i32_353] : memref<2x8x256xf32, #tpu.memory_space<vmem>> -> memref<1x1x256xf32, #tpu.memory_space<vmem>>
      %452 = tpu.memref_squeeze %451 : memref<1x1x256xf32, #tpu.memory_space<vmem>> -> memref<1x256xf32, #tpu.memory_space<vmem>>
      %c0_i32_354 = arith.constant 0 : i32
      %453 = tpu.memref_slice %arg6[%450, %c0_i32_354] : memref<32x256xf32, #tpu.memory_space<any>> -> memref<1x256xf32, #tpu.memory_space<any>>
      %454 = tpu.memref_slice %arg10[%c1_i32_350, %c6_i32_351] : memref<2x8x!tpu.dma_semaphore, #tpu.memory_space<semaphore_mem>> -> memref<1x1x!tpu.dma_semaphore, #tpu.memory_space<semaphore_mem>>
      %455 = tpu.memref_squeeze %454 : memref<1x1x!tpu.dma_semaphore, #tpu.memory_space<semaphore_mem>> -> memref<!tpu.dma_semaphore, #tpu.memory_space<semaphore_mem>>
      tpu.wait_dma2 semaphore(%455 : memref<!tpu.dma_semaphore, #tpu.memory_space<semaphore_mem>>) src(%452 : memref<1x256xf32, #tpu.memory_space<vmem>>) dst(%453 : memref<1x256xf32, #tpu.memory_space<any>>)
    } else {
    }
    %c7_i32_344 = arith.constant 7 : i32
    %443 = arith.cmpi sgt, %2, %c7_i32_344 : i32
    %444 = arith.extui %443 : i1 to i32
    %c0_i32_345 = arith.constant 0 : i32
    %445 = arith.cmpi ne, %444, %c0_i32_345 : i32
    scf.if %445 {
      %c1_i32_346 = arith.constant 1 : i32
      %446 = arith.addi %0, %c1_i32_346 : i32
      %c8_i32_347 = arith.constant 8 : i32
      %447 = arith.muli %446, %c8_i32_347 : i32
      %448 = arith.index_cast %arg1 : i32 to index
      %c7_348 = arith.constant 7 : index
      %449 = memref.load %arg2[%448, %c7_348] : memref<2x8xi32, #tpu.memory_space<smem>>
      %450 = arith.addi %447, %449 : i32
      %c1_i32_349 = arith.constant 1 : i32
      %c1_i32_350 = arith.constant 1 : i32
      %c7_i32_351 = arith.constant 7 : i32
      %c7_i32_352 = arith.constant 7 : i32
      %c0_i32_353 = arith.constant 0 : i32
      %451 = tpu.memref_slice %arg8[%c1_i32_349, %c7_i32_352, %c0_i32_353] : memref<2x8x256xf32, #tpu.memory_space<vmem>> -> memref<1x1x256xf32, #tpu.memory_space<vmem>>
      %452 = tpu.memref_squeeze %451 : memref<1x1x256xf32, #tpu.memory_space<vmem>> -> memref<1x256xf32, #tpu.memory_space<vmem>>
      %c0_i32_354 = arith.constant 0 : i32
      %453 = tpu.memref_slice %arg6[%450, %c0_i32_354] : memref<32x256xf32, #tpu.memory_space<any>> -> memref<1x256xf32, #tpu.memory_space<any>>
      %454 = tpu.memref_slice %arg10[%c1_i32_350, %c7_i32_351] : memref<2x8x!tpu.dma_semaphore, #tpu.memory_space<semaphore_mem>> -> memref<1x1x!tpu.dma_semaphore, #tpu.memory_space<semaphore_mem>>
      %455 = tpu.memref_squeeze %454 : memref<1x1x!tpu.dma_semaphore, #tpu.memory_space<semaphore_mem>> -> memref<!tpu.dma_semaphore, #tpu.memory_space<semaphore_mem>>
      tpu.wait_dma2 semaphore(%455 : memref<!tpu.dma_semaphore, #tpu.memory_space<semaphore_mem>>) src(%452 : memref<1x256xf32, #tpu.memory_space<vmem>>) dst(%453 : memref<1x256xf32, #tpu.memory_space<any>>)
    } else {
    }
    return
  }
  func.func @transform_1(%arg0: i32, %arg1: i32, %arg2: memref<2x8xi32, #tpu.memory_space<smem>>, %arg3: memref<2xi32, #tpu.memory_space<smem>>) -> i32 {
    %c0_i32 = arith.constant 0 : i32
    %c0_i32_0 = arith.constant 0 : i32
    return %c0_i32 : i32
  }
}

</mosaic_0001>

<bundles_post_ra>
// kernel: _lambda_.1
= control target key start
LH: loop header
LB: loop body
LE: loop exit
PB: predicated region body
PF: predicated region fallthrough
CT: control target
= control target key end

     0   :  { %s4069_s0 = inlined_call_operand.vmem [shape: s32[2,8], index: 0, kind: input, shape index: {}]   ;;  %s4070_s2 = inlined_call_operand.vmem [shape: f32[32,256], index: 2, kind: input, shape index: {}, may-alias: {2,4}]   ;;  %s4071_s3 = inlined_call_operand.vmem [shape: f32[2], index: 3, kind: input, shape index: {}]   ;;  %s4072_s4 = inlined_call_operand.vmem [shape: f32[32,256], index: 4, kind: output, shape index: {}, may-alias: {2,4}]   ;;  %s4073_s1 = inlined_call_operand.vmem [shape: s32[2], index: 1, kind: input, shape index: {}]  }
   0x1   :  { %4074 = sst [smem:[#allocation79_spill]] %s4071_s3  ;;  %s9_s17 = sshll.u32 %s4069_s0, 4  ;;  %s10_s17 = int_to_ptr.vmem [resolvable:$true] %s9_s17 }
   0x2   :  { %s13_s20 = sshll.u32 %s4073_s1, 4  ;;  %s3454_s21 = scalar_lea.vmem %s10_s17, 32  ;;  %s14_s20 = int_to_ptr.vmem [resolvable:$true] %s13_s20 }
   0x3   :  { %p3455_p0 = scmp.ne.s32.totalorder %s10_s17, %s3454_s21  ;;  %p3459_p1 = scmp.lt.s32.totalorder %s10_s17, %s10_s17 }
   0x4   :  { %p3460_p2 = scmp.lt.s32.totalorder %s3454_s21, %s3454_s21 }
   0x6   :  { %p3461_p3 = por %p3460_p2, %p3459_p1 }
   0x8   :  { %p3462_p4 = pnand %p3461_p3, %p3455_p0 }
   0xa   :  { %3465 = shalt.err (!%p3462_p4)  }
   0xb   :  { %s3635_s22 = smov [#allocation7]   ;;  %s3466_s23 = scalar_lea.vmem %s14_s20, 16 }
   0xc   :  { %12 = dma.vmem_to_smem %s10_s17, 32, %s3635_s22, [#allocation6] }
   0xd   :  { %p3467_p5 = scmp.ne.s32.totalorder %s14_s20, %s3466_s23  ;;  %p3471_p6 = scmp.lt.s32.totalorder %s14_s20, %s14_s20 }
   0xe   :  { %p3472_p7 = scmp.lt.s32.totalorder %s3466_s23, %s3466_s23 }
  0x10   :  { %p3473_p8 = por %p3472_p7, %p3471_p6 }
  0x12   :  { %p3474_p9 = pnand %p3473_p8, %p3467_p5 }
  0x14   :  { %3477 = shalt.err (!%p3474_p9)  }
  0x15   :  { %s3636_s0 = smov [#allocation8]  }
  0x16   :  { %16 = dma.vmem_to_smem %s14_s20, 16, %s3636_s0, [#allocation6] }
  0x17   :  { %3513 = dma.done.wait [#allocation6], 48 }
  0x18   :  { %3514 = vsyncadd [#allocation6], 4294967248 }
  0x19   :  { %18 = sfence }
  0x1a   :  { %19 = vsyncpa [#allocation10], 0  ;;  %s3670_s1 = smov 0   ;;  %s3672_s24 = smov 0  }
  0x1b   :  { %s3674_s25 = smov 0   ;;  %s3676_s26 = smov 0  }
  0x1c   :  { %s3678_s27 = smov 0  }
  0x1d LB: > { %s3231_s28 = sadd.s32 4294967295, %s3633_s27   ;;  %s31_s29 = sadd.s32 1, %s3625_s25  ;;  %s3633_s27 = sphi %s3678_s27, %s25_s27   ;;  %s3629_s26 = sphi %s3676_s26, %s4084_s26   ;;  %s3625_s25 = sphi %s3674_s25, %s4083_s25   ;;  %s3621_s24 = sphi %s3672_s24, %s4082_s24   ;;  %s3617_s1 = sphi %s3670_s1, %s4081_s1  }
  0x1e   : > { %p32_p10 = scmp.ge.s32.totalorder %s31_s29, 2  ;;  %s34_s30 = sadd.s32 1, %s3629_s26 }
  0x1f   : > { %p3233_p11 = scmp.lt.s32.totalorder %s3633_s27, 1  ;;  %p3383_p12 = scmp.ge.s32.totalorder %s3633_s27, 1 }
  0x20   : > { %s4086_s29 = smov (%p32_p10, %s31_s29), 0  ;;  %s4088_s30 = smov (!%p32_p10, %s34_s30), %s3629_s26 }
  0x21   : > { %4075 = sst [smem:[#allocation77_spill]] %s4086_s29  ;;  %p3703_p13 = scmp.eq.s32.totalorder %s3231_s28, 0 }
  0x22   : > { %p36_p0 = scmp.ge.s32.totalorder %s4088_s30, 2  ;;  %s4077_s3 = sld [smem:[#allocation79_spill]] }
  0x23   : > { %p3380_p1 = pnand %p3703_p13, %p3383_p12 }
  0x24   : > { %s4090_s30 = smov (%p36_p0, %s4088_s30), 0 }
  0x25   : > { %4078 = sst [smem:[#allocation78_spill]] %s4090_s30  ;;  %p3480_p3 = pneg %p3380_p1 }
  0x28   : > { %s64_s8 = sshll.u32 %s4077_s3, 4  ;;  %s65_s8 = int_to_ptr.vmem [resolvable:$true] %s64_s8 }
  0x29   : > { %s3478_s9 = scalar_lea.vmem %s65_s8, 16  ;;  %p3486_p6 = scmp.lt.s32.totalorder %s65_s8, %s65_s8 }
  0x2a   : > { %p3479_p2 = scmp.ne.s32.totalorder %s65_s8, %s3478_s9  ;;  %p3487_p7 = scmp.lt.s32.totalorder %s3478_s9, %s3478_s9 }
  0x2c   : > { %p3481_p4 = pnand %p3480_p3, %p3479_p2  ;;  %p3488_p8 = por %p3487_p7, %p3486_p6 }
  0x2e   : > { %p3482_p5 = pneg %p3481_p4 }
  0x30   : > { %p3489_p9 = pnand %p3488_p8, %p3482_p5 }
  0x32   : > { %3492 = shalt.err (!%p3489_p9)
}
  0x33   : > { %s3637_s10 = smov [#allocation9]   ;;  %75 = sbr.rel (%p3233_p11) target bundleno = 1271 (0x4f7), region = 24 }
  0x34   : > { %3382 = dma.vmem_to_smem (!%p3380_p1), %s65_s8, 16, %s3637_s10, [#allocation10]  }
  0x38   : > { %3516 = dma.done.wait (%p3703_p13), [#allocation10], 16  }
  0x39   : > { %3518 = vsyncadd (%p3703_p13), [#allocation10], 4294967280 }
  0x3a   : > { %81 = sfence }
  0x3b   : > { %s3721_s11 = sld [smem:[#allocation8 + %s3617_s1]]  ;;  %s3727_s13 = sshll.u32 %s3617_s1, 7 }
  0x3c   : > { %s3724_s12 = sld [smem:[#allocation9 + %s3617_s1]]  ;;  %s3731_s15 = sshll.u32 %s3621_s24, 4 }
  0x3d   : > { %s89_s14 = sld [smem:[#allocation7 + %s3727_s13]] }
  0x43   : > { %s90_s16 = sadd.s32 %s3731_s15, %s89_s14 }
  0x44   : > { %s91_s17 = sshrl.u32 %s90_s16, 3  ;;  %s92_s18 = sand.u32 7, %s90_s16  }
  0x45   : > { %s3241_s19 = sshll.u32 %s91_s17, 4 }
  0x46   : > { %s94_s20 = sadd.s32 %s3241_s19, %s92_s18 }
  0x47   : > { %s95_s23 = scalar_lea.vmem %s4070_s2, %s94_s20 }
  0x48   : > { %v114_v0 = vld [vmem:[%s95_s23] sm:$0x1]  ;;  %v116_v1 = vld [vmem:[%s95_s23 + $0x8] sm:$0x1] }
  0x49   : > { %115 = vst [vmem:[#allocation2] sm:$0x1] %v114_v0  ;;  %117 = vst [vmem:[#allocation2 + $0x8] sm:$0x1] %v116_v1 }
  0x4a   : > { %145 = vsyncadd [#allocation4], 32  ;;  %s3738_s0 = sadd.s32 1, %s3727_s13 }
  0x4b   : > { %s147_s1 = sld [smem:[#allocation7 + %s3738_s0]] }
  0x51   : > { %s148_s24 = sadd.s32 %s3731_s15, %s147_s1 }
  0x52   : > { %s149_s28 = sshrl.u32 %s148_s24, 3  ;;  %s150_s5 = sand.u32 7, %s148_s24  }
  0x53   : > { %s3242_s6 = sshll.u32 %s149_s28, 4 }
  0x54   : > { %s152_s7 = sadd.s32 %s3242_s6, %s150_s5 }
  0x55   : > { %s153_s10 = scalar_lea.vmem %s4070_s2, %s152_s7 }
  0x56   : > { %v174_v2 = vld [vmem:[%s153_s10] sm:$0x1]  ;;  %v176_v3 = vld [vmem:[%s153_s10 + $0x8] sm:$0x1] }
  0x57   : > { %175 = vst [vmem:[#allocation2 + $0x1] sm:$0x1] %v174_v2  ;;  %177 = vst [vmem:[#allocation2 + $0x9] sm:$0x1] %v176_v3 }
  0x58   : > { %205 = vsyncadd [#allocation4 + $0x1], 32  ;;  %s3746_s14 = sadd.s32 2, %s3727_s13 }
  0x59   : > { %s207_s16 = sld [smem:[#allocation7 + %s3746_s14]] }
  0x5f   : > { %s208_s17 = sadd.s32 %s3731_s15, %s207_s16 }
  0x60   : > { %s209_s18 = sshrl.u32 %s208_s17, 3  ;;  %s210_s19 = sand.u32 7, %s208_s17  }
  0x61   : > { %s3243_s20 = sshll.u32 %s209_s18, 4 }
  0x62   : > { %s212_s21 = sadd.s32 %s3243_s20, %s210_s19 }
  0x63   : > { %s213_s1 = scalar_lea.vmem %s4070_s2, %s212_s21 }
  0x64   : > { %v234_v4 = vld [vmem:[%s213_s1] sm:$0x1]  ;;  %v236_v5 = vld [vmem:[%s213_s1 + $0x8] sm:$0x1] }
  0x65   : > { %235 = vst [vmem:[#allocation2 + $0x2] sm:$0x1] %v234_v4  ;;  %237 = vst [vmem:[#allocation2 + $0xa] sm:$0x1] %v236_v5 }
  0x66   : > { %265 = vsyncadd [#allocation4 + $0x2], 32  ;;  %s3754_s24 = sadd.s32 3, %s3727_s13 }
  0x67   : > { %s267_s28 = sld [smem:[#allocation7 + %s3754_s24]] }
  0x6d   : > { %s268_s5 = sadd.s32 %s3731_s15, %s267_s28 }
  0x6e   : > { %s269_s6 = sshrl.u32 %s268_s5, 3  ;;  %s270_s7 = sand.u32 7, %s268_s5  }
  0x6f   : > { %s3244_s8 = sshll.u32 %s269_s6, 4 }
  0x70   : > { %s272_s9 = sadd.s32 %s3244_s8, %s270_s7 }
  0x71   : > { %s273_s17 = scalar_lea.vmem %s4070_s2, %s272_s9 }
  0x72   : > { %v294_v6 = vld [vmem:[%s273_s17] sm:$0x1]  ;;  %v296_v7 = vld [vmem:[%s273_s17 + $0x8] sm:$0x1] }
  0x73   : > { %295 = vst [vmem:[#allocation2 + $0x3] sm:$0x1] %v294_v6  ;;  %297 = vst [vmem:[#allocation2 + $0xb] sm:$0x1] %v296_v7 }
  0x74   : > { %325 = vsyncadd [#allocation4 + $0x3], 32  ;;  %s3762_s18 = sadd.s32 4, %s3727_s13 }
  0x75   : > { %s327_s19 = sld [smem:[#allocation7 + %s3762_s18]] }
  0x7b   : > { %s328_s20 = sadd.s32 %s3731_s15, %s327_s19 }
  0x7c   : > { %s329_s21 = sshrl.u32 %s328_s20, 3  ;;  %s330_s22 = sand.u32 7, %s328_s20  }
  0x7d   : > { %s3245_s23 = sshll.u32 %s329_s21, 4 }
  0x7e   : > { %s332_s1 = sadd.s32 %s3245_s23, %s330_s22 }
  0x7f   : > { %s333_s6 = scalar_lea.vmem %s4070_s2, %s332_s1 }
  0x80   : > { %v354_v8 = vld [vmem:[%s333_s6] sm:$0x1]  ;;  %v356_v9 = vld [vmem:[%s333_s6 + $0x8] sm:$0x1] }
  0x81   : > { %355 = vst [vmem:[#allocation2 + $0x4] sm:$0x1] %v354_v8  ;;  %357 = vst [vmem:[#allocation2 + $0xc] sm:$0x1] %v356_v9 }
  0x82   : > { %385 = vsyncadd [#allocation4 + $0x4], 32  ;;  %s3770_s7 = sadd.s32 5, %s3727_s13 }
  0x83   : > { %s387_s8 = sld [smem:[#allocation7 + %s3770_s7]] }
  0x89   : > { %s388_s9 = sadd.s32 %s3731_s15, %s387_s8 }
  0x8a   : > { %s389_s10 = sshrl.u32 %s388_s9, 3  ;;  %s390_s16 = sand.u32 7, %s388_s9  }
  0x8b   : > { %s3246_s17 = sshll.u32 %s389_s10, 4 }
  0x8c   : > { %s392_s19 = sadd.s32 %s3246_s17, %s390_s16 }
  0x8d   : > { %s393_s22 = scalar_lea.vmem %s4070_s2, %s392_s19 }
  0x8e   : > { %v414_v10 = vld [vmem:[%s393_s22] sm:$0x1]  ;;  %v416_v11 = vld [vmem:[%s393_s22 + $0x8] sm:$0x1] }
  0x8f   : > { %415 = vst [vmem:[#allocation2 + $0x5] sm:$0x1] %v414_v10  ;;  %417 = vst [vmem:[#allocation2 + $0xd] sm:$0x1] %v416_v11 }
  0x90   : > { %445 = vsyncadd [#allocation4 + $0x5], 32  ;;  %s3778_s23 = sadd.s32 6, %s3727_s13 }
  0x91   : > { %s447_s1 = sld [smem:[#allocation7 + %s3778_s23]] }
  0x97   : > { %s448_s28 = sadd.s32 %s3731_s15, %s447_s1 }
  0x98   : > { %s449_s5 = sshrl.u32 %s448_s28, 3  ;;  %s450_s6 = sand.u32 7, %s448_s28  }
  0x99   : > { %s3247_s8 = sshll.u32 %s449_s5, 4 }
  0x9a   : > { %s452_s9 = sadd.s32 %s3247_s8, %s450_s6 }
  0x9b   : > { %s453_s17 = scalar_lea.vmem %s4070_s2, %s452_s9 }
  0x9c   : > { %v474_v12 = vld [vmem:[%s453_s17] sm:$0x1]  ;;  %v476_v13 = vld [vmem:[%s453_s17 + $0x8] sm:$0x1] }
  0x9d   : > { %475 = vst [vmem:[#allocation2 + $0x6] sm:$0x1] %v474_v12  ;;  %477 = vst [vmem:[#allocation2 + $0xe] sm:$0x1] %v476_v13 }
  0x9e   : > { %505 = vsyncadd [#allocation4 + $0x6], 32  ;;  %s3786_s19 = sadd.s32 7, %s3727_s13 }
  0x9f   : > { %s507_s20 = sld [smem:[#allocation7 + %s3786_s19]] }
  0xa5   : > { %s508_s21 = sadd.s32 %s3731_s15, %s507_s20 }
  0xa6   : > { %s509_s22 = sshrl.u32 %s508_s21, 3  ;;  %s510_s1 = sand.u32 7, %s508_s21  }
  0xa7   : > { %s3248_s28 = sshll.u32 %s509_s22, 4 }
  0xa8   : > { %s512_s5 = sadd.s32 %s3248_s28, %s510_s1 }
  0xa9   : > { %s513_s9 = scalar_lea.vmem %s4070_s2, %s512_s5 }
  0xaa   : > { %v534_v14 = vld [vmem:[%s513_s9] sm:$0x1]  ;;  %v536_v15 = vld [vmem:[%s513_s9 + $0x8] sm:$0x1] }
  0xab   : > { %535 = vst [vmem:[#allocation2 + $0x7] sm:$0x1] %v534_v14  ;;  %537 = vst [vmem:[#allocation2 + $0xf] sm:$0x1] %v536_v15 }
  0xac   : > { %565 = vsyncadd [#allocation4 + $0x7], 32  ;;  %s568_s10 = sld [smem:[#allocation7 + %s3727_s13]]  ;;  %s3795_s16 = sadd.s32 8, %s3731_s15 }
  0xb2   : > { %s569_s17 = sadd.s32 %s3795_s16, %s568_s10 }
  0xb3   : > { %s570_s20 = sshrl.u32 %s569_s17, 3  ;;  %s571_s21 = sand.u32 7, %s569_s17  }
  0xb4   : > { %s3250_s22 = sshll.u32 %s570_s20, 4 }
  0xb5   : > { %s573_s1 = sadd.s32 %s3250_s22, %s571_s21 }
  0xb6   : > { %s574_s5 = scalar_lea.vmem %s4070_s2, %s573_s1 }
  0xb7   : > { %v595_v16 = vld [vmem:[%s574_s5] sm:$0x1]  ;;  %v597_v17 = vld [vmem:[%s574_s5 + $0x8] sm:$0x1] }
  0xb8   : > { %596 = vst [vmem:[#allocation2 + $0x10] sm:$0x1] %v595_v16  ;;  %598 = vst [vmem:[#allocation2 + $0x18] sm:$0x1] %v597_v17 }
  0xb9   : > { %626 = vsyncadd [#allocation4 + $0x8], 32  ;;  %s627_s6 = sld [smem:[#allocation7 + %s3738_s0]] }
  0xbf   : > { %s628_s8 = sadd.s32 %s3795_s16, %s627_s6 }
  0xc0   : > { %s629_s9 = sshrl.u32 %s628_s8, 3  ;;  %s630_s30 = sand.u32 7, %s628_s8  }
  0xc1   : > { %s3251_s10 = sshll.u32 %s629_s9, 4 }
  0xc2   : > { %s632_s29 = sadd.s32 %s3251_s10, %s630_s30 }
  0xc3   : > { %s633_s21 = scalar_lea.vmem %s4070_s2, %s632_s29 }
  0xc4   : > { %v654_v18 = vld [vmem:[%s633_s21] sm:$0x1]  ;;  %v656_v19 = vld [vmem:[%s633_s21 + $0x8] sm:$0x1] }
  0xc5   : > { %655 = vst [vmem:[#allocation2 + $0x11] sm:$0x1] %v654_v18  ;;  %657 = vst [vmem:[#allocation2 + $0x19] sm:$0x1] %v656_v19 }
  0xc6   : > { %685 = vsyncadd [#allocation4 + $0x9], 32  ;;  %s686_s3 = sld [smem:[#allocation7 + %s3746_s14]] }
  0xcc   : > { %s687_s22 = sadd.s32 %s3795_s16, %s686_s3 }
  0xcd   : > { %s688_s1 = sshrl.u32 %s687_s22, 3  ;;  %s689_s28 = sand.u32 7, %s687_s22  }
  0xce   : > { %s3252_s5 = sshll.u32 %s688_s1, 4 }
  0xcf   : > { %s691_s6 = sadd.s32 %s3252_s5, %s689_s28 }
  0xd0   : > { %s692_s30 = scalar_lea.vmem %s4070_s2, %s691_s6 }
  0xd1   : > { %v713_v20 = vld [vmem:[%s692_s30] sm:$0x1]  ;;  %v715_v21 = vld [vmem:[%s692_s30 + $0x8] sm:$0x1] }
  0xd2   : > { %714 = vst [vmem:[#allocation2 + $0x12] sm:$0x1] %v713_v20  ;;  %716 = vst [vmem:[#allocation2 + $0x1a] sm:$0x1] %v715_v21 }
  0xd3   : > { %744 = vsyncadd [#allocation4 + $0xa], 32  ;;  %s745_s29 = sld [smem:[#allocation7 + %s3754_s24]] }
  0xd9   : > { %s746_s10 = sadd.s32 %s3795_s16, %s745_s29 }
  0xda   : > { %s747_s17 = sshrl.u32 %s746_s10, 3  ;;  %s748_s20 = sand.u32 7, %s746_s10  }
  0xdb   : > { %s3253_s21 = sshll.u32 %s747_s17, 4 }
  0xdc   : > { %s750_s3 = sadd.s32 %s3253_s21, %s748_s20 }
  0xdd   : > { %s751_s28 = scalar_lea.vmem %s4070_s2, %s750_s3 }
  0xde   : > { %v772_v22 = vld [vmem:[%s751_s28] sm:$0x1]  ;;  %v774_v23 = vld [vmem:[%s751_s28 + $0x8] sm:$0x1] }
  0xdf   : > { %773 = vst [vmem:[#allocation2 + $0x13] sm:$0x1] %v772_v22  ;;  %775 = vst [vmem:[#allocation2 + $0x1b] sm:$0x1] %v774_v23 }
  0xe0   : > { %803 = vsyncadd [#allocation4 + $0xb], 32  ;;  %s804_s5 = sld [smem:[#allocation7 + %s3762_s18]] }
  0xe6   : > { %s805_s6 = sadd.s32 %s3795_s16, %s804_s5 }
  0xe7   : > { %s806_s8 = sshrl.u32 %s805_s6, 3  ;;  %s807_s9 = sand.u32 7, %s805_s6  }
  0xe8   : > { %s3254_s30 = sshll.u32 %s806_s8, 4 }
  0xe9   : > { %s809_s29 = sadd.s32 %s3254_s30, %s807_s9 }
  0xea   : > { %s810_s20 = scalar_lea.vmem %s4070_s2, %s809_s29 }
  0xeb   : > { %v831_v24 = vld [vmem:[%s810_s20] sm:$0x1]  ;;  %v833_v25 = vld [vmem:[%s810_s20 + $0x8] sm:$0x1] }
  0xec   : > { %832 = vst [vmem:[#allocation2 + $0x14] sm:$0x1] %v831_v24  ;;  %834 = vst [vmem:[#allocation2 + $0x1c] sm:$0x1] %v833_v25 }
  0xed   : > { %862 = vsyncadd [#allocation4 + $0xc], 32  ;;  %s863_s21 = sld [smem:[#allocation7 + %s3770_s7]] }
  0xf3   : > { %s864_s3 = sadd.s32 %s3795_s16, %s863_s21 }
  0xf4   : > { %s865_s22 = sshrl.u32 %s864_s3, 3  ;;  %s866_s1 = sand.u32 7, %s864_s3  }
  0xf5   : > { %s3255_s28 = sshll.u32 %s865_s22, 4 }
  0xf6   : > { %s868_s5 = sadd.s32 %s3255_s28, %s866_s1 }
  0xf7   : > { %s869_s9 = scalar_lea.vmem %s4070_s2, %s868_s5 }
  0xf8   : > { %v890_v26 = vld [vmem:[%s869_s9] sm:$0x1]  ;;  %v892_v27 = vld [vmem:[%s869_s9 + $0x8] sm:$0x1] }
  0xf9   : > { %891 = vst [vmem:[#allocation2 + $0x15] sm:$0x1] %v890_v26  ;;  %893 = vst [vmem:[#allocation2 + $0x1d] sm:$0x1] %v892_v27 }
  0xfa   : > { %921 = vsyncadd [#allocation4 + $0xd], 32  ;;  %s922_s30 = sld [smem:[#allocation7 + %s3778_s23]] }
 0x100   : > { %s923_s29 = sadd.s32 %s3795_s16, %s922_s30 }
 0x101   : > { %s924_s10 = sshrl.u32 %s923_s29, 3  ;;  %s925_s17 = sand.u32 7, %s923_s29  }
 0x102   : > { %s3256_s20 = sshll.u32 %s924_s10, 4 }
 0x103   : > { %s927_s21 = sadd.s32 %s3256_s20, %s925_s17 }
 0x104   : > { %s928_s1 = scalar_lea.vmem %s4070_s2, %s927_s21 }
 0x105   : > { %v949_v28 = vld [vmem:[%s928_s1] sm:$0x1]  ;;  %v951_v29 = vld [vmem:[%s928_s1 + $0x8] sm:$0x1] }
 0x106   : > { %950 = vst [vmem:[#allocation2 + $0x16] sm:$0x1] %v949_v28  ;;  %952 = vst [vmem:[#allocation2 + $0x1e] sm:$0x1] %v951_v29 }
 0x107   : > { %980 = vsyncadd [#allocation4 + $0xe], 32  ;;  %s981_s28 = sld [smem:[#allocation7 + %s3786_s19]] }
 0x10d   : > { %s982_s5 = sadd.s32 %s3795_s16, %s981_s28 }
 0x10e   : > { %s983_s6 = sshrl.u32 %s982_s5, 3  ;;  %s984_s8 = sand.u32 7, %s982_s5  }
 0x10f   : > { %s3257_s9 = sshll.u32 %s983_s6, 4 }
 0x110   : > { %s986_s30 = sadd.s32 %s3257_s9, %s984_s8 }
 0x111   : > { %s987_s17 = scalar_lea.vmem %s4070_s2, %s986_s30 }
 0x112   : > { %v1008_v30 = vld [vmem:[%s987_s17] sm:$0x1]  ;;  %v1010_v31 = vld [vmem:[%s987_s17 + $0x8] sm:$0x1] }
 0x113   : > { %1009 = vst [vmem:[#allocation2 + $0x17] sm:$0x1] %v1008_v30  ;;  %1011 = vst [vmem:[#allocation2 + $0x1f] sm:$0x1] %v1010_v31 }
 0x114   : > { %1039 = vsyncadd [#allocation4 + $0xf], 32 }
 0x115   : > { %3519 = dma.done.wait [#allocation4], 32 }
 0x116   : > { %3520 = vsyncadd [#allocation4], 4294967264 }
 0x117   : > { %3521 = dma.done.wait [#allocation4 + $0x1], 32 }
 0x118   : > { %3522 = vsyncadd [#allocation4 + $0x1], 4294967264 }
 0x119   : > { %3523 = dma.done.wait [#allocation4 + $0x2], 32 }
 0x11a   : > { %3524 = vsyncadd [#allocation4 + $0x2], 4294967264 }
 0x11b   : > { %3525 = dma.done.wait [#allocation4 + $0x3], 32 }
 0x11c   : > { %3526 = vsyncadd [#allocation4 + $0x3], 4294967264 }
 0x11d   : > { %3527 = dma.done.wait [#allocation4 + $0x4], 32 }
 0x11e   : > { %3528 = vsyncadd [#allocation4 + $0x4], 4294967264 }
 0x11f   : > { %3529 = dma.done.wait [#allocation4 + $0x5], 32 }
 0x120   : > { %3530 = vsyncadd [#allocation4 + $0x5], 4294967264 }
 0x121   : > { %3531 = dma.done.wait [#allocation4 + $0x6], 32 }
 0x122   : > { %3532 = vsyncadd [#allocation4 + $0x6], 4294967264 }
 0x123   : > { %3533 = dma.done.wait [#allocation4 + $0x7], 32 }
 0x124   : > { %3534 = vsyncadd [#allocation4 + $0x7], 4294967264 }
 0x125   : > { %3535 = dma.done.wait [#allocation4 + $0x8], 32 }
 0x126   : > { %3536 = vsyncadd [#allocation4 + $0x8], 4294967264 }
 0x127   : > { %3537 = dma.done.wait [#allocation4 + $0x9], 32 }
 0x128   : > { %3538 = vsyncadd [#allocation4 + $0x9], 4294967264 }
 0x129   : > { %3539 = dma.done.wait [#allocation4 + $0xa], 32 }
 0x12a   : > { %3540 = vsyncadd [#allocation4 + $0xa], 4294967264 }
 0x12b   : > { %3541 = dma.done.wait [#allocation4 + $0xb], 32 }
 0x12c   : > { %3542 = vsyncadd [#allocation4 + $0xb], 4294967264 }
 0x12d   : > { %3543 = dma.done.wait [#allocation4 + $0xc], 32 }
 0x12e   : > { %3544 = vsyncadd [#allocation4 + $0xc], 4294967264 }
 0x12f   : > { %3545 = dma.done.wait [#allocation4 + $0xd], 32 }
 0x130   : > { %3546 = vsyncadd [#allocation4 + $0xd], 4294967264 }
 0x131   : > { %3547 = dma.done.wait [#allocation4 + $0xe], 32 }
 0x132   : > { %3548 = vsyncadd [#allocation4 + $0xe], 4294967264 }
 0x133   : > { %3549 = dma.done.wait [#allocation4 + $0xf], 32 }
 0x134   : > { %3550 = vsyncadd [#allocation4 + $0xf], 4294967264  ;;  %v3836_v32 = vld [vmem:[#allocation2 + $0x8] sm:$0xff]  ;;  %v1089_v33 = vld [vmem:[#allocation2] sm:$0xff]  ;;  %v1233_v36 = vlaneseq  ;;  %v1235_v38 = vstv %s3721_s11  ;;  %vm1241_vm1 = vcmask 64512   ;;  %v3638_v57 = vmov 0.0  }
 0x135   : > { %v3838_v34 = vld [vmem:[#allocation2 + $0x18] sm:$0xff]  ;;  %1123 = vmatprep.subr.mxu0 %v3836_v32  ;;  %v3842_v35 = vld [vmem:[#allocation2 + $0x10] sm:$0xff]  ;;  %1157 = vmatprep.mubr.f32.mxu0 %v3836_v32  ;;  %v1412_v0 = vstv %s3724_s12  ;;  %p3260_p10 = scmp.le.s32.totalorder %s3721_s11, 0 }
 0x136   : > { %1193 = vmatprep.subr.mxu1 %v3838_v34  ;;  %1124 = vmatpush1.xpose.msra.mxu0 %v1089_v33  ;;  %v1234_v37 = vand.u32 127, %v1233_v36  ;;  %s1429_s12 = sld [smem:[#allocation7 + %s3727_s13]] (!%p3260_p10) }
 0x137   : > { %1194 = vmatpush1.xpose.msra.mxu1 %v3842_v35  ;;  %1227 = vmatprep.mubr.f32.mxu1 %v3838_v34 }
 0x138   : > { %1297 = vmatprep.subr.mxu0 %v3836_v32  ;;  %1371 = vmatprep.subr.mxu1 %v3838_v34  ;;  %vm1236_vm0 = vcmp.lt.s32.totalorder %v1234_v37, %v1235_v38 }
 0x139   : > { %1158 = vmatmul.mubr.f32.vlgmr.msra.gmra.mxu0 %v1089_v33 }
 0x13a   : > { %1228 = vmatmul.mubr.f32.vlgmr.msra.gmra.mxu1 %v3842_v35  ;;  %1298 = vmatpush1.msra.mxu0 %v1089_v33 }
 0x13b   : > { %1372 = vmatpush1.msra.mxu1 %v3842_v35  ;;  %1331 = vmatprep.mubr.f32.mxu0 %v3638_v57 }
 0x13c   : > { %1405 = vmatprep.mubr.f32.mxu1 %v3638_v57  ;;  %s1430_s20 = sadd.s32 (!%p3260_p10), %s3731_s15, %s1429_s12 }
 0x13d   : > { %s1431_s21 = sshrl.u32 (!%p3260_p10), %s1430_s20, 3  ;;  %s1432_s3 = sand.u32 (!%p3260_p10), 7, %s1430_s20  }
 0x13e   : > { %s3261_s22 = sshll.u32 (!%p3260_p10), %s1431_s21, 4 }
 0x13f   : > { %s1434_s1 = sadd.s32 (!%p3260_p10), %s3261_s22, %s1432_s3 }
 0x140   : > { %s1435_s6 = scalar_lea.vmem (!%p3260_p10), %s4072_s4, %s1434_s1 }
 0x1f9   : > { %v1159_v39 = vpop.f32.mrf.mxu0 }
 0x1fa   : > { %v1239_v40 = vsel %vm1236_vm0, %v1159_v39, 1e+30  ;;  %v1229_v41 = vpop.f32.mrf.mxu1 }
 0x1fb   : > { %v1161_v42 = vpop.f32.mrf.mxu0  ;;  %v1240_v43 = vsel %vm1236_vm0, %v1229_v41, 1e+30  ;;  %v1242_v44 = vsel %vm1241_vm1, %v1239_v40, inf }
 0x1fc   : > { %1243 = vmin.xlane.f32.xlu0 %v1242_v44  ;;  %v1231_v45 = vpop.f32.mrf.mxu1  ;;  %v1245_v46 = vsel %vm1241_vm1, %v1240_v43, inf }
 0x200   : > { %1246 = vmin.xlane.f32.xlu0 %v1245_v46 }
 0x285   : > { %v1244_v47 = vpop.xlane.xlu0 %1243 }
 0x286   : > { %v1248_v48 = vsub.f32 %v1244_v47, %v1239_v40 }
 0x288   : > { %v1250_v49 = vmul.f32 1.442695, %v1248_v48 }
 0x289   : > { %v1247_v50 = vpop.xlane.xlu0 %1246 }
 0x28a   : > { %3446 = vpow2.f32 %v1250_v49  ;;  %v1249_v51 = vsub.f32 %v1247_v50, %v1240_v43 }
 0x28c   : > { %v1252_v52 = vmul.f32 1.442695, %v1249_v51 }
 0x28e   : > { %3448 = vpow2.f32 %v1252_v52 }
 0x297   : > { %v3447_v53 = vpop.eup %3446 }
 0x298   : > { %v1254_v54 = vsel %vm1241_vm1, %v3447_v53, 0.0 }
 0x299   : > { %1255 = vadd.xlane.f32.xlu1 %v1254_v54 }
 0x29b   : > { %v3449_v55 = vpop.eup %3448 }
 0x29c   : > { %v1257_v56 = vsel %vm1241_vm1, %v3449_v55, 0.0 }
 0x29d   : > { %1258 = vadd.xlane.f32.xlu1 %v1257_v56 }
 0x322   : > { %v1256_v58 = vpop.xlane.xlu1 %1255 }
 0x323   : > { %3450 = vrcp.f32 %v1256_v58 }
 0x326   : > { %v1259_v59 = vpop.xlane.xlu1 %1258 }
 0x327   : > { %3452 = vrcp.f32 %v1259_v59 }
 0x330   : > { %v3451_v60 = vpop.eup %3450 }
 0x331   : > { %v1262_v61 = vmul.f32 %v3451_v60, %v3447_v53 }
 0x333   : > { %3258 = vmatmul.mubr.msk.f32.vlgmr.msra.gmra.mxu0 %vm1241_vm1, %v1262_v61 }
 0x334   : > { %v3453_v62 = vpop.eup %3452 }
 0x335   : > { %v1263_v63 = vmul.f32 %v3453_v62, %v3449_v55 }
 0x337   : > { %3259 = vmatmul.mubr.msk.f32.vlgmr.msra.gmra.mxu1 %vm1241_vm1, %v1263_v63 }
 0x3f3   : > { %v1333_v1 = vpop.f32.mrf.mxu0 }
 0x3f4   : > { %v1413_v2 = vmul.f32 %v1412_v0, %v1333_v1 }
 0x3f5   : > { %v1335_v3 = vpop.f32.mrf.mxu0 }
 0x3f6   : > { %v1417_v4 = vadd.f32 %v1413_v2, %v1089_v33  ;;  %v1414_v5 = vmul.f32 %v1412_v0, %v1335_v3 }
 0x3f7   : > { %v1407_v6 = vpop.f32.mrf.mxu1 }
 0x3f8   : > { %1421 = vst [vmem:[#allocation3] sm:$0xff] %v1417_v4  ;;  %v1418_v7 = vadd.f32 %v1414_v5, %v3836_v32  ;;  %v1415_v8 = vmul.f32 %v1412_v0, %v1407_v6 }
 0x3f9   : > { %v1409_v9 = vpop.f32.mrf.mxu1 }
 0x3fa   : > { %1422 = vst [vmem:[#allocation3 + $0x8] sm:$0xff] %v1418_v7  ;;  %v1419_v10 = vadd.f32 %v1415_v8, %v3842_v35  ;;  %v1416_v11 = vmul.f32 %v1412_v0, %v1409_v9  ;;  %1428 = sbr.rel (%p3260_p10) target bundleno = 1028 (0x404), region = 512 }
 0x3fc   : > { %1423 = vst [vmem:[#allocation3 + $0x10] sm:$0xff] %v1419_v10  ;;  %v1420_v12 = vadd.f32 %v1416_v11, %v3838_v34 }
 0x3fe   : > { %1424 = vst [vmem:[#allocation3 + $0x18] sm:$0xff] %v1420_v12 }
 0x3ff   : > { %v1454_v13 = vld [vmem:[#allocation3] sm:$0x1] }
 0x400   : > { %1455 = vst [vmem:[%s1435_s6] sm:$0x1] %v1454_v13 }
 0x401   : > { %v1456_v14 = vld [vmem:[#allocation3 + $0x8] sm:$0x1] }
 0x402   : > { %1457 = vst [vmem:[%s1435_s6 + $0x8] sm:$0x1] %v1456_v14 }
 0x403   : > { %1485 = vsyncadd [#allocation5], 32 }
 0x404 PF: > { %p3262_p11 = scmp.le.s32.totalorder %s3721_s11, 1 }
 0x405   : > { %s1490_s8 = sld [smem:[#allocation7 + %s3738_s0]] (!%p3262_p11) }
 0x406   : > { %1489 = sbr.rel (%p3262_p11) target bundleno = 1042 (0x412), region = 546 }
 0x40b   : > { %s1491_s9 = sadd.s32 %s3731_s15, %s1490_s8  ;;  %v1517_v15 = vld [vmem:[#allocation3 + $0x1] sm:$0x1]  ;;  %v1519_v16 = vld [vmem:[#allocation3 + $0x9] sm:$0x1] }
 0x40c   : > { %s1493_s30 = sshrl.u32 %s1491_s9, 3  ;;  %s1494_s29 = sand.u32 7, %s1491_s9  }
 0x40d   : > { %s3263_s10 = sshll.u32 %s1493_s30, 4 }
 0x40e   : > { %s1496_s17 = sadd.s32 %s3263_s10, %s1494_s29 }
 0x40f   : > { %s1497_s21 = scalar_lea.vmem %s4072_s4, %s1496_s17 }
 0x410   : > { %1518 = vst [vmem:[%s1497_s21] sm:$0x1] %v1517_v15  ;;  %1520 = vst [vmem:[%s1497_s21 + $0x8] sm:$0x1] %v1519_v16 }
 0x411   : > { %1548 = vsyncadd [#allocation5 + $0x1], 32 }
 0x412 PF: > { %p3264_p12 = scmp.le.s32.totalorder %s3721_s11, 2 }
 0x413   : > { %s1553_s3 = sld [smem:[#allocation7 + %s3746_s14]] (!%p3264_p12) }
 0x414   : > { %1552 = sbr.rel (%p3264_p12) target bundleno = 1056 (0x420), region = 580 }
 0x419   : > { %s1554_s22 = sadd.s32 %s3731_s15, %s1553_s3  ;;  %v1580_v17 = vld [vmem:[#allocation3 + $0x2] sm:$0x1]  ;;  %v1582_v18 = vld [vmem:[#allocation3 + $0xa] sm:$0x1] }
 0x41a   : > { %s1556_s1 = sshrl.u32 %s1554_s22, 3  ;;  %s1557_s28 = sand.u32 7, %s1554_s22  }
 0x41b   : > { %s3265_s5 = sshll.u32 %s1556_s1, 4 }
 0x41c   : > { %s1559_s6 = sadd.s32 %s3265_s5, %s1557_s28 }
 0x41d   : > { %s1560_s30 = scalar_lea.vmem %s4072_s4, %s1559_s6 }
 0x41e   : > { %1581 = vst [vmem:[%s1560_s30] sm:$0x1] %v1580_v17  ;;  %1583 = vst [vmem:[%s1560_s30 + $0x8] sm:$0x1] %v1582_v18 }
 0x41f   : > { %1611 = vsyncadd [#allocation5 + $0x2], 32 }
 0x420 PF: > { %p3266_p13 = scmp.le.s32.totalorder %s3721_s11, 3 }
 0x421   : > { %s1616_s29 = sld [smem:[#allocation7 + %s3754_s24]] (!%p3266_p13) }
 0x422   : > { %1615 = sbr.rel (%p3266_p13) target bundleno = 1070 (0x42e), region = 614 }
 0x427   : > { %s1617_s10 = sadd.s32 %s3731_s15, %s1616_s29  ;;  %v1643_v19 = vld [vmem:[#allocation3 + $0x3] sm:$0x1]  ;;  %v1645_v20 = vld [vmem:[#allocation3 + $0xb] sm:$0x1] }
 0x428   : > { %s1619_s17 = sshrl.u32 %s1617_s10, 3  ;;  %s1620_s12 = sand.u32 7, %s1617_s10  }
 0x429   : > { %s3267_s20 = sshll.u32 %s1619_s17, 4 }
 0x42a   : > { %s1622_s21 = sadd.s32 %s3267_s20, %s1620_s12 }
 0x42b   : > { %s1623_s1 = scalar_lea.vmem %s4072_s4, %s1622_s21 }
 0x42c   : > { %1644 = vst [vmem:[%s1623_s1] sm:$0x1] %v1643_v19  ;;  %1646 = vst [vmem:[%s1623_s1 + $0x8] sm:$0x1] %v1645_v20 }
 0x42d   : > { %1674 = vsyncadd [#allocation5 + $0x3], 32 }
 0x42e PF: > { %p3268_p0 = scmp.le.s32.totalorder %s3721_s11, 4 }
 0x42f   : > { %s1679_s28 = sld [smem:[#allocation7 + %s3762_s18]] (!%p3268_p0) }
 0x430   : > { %1678 = sbr.rel (%p3268_p0) target bundleno = 1084 (0x43c), region = 648 }
 0x435   : > { %s1680_s5 = sadd.s32 %s3731_s15, %s1679_s28  ;;  %v1706_v21 = vld [vmem:[#allocation3 + $0x4] sm:$0x1]  ;;  %v1708_v22 = vld [vmem:[#allocation3 + $0xc] sm:$0x1] }
 0x436   : > { %s1682_s6 = sshrl.u32 %s1680_s5, 3  ;;  %s1683_s8 = sand.u32 7, %s1680_s5  }
 0x437   : > { %s3269_s9 = sshll.u32 %s1682_s6, 4 }
 0x438   : > { %s1685_s30 = sadd.s32 %s3269_s9, %s1683_s8 }
 0x439   : > { %s1686_s17 = scalar_lea.vmem %s4072_s4, %s1685_s30 }
 0x43a   : > { %1707 = vst [vmem:[%s1686_s17] sm:$0x1] %v1706_v21  ;;  %1709 = vst [vmem:[%s1686_s17 + $0x8] sm:$0x1] %v1708_v22 }
 0x43b   : > { %1737 = vsyncadd [#allocation5 + $0x4], 32 }
 0x43c PF: > { %p3270_p1 = scmp.le.s32.totalorder %s3721_s11, 5 }
 0x43d   : > { %s1742_s12 = sld [smem:[#allocation7 + %s3770_s7]] (!%p3270_p1) }
 0x43e   : > { %1741 = sbr.rel (%p3270_p1) target bundleno = 1098 (0x44a), region = 682 }
 0x443   : > { %s1743_s20 = sadd.s32 %s3731_s15, %s1742_s12  ;;  %v1769_v23 = vld [vmem:[#allocation3 + $0x5] sm:$0x1]  ;;  %v1771_v24 = vld [vmem:[#allocation3 + $0xd] sm:$0x1] }
 0x444   : > { %s1745_s21 = sshrl.u32 %s1743_s20, 3  ;;  %s1746_s3 = sand.u32 7, %s1743_s20  }
 0x445   : > { %s3271_s22 = sshll.u32 %s1745_s21, 4 }
 0x446   : > { %s1748_s1 = sadd.s32 %s3271_s22, %s1746_s3 }
 0x447   : > { %s1749_s6 = scalar_lea.vmem %s4072_s4, %s1748_s1 }
 0x448   : > { %1770 = vst [vmem:[%s1749_s6] sm:$0x1] %v1769_v23  ;;  %1772 = vst [vmem:[%s1749_s6 + $0x8] sm:$0x1] %v1771_v24 }
 0x449   : > { %1800 = vsyncadd [#allocation5 + $0x5], 32 }
 0x44a PF: > { %p3272_p2 = scmp.le.s32.totalorder %s3721_s11, 6 }
 0x44b   : > { %s1805_s8 = sld [smem:[#allocation7 + %s3778_s23]] (!%p3272_p2) }
 0x44c   : > { %1804 = sbr.rel (%p3272_p2) target bundleno = 1112 (0x458), region = 716 }
 0x451   : > { %s1806_s9 = sadd.s32 %s3731_s15, %s1805_s8  ;;  %v1832_v25 = vld [vmem:[#allocation3 + $0x6] sm:$0x1]  ;;  %v1834_v26 = vld [vmem:[#allocation3 + $0xe] sm:$0x1] }
 0x452   : > { %s1808_s30 = sshrl.u32 %s1806_s9, 3  ;;  %s1809_s29 = sand.u32 7, %s1806_s9  }
 0x453   : > { %s3273_s10 = sshll.u32 %s1808_s30, 4 }
 0x454   : > { %s1811_s17 = sadd.s32 %s3273_s10, %s1809_s29 }
 0x455   : > { %s1812_s21 = scalar_lea.vmem %s4072_s4, %s1811_s17 }
 0x456   : > { %1833 = vst [vmem:[%s1812_s21] sm:$0x1] %v1832_v25  ;;  %1835 = vst [vmem:[%s1812_s21 + $0x8] sm:$0x1] %v1834_v26 }
 0x457   : > { %1863 = vsyncadd [#allocation5 + $0x6], 32 }
 0x458 PF: > { %p3274_p3 = scmp.le.s32.totalorder %s3721_s11, 7 }
 0x459   : > { %s1868_s3 = sld [smem:[#allocation7 + %s3786_s19]] (!%p3274_p3) }
 0x45a   : > { %1867 = sbr.rel (%p3274_p3) target bundleno = 1126 (0x466), region = 750 }
 0x45f   : > { %s1869_s22 = sadd.s32 %s3731_s15, %s1868_s3  ;;  %v1895_v27 = vld [vmem:[#allocation3 + $0x7] sm:$0x1]  ;;  %v1897_v28 = vld [vmem:[#allocation3 + $0xf] sm:$0x1] }
 0x460   : > { %s1871_s1 = sshrl.u32 %s1869_s22, 3  ;;  %s1872_s28 = sand.u32 7, %s1869_s22  }
 0x461   : > { %s3275_s5 = sshll.u32 %s1871_s1, 4 }
 0x462   : > { %s1874_s6 = sadd.s32 %s3275_s5, %s1872_s28 }
 0x463   : > { %s1875_s30 = scalar_lea.vmem %s4072_s4, %s1874_s6 }
 0x464   : > { %1896 = vst [vmem:[%s1875_s30] sm:$0x1] %v1895_v27  ;;  %1898 = vst [vmem:[%s1875_s30 + $0x8] sm:$0x1] %v1897_v28 }
 0x465   : > { %1926 = vsyncadd [#allocation5 + $0x7], 32 }
 0x466 PF: > { %1929 = sbr.rel (%p3260_p10) target bundleno = 1139 (0x473), region = 784  ;;  %s1930_s15 = sld [smem:[#allocation7 + %s3727_s13]] (!%p3260_p10) }
 0x46b   : > { %v1957_v29 = vld [vmem:[#allocation3 + $0x10] sm:$0x1]  ;;  %v1959_v30 = vld [vmem:[#allocation3 + $0x18] sm:$0x1] }
 0x46c   : > { %s1931_s29 = sadd.s32 %s3795_s16, %s1930_s15 }
 0x46d   : > { %s1933_s10 = sshrl.u32 %s1931_s29, 3  ;;  %s1934_s17 = sand.u32 7, %s1931_s29  }
 0x46e   : > { %s3277_s12 = sshll.u32 %s1933_s10, 4 }
 0x46f   : > { %s1936_s20 = sadd.s32 %s3277_s12, %s1934_s17 }
 0x470   : > { %s1937_s22 = scalar_lea.vmem %s4072_s4, %s1936_s20 }
 0x471   : > { %1958 = vst [vmem:[%s1937_s22] sm:$0x1] %v1957_v29  ;;  %1960 = vst [vmem:[%s1937_s22 + $0x8] sm:$0x1] %v1959_v30 }
 0x472   : > { %1988 = vsyncadd [#allocation5 + $0x8], 32 }
 0x473 PF: > { %1991 = sbr.rel (%p3262_p11) target bundleno = 1152 (0x480), region = 818  ;;  %s1992_s13 = sld [smem:[#allocation7 + %s3738_s0]] (!%p3262_p11) }
 0x478   : > { %v2019_v31 = vld [vmem:[#allocation3 + $0x11] sm:$0x1]  ;;  %v2021_v32 = vld [vmem:[#allocation3 + $0x19] sm:$0x1] }
 0x479   : > { %s1993_s1 = sadd.s32 %s3795_s16, %s1992_s13 }
 0x47a   : > { %s1995_s28 = sshrl.u32 %s1993_s1, 3  ;;  %s1996_s5 = sand.u32 7, %s1993_s1  }
 0x47b   : > { %s3279_s6 = sshll.u32 %s1995_s28, 4 }
 0x47c   : > { %s1998_s8 = sadd.s32 %s3279_s6, %s1996_s5 }
 0x47d   : > { %s1999_s15 = scalar_lea.vmem %s4072_s4, %s1998_s8 }
 0x47e   : > { %2020 = vst [vmem:[%s1999_s15] sm:$0x1] %v2019_v31  ;;  %2022 = vst [vmem:[%s1999_s15 + $0x8] sm:$0x1] %v2021_v32 }
 0x47f   : > { %2050 = vsyncadd [#allocation5 + $0x9], 32 }
 0x480 PF: > { %2053 = sbr.rel (%p3264_p12) target bundleno = 1165 (0x48d), region = 852  ;;  %s2054_s0 = sld [smem:[#allocation7 + %s3746_s14]] (!%p3264_p12) }
 0x485   : > { %v2081_v33 = vld [vmem:[#allocation3 + $0x12] sm:$0x1]  ;;  %v2083_v34 = vld [vmem:[#allocation3 + $0x1a] sm:$0x1] }
 0x486   : > { %s2055_s29 = sadd.s32 %s3795_s16, %s2054_s0 }
 0x487   : > { %s2057_s10 = sshrl.u32 %s2055_s29, 3  ;;  %s2058_s17 = sand.u32 7, %s2055_s29  }
 0x488   : > { %s3281_s12 = sshll.u32 %s2057_s10, 4 }
 0x489   : > { %s2060_s20 = sadd.s32 %s3281_s12, %s2058_s17 }
 0x48a   : > { %s2061_s22 = scalar_lea.vmem %s4072_s4, %s2060_s20 }
 0x48b   : > { %2082 = vst [vmem:[%s2061_s22] sm:$0x1] %v2081_v33  ;;  %2084 = vst [vmem:[%s2061_s22 + $0x8] sm:$0x1] %v2083_v34 }
 0x48c   : > { %2112 = vsyncadd [#allocation5 + $0xa], 32 }
 0x48d PF: > { %2115 = sbr.rel (%p3266_p13) target bundleno = 1178 (0x49a), region = 886  ;;  %s2116_s14 = sld [smem:[#allocation7 + %s3754_s24]] (!%p3266_p13) }
 0x492   : > { %v2143_v35 = vld [vmem:[#allocation3 + $0x13] sm:$0x1]  ;;  %v2145_v36 = vld [vmem:[#allocation3 + $0x1b] sm:$0x1] }
 0x493   : > { %s2117_s13 = sadd.s32 %s3795_s16, %s2116_s14 }
 0x494   : > { %s2119_s1 = sshrl.u32 %s2117_s13, 3  ;;  %s2120_s28 = sand.u32 7, %s2117_s13  }
 0x495   : > { %s3283_s5 = sshll.u32 %s2119_s1, 4 }
 0x496   : > { %s2122_s6 = sadd.s32 %s3283_s5, %s2120_s28 }
 0x497   : > { %s2123_s30 = scalar_lea.vmem %s4072_s4, %s2122_s6 }
 0x498   : > { %2144 = vst [vmem:[%s2123_s30] sm:$0x1] %v2143_v35  ;;  %2146 = vst [vmem:[%s2123_s30 + $0x8] sm:$0x1] %v2145_v36 }
 0x499   : > { %2174 = vsyncadd [#allocation5 + $0xb], 32 }
 0x49a PF: > { %2177 = sbr.rel (%p3268_p0) target bundleno = 1191 (0x4a7), region = 920  ;;  %s2178_s24 = sld [smem:[#allocation7 + %s3762_s18]] (!%p3268_p0) }
 0x49f   : > { %v2205_v37 = vld [vmem:[#allocation3 + $0x14] sm:$0x1]  ;;  %v2207_v38 = vld [vmem:[#allocation3 + $0x1c] sm:$0x1] }
 0x4a0   : > { %s2179_s15 = sadd.s32 %s3795_s16, %s2178_s24 }
 0x4a1   : > { %s2181_s0 = sshrl.u32 %s2179_s15, 3  ;;  %s2182_s29 = sand.u32 7, %s2179_s15  }
 0x4a2   : > { %s3285_s10 = sshll.u32 %s2181_s0, 4 }
 0x4a3   : > { %s2184_s17 = sadd.s32 %s3285_s10, %s2182_s29 }
 0x4a4   : > { %s2185_s21 = scalar_lea.vmem %s4072_s4, %s2184_s17 }
 0x4a5   : > { %2206 = vst [vmem:[%s2185_s21] sm:$0x1] %v2205_v37  ;;  %2208 = vst [vmem:[%s2185_s21 + $0x8] sm:$0x1] %v2207_v38 }
 0x4a6   : > { %2236 = vsyncadd [#allocation5 + $0xc], 32 }
 0x4a7 PF: > { %2239 = sbr.rel (%p3270_p1) target bundleno = 1204 (0x4b4), region = 954  ;;  %s2240_s18 = sld [smem:[#allocation7 + %s3770_s7]] (!%p3270_p1) }
 0x4ac   : > { %v2267_v39 = vld [vmem:[#allocation3 + $0x15] sm:$0x1]  ;;  %v2269_v40 = vld [vmem:[#allocation3 + $0x1d] sm:$0x1] }
 0x4ad   : > { %s2241_s3 = sadd.s32 %s3795_s16, %s2240_s18 }
 0x4ae   : > { %s2243_s22 = sshrl.u32 %s2241_s3, 3  ;;  %s2244_s14 = sand.u32 7, %s2241_s3  }
 0x4af   : > { %s3287_s13 = sshll.u32 %s2243_s22, 4 }
 0x4b0   : > { %s2246_s1 = sadd.s32 %s3287_s13, %s2244_s14 }
 0x4b1   : > { %s2247_s6 = scalar_lea.vmem %s4072_s4, %s2246_s1 }
 0x4b2   : > { %2268 = vst [vmem:[%s2247_s6] sm:$0x1] %v2267_v39  ;;  %2270 = vst [vmem:[%s2247_s6 + $0x8] sm:$0x1] %v2269_v40 }
 0x4b3   : > { %2298 = vsyncadd [#allocation5 + $0xd], 32 }
 0x4b4 PF: > { %2301 = sbr.rel (%p3272_p2) target bundleno = 1217 (0x4c1), region = 988  ;;  %s2302_s7 = sld [smem:[#allocation7 + %s3778_s23]] (!%p3272_p2) }
 0x4b9   : > { %v2329_v41 = vld [vmem:[#allocation3 + $0x16] sm:$0x1]  ;;  %v2331_v42 = vld [vmem:[#allocation3 + $0x1e] sm:$0x1] }
 0x4ba   : > { %s2303_s8 = sadd.s32 %s3795_s16, %s2302_s7 }
 0x4bb   : > { %s2305_s9 = sshrl.u32 %s2303_s8, 3  ;;  %s2306_s30 = sand.u32 7, %s2303_s8  }
 0x4bc   : > { %s3289_s24 = sshll.u32 %s2305_s9, 4 }
 0x4bd   : > { %s2308_s15 = sadd.s32 %s3289_s24, %s2306_s30 }
 0x4be   : > { %s2309_s10 = scalar_lea.vmem %s4072_s4, %s2308_s15 }
 0x4bf   : > { %2330 = vst [vmem:[%s2309_s10] sm:$0x1] %v2329_v41  ;;  %2332 = vst [vmem:[%s2309_s10 + $0x8] sm:$0x1] %v2331_v42 }
 0x4c0   : > { %2360 = vsyncadd [#allocation5 + $0xe], 32 }
 0x4c1 PF: > { %2363 = sbr.rel (%p3274_p3) target bundleno = 1230 (0x4ce), region = 1022  ;;  %s2364_s23 = sld [smem:[#allocation7 + %s3786_s19]] (!%p3274_p3) }
 0x4c6   : > { %v2391_v43 = vld [vmem:[#allocation3 + $0x17] sm:$0x1]  ;;  %v2393_v44 = vld [vmem:[#allocation3 + $0x1f] sm:$0x1] }
 0x4c7   : > { %s2365_s17 = sadd.s32 %s3795_s16, %s2364_s23 }
 0x4c8   : > { %s2367_s12 = sshrl.u32 %s2365_s17, 3  ;;  %s2368_s20 = sand.u32 7, %s2365_s17  }
 0x4c9   : > { %s3291_s21 = sshll.u32 %s2367_s12, 4 }
 0x4ca   : > { %s2370_s18 = sadd.s32 %s3291_s21, %s2368_s20 }
 0x4cb   : > { %s2371_s14 = scalar_lea.vmem %s4072_s4, %s2370_s18 }
 0x4cc   : > { %2392 = vst [vmem:[%s2371_s14] sm:$0x1] %v2391_v43  ;;  %2394 = vst [vmem:[%s2371_s14 + $0x8] sm:$0x1] %v2393_v44 }
 0x4cd   : > { %2422 = vsyncadd [#allocation5 + $0xf], 32 }
 0x4ce PF: > { %p3386_p4 = scmp.gt.s32.totalorder %s3721_s11, 0 }
 0x4d0   : > { %3552 = dma.done.wait (%p3386_p4), [#allocation5], 32 }
 0x4d1   : > { %3554 = vsyncadd (%p3386_p4), [#allocation5], 4294967264  ;;  %p3387_p5 = scmp.gt.s32.totalorder %s3721_s11, 1 }
 0x4d3   : > { %3556 = dma.done.wait (%p3387_p5), [#allocation5 + $0x1], 32 }
 0x4d4   : > { %3558 = vsyncadd (%p3387_p5), [#allocation5 + $0x1], 4294967264  ;;  %p3388_p6 = scmp.gt.s32.totalorder %s3721_s11, 2 }
 0x4d6   : > { %3560 = dma.done.wait (%p3388_p6), [#allocation5 + $0x2], 32 }
 0x4d7   : > { %3562 = vsyncadd (%p3388_p6), [#allocation5 + $0x2], 4294967264  ;;  %p3389_p7 = scmp.gt.s32.totalorder %s3721_s11, 3 }
 0x4d9   : > { %3564 = dma.done.wait (%p3389_p7), [#allocation5 + $0x3], 32 }
 0x4da   : > { %3566 = vsyncadd (%p3389_p7), [#allocation5 + $0x3], 4294967264  ;;  %p3390_p8 = scmp.gt.s32.totalorder %s3721_s11, 4 }
 0x4dc   : > { %3568 = dma.done.wait (%p3390_p8), [#allocation5 + $0x4], 32 }
 0x4dd   : > { %3570 = vsyncadd (%p3390_p8), [#allocation5 + $0x4], 4294967264  ;;  %p3391_p9 = scmp.gt.s32.totalorder %s3721_s11, 5 }
 0x4df   : > { %3572 = dma.done.wait (%p3391_p9), [#allocation5 + $0x5], 32 }
 0x4e0   : > { %3574 = vsyncadd (%p3391_p9), [#allocation5 + $0x5], 4294967264  ;;  %p3392_p10 = scmp.gt.s32.totalorder %s3721_s11, 6 }
 0x4e2   : > { %3576 = dma.done.wait (%p3392_p10), [#allocation5 + $0x6], 32 }
 0x4e3   : > { %3578 = vsyncadd (%p3392_p10), [#allocation5 + $0x6], 4294967264  ;;  %p3393_p11 = scmp.gt.s32.totalorder %s3721_s11, 7 }
 0x4e5   : > { %3580 = dma.done.wait (%p3393_p11), [#allocation5 + $0x7], 32 }
 0x4e6   : > { %3582 = vsyncadd (%p3393_p11), [#allocation5 + $0x7], 4294967264 }
 0x4e7   : > { %3584 = dma.done.wait (%p3386_p4), [#allocation5 + $0x8], 32 }
 0x4e8   : > { %3586 = vsyncadd (%p3386_p4), [#allocation5 + $0x8], 4294967264 }
 0x4e9   : > { %3588 = dma.done.wait (%p3387_p5), [#allocation5 + $0x9], 32 }
 0x4ea   : > { %3590 = vsyncadd (%p3387_p5), [#allocation5 + $0x9], 4294967264 }
 0x4eb   : > { %3592 = dma.done.wait (%p3388_p6), [#allocation5 + $0xa], 32 }
 0x4ec   : > { %3594 = vsyncadd (%p3388_p6), [#allocation5 + $0xa], 4294967264 }
 0x4ed   : > { %3596 = dma.done.wait (%p3389_p7), [#allocation5 + $0xb], 32 }
 0x4ee   : > { %3598 = vsyncadd (%p3389_p7), [#allocation5 + $0xb], 4294967264 }
 0x4ef   : > { %3600 = dma.done.wait (%p3390_p8), [#allocation5 + $0xc], 32 }
 0x4f0   : > { %3602 = vsyncadd (%p3390_p8), [#allocation5 + $0xc], 4294967264 }
 0x4f1   : > { %3604 = dma.done.wait (%p3391_p9), [#allocation5 + $0xd], 32 }
 0x4f2   : > { %3606 = vsyncadd (%p3391_p9), [#allocation5 + $0xd], 4294967264 }
 0x4f3   : > { %3608 = dma.done.wait (%p3392_p10), [#allocation5 + $0xe], 32 }
 0x4f4   : > { %3610 = vsyncadd (%p3392_p10), [#allocation5 + $0xe], 4294967264 }
 0x4f5   : > { %3612 = dma.done.wait (%p3393_p11), [#allocation5 + $0xf], 32 }
 0x4f6   : > { %3614 = vsyncadd (%p3393_p11), [#allocation5 + $0xf], 4294967264 }
 0x4f7 PF: > { %s25_s27 = sadd.s32 1, %s3633_s27   ;;  %s4079_s19 = sld [smem:[#allocation77_spill]] }
 0x4f8   : > { %p22_p12 = scmp.ge.s32.totalorder %s25_s27, 5   ;;  %s4080_s16 = sld [smem:[#allocation78_spill]] }
 0x4f9   : > { %s4081_s1 = smov %s3625_s25  ;;  %s4082_s24 = smov %s3629_s26 }
 0x4fa   :  { %24 = sbr.rel (!%p22_p12) target bundleno = 29 (0x1d), region = 1585 }
 0x4fd   : > { %s4083_s25 = smov %s4079_s19 }
 0x4fe   : > { %s4084_s26 = smov %s4080_s16 }
 0x4ff   :  { %2534 = vsyncpa [#allocation10], 1 }
 0x500   :  { %2536 = vsyncpa [#allocation10 + $0x1], 1 }
 0x501   :  { %2537 = vsyncmov [#allocation4] }
 0x504   :  { %s2538_s11 = vpop.sfrf %2537 }
 0x505   :  { %p3308_p13 = scmp.ne.s32.totalorder %s2538_s11, 0 }
 0x507   :  { %2542 = shalt.err (%p3308_p13)  }
 0x508   :  { %2544 = vsyncmov [#allocation4 + $0x1] }
 0x50b   :  { %s2545_s13 = vpop.sfrf %2544 }
 0x50c   :  { %p3309_p0 = scmp.ne.s32.totalorder %s2545_s13, 0 }
 0x50e   :  { %2549 = shalt.err (%p3309_p0)  }
 0x50f   :  { %2551 = vsyncmov [#allocation4 + $0x2] }
 0x512   :  { %s2552_s28 = vpop.sfrf %2551 }
 0x513   :  { %p3310_p1 = scmp.ne.s32.totalorder %s2552_s28, 0 }
 0x515   :  { %2556 = shalt.err (%p3310_p1)  }
 0x516   :  { %2558 = vsyncmov [#allocation4 + $0x3] }
 0x519   :  { %s2559_s5 = vpop.sfrf %2558 }
 0x51a   :  { %p3311_p2 = scmp.ne.s32.totalorder %s2559_s5, 0 }
 0x51c   :  { %2563 = shalt.err (%p3311_p2)  }
 0x51d   :  { %2565 = vsyncmov [#allocation4 + $0x4] }
 0x520   :  { %s2566_s27 = vpop.sfrf %2565 }
 0x521   :  { %p3312_p3 = scmp.ne.s32.totalorder %s2566_s27, 0 }
 0x523   :  { %2570 = shalt.err (%p3312_p3)  }
 0x524   :  { %2572 = vsyncmov [#allocation4 + $0x5] }
 0x527   :  { %s2573_s2 = vpop.sfrf %2572 }
 0x528   :  { %p3313_p4 = scmp.ne.s32.totalorder %s2573_s2, 0 }
 0x52a   :  { %2577 = shalt.err (%p3313_p4)  }
 0x52b   :  { %2579 = vsyncmov [#allocation4 + $0x6] }
 0x52e   :  { %s2580_s4 = vpop.sfrf %2579 }
 0x52f   :  { %p3314_p5 = scmp.ne.s32.totalorder %s2580_s4, 0 }
 0x531   :  { %2584 = shalt.err (%p3314_p5)  }
 0x532   :  { %2586 = vsyncmov [#allocation4 + $0x7] }
 0x535   :  { %s2587_s25 = vpop.sfrf %2586 }
 0x536   :  { %p3315_p6 = scmp.ne.s32.totalorder %s2587_s25, 0 }
 0x538   :  { %2591 = shalt.err (%p3315_p6)  }
 0x539   :  { %2593 = vsyncmov [#allocation4 + $0x8] }
 0x53c   :  { %s2594_s26 = vpop.sfrf %2593 }
 0x53d   :  { %p3316_p7 = scmp.ne.s32.totalorder %s2594_s26, 0 }
 0x53f   :  { %2598 = shalt.err (%p3316_p7)  }
 0x540   :  { %2600 = vsyncmov [#allocation4 + $0x9] }
 0x543   :  { %s2601_s1 = vpop.sfrf %2600 }
 0x544   :  { %p3317_p8 = scmp.ne.s32.totalorder %s2601_s1, 0 }
 0x546   :  { %2605 = shalt.err (%p3317_p8)  }
 0x547   :  { %2607 = vsyncmov [#allocation4 + $0xa] }
 0x54a   :  { %s2608_s6 = vpop.sfrf %2607 }
 0x54b   :  { %p3318_p9 = scmp.ne.s32.totalorder %s2608_s6, 0 }
 0x54d   :  { %2612 = shalt.err (%p3318_p9)  }
 0x54e   :  { %2614 = vsyncmov [#allocation4 + $0xb] }
 0x551   :  { %s2615_s7 = vpop.sfrf %2614 }
 0x552   :  { %p3319_p10 = scmp.ne.s32.totalorder %s2615_s7, 0 }
 0x554   :  { %2619 = shalt.err (%p3319_p10)  }
 0x555   :  { %2621 = vsyncmov [#allocation4 + $0xc] }
 0x558   :  { %s2622_s8 = vpop.sfrf %2621 }
 0x559   :  { %p3320_p11 = scmp.ne.s32.totalorder %s2622_s8, 0 }
 0x55b   :  { %2626 = shalt.err (%p3320_p11)  }
 0x55c   :  { %2628 = vsyncmov [#allocation4 + $0xd] }
 0x55f   :  { %s2629_s9 = vpop.sfrf %2628 }
 0x560   :  { %p3321_p12 = scmp.ne.s32.totalorder %s2629_s9, 0 }
 0x562   :  { %2633 = shalt.err (%p3321_p12)  }
 0x563   :  { %2635 = vsyncmov [#allocation4 + $0xe] }
 0x566   :  { %s2636_s30 = vpop.sfrf %2635 }
 0x567   :  { %p3322_p13 = scmp.ne.s32.totalorder %s2636_s30, 0 }
 0x569   :  { %2640 = shalt.err (%p3322_p13)  }
 0x56a   :  { %2642 = vsyncmov [#allocation4 + $0xf] }
 0x56d   :  { %s2643_s24 = vpop.sfrf %2642 }
 0x56e   :  { %p3323_p0 = scmp.ne.s32.totalorder %s2643_s24, 0 }
 0x570   :  { %2647 = shalt.err (%p3323_p0)  }
 0x571   :  { %2648 = vsyncmov [#allocation5] }
 0x574   :  { %s2649_s15 = vpop.sfrf %2648 }
 0x575   :  { %p3324_p1 = scmp.ne.s32.totalorder %s2649_s15, 0 }
 0x577   :  { %2653 = shalt.err (%p3324_p1)  }
 0x578   :  { %2655 = vsyncmov [#allocation5 + $0x1] }
 0x57b   :  { %s2656_s0 = vpop.sfrf %2655 }
 0x57c   :  { %p3325_p2 = scmp.ne.s32.totalorder %s2656_s0, 0 }
 0x57e   :  { %2660 = shalt.err (%p3325_p2)  }
 0x57f   :  { %2662 = vsyncmov [#allocation5 + $0x2] }
 0x582   :  { %s2663_s29 = vpop.sfrf %2662 }
 0x583   :  { %p3326_p3 = scmp.ne.s32.totalorder %s2663_s29, 0 }
 0x585   :  { %2667 = shalt.err (%p3326_p3)  }
 0x586   :  { %2669 = vsyncmov [#allocation5 + $0x3] }
 0x589   :  { %s2670_s10 = vpop.sfrf %2669 }
 0x58a   :  { %p3327_p4 = scmp.ne.s32.totalorder %s2670_s10, 0 }
 0x58c   :  { %2674 = shalt.err (%p3327_p4)  }
 0x58d   :  { %2676 = vsyncmov [#allocation5 + $0x4] }
 0x590   :  { %s2677_s23 = vpop.sfrf %2676 }
 0x591   :  { %p3328_p5 = scmp.ne.s32.totalorder %s2677_s23, 0 }
 0x593   :  { %2681 = shalt.err (%p3328_p5)  }
 0x594   :  { %2683 = vsyncmov [#allocation5 + $0x5] }
 0x597   :  { %s2684_s17 = vpop.sfrf %2683 }
 0x598   :  { %p3329_p6 = scmp.ne.s32.totalorder %s2684_s17, 0 }
 0x59a   :  { %2688 = shalt.err (%p3329_p6)  }
 0x59b   :  { %2690 = vsyncmov [#allocation5 + $0x6] }
 0x59e   :  { %s2691_s12 = vpop.sfrf %2690 }
 0x59f   :  { %p3330_p7 = scmp.ne.s32.totalorder %s2691_s12, 0 }
 0x5a1   :  { %2695 = shalt.err (%p3330_p7)  }
 0x5a2   :  { %2697 = vsyncmov [#allocation5 + $0x7] }
 0x5a5   :  { %s2698_s20 = vpop.sfrf %2697 }
 0x5a6   :  { %p3331_p8 = scmp.ne.s32.totalorder %s2698_s20, 0 }
 0x5a8   :  { %2702 = shalt.err (%p3331_p8)  }
 0x5a9   :  { %2704 = vsyncmov [#allocation5 + $0x8] }
 0x5ac   :  { %s2705_s21 = vpop.sfrf %2704 }
 0x5ad   :  { %p3332_p9 = scmp.ne.s32.totalorder %s2705_s21, 0 }
 0x5af   :  { %2709 = shalt.err (%p3332_p9)  }
 0x5b0   :  { %2711 = vsyncmov [#allocation5 + $0x9] }
 0x5b3   :  { %s2712_s18 = vpop.sfrf %2711 }
 0x5b4   :  { %p3333_p10 = scmp.ne.s32.totalorder %s2712_s18, 0 }
 0x5b6   :  { %2716 = shalt.err (%p3333_p10)  }
 0x5b7   :  { %2718 = vsyncmov [#allocation5 + $0xa] }
 0x5ba   :  { %s2719_s3 = vpop.sfrf %2718 }
 0x5bb   :  { %p3334_p11 = scmp.ne.s32.totalorder %s2719_s3, 0 }
 0x5bd   :  { %2723 = shalt.err (%p3334_p11)  }
 0x5be   :  { %2725 = vsyncmov [#allocation5 + $0xb] }
 0x5c1   :  { %s2726_s22 = vpop.sfrf %2725 }
 0x5c2   :  { %p3335_p12 = scmp.ne.s32.totalorder %s2726_s22, 0 }
 0x5c4   :  { %2730 = shalt.err (%p3335_p12)  }
 0x5c5   :  { %2732 = vsyncmov [#allocation5 + $0xc] }
 0x5c8   :  { %s2733_s14 = vpop.sfrf %2732 }
 0x5c9   :  { %p3336_p13 = scmp.ne.s32.totalorder %s2733_s14, 0 }
 0x5cb   :  { %2737 = shalt.err (%p3336_p13)  }
 0x5cc   :  { %2739 = vsyncmov [#allocation5 + $0xd] }
 0x5cf   :  { %s2740_s19 = vpop.sfrf %2739 }
 0x5d0   :  { %p3337_p0 = scmp.ne.s32.totalorder %s2740_s19, 0 }
 0x5d2   :  { %2744 = shalt.err (%p3337_p0)  }
 0x5d3   :  { %2746 = vsyncmov [#allocation5 + $0xe] }
 0x5d6   :  { %s2747_s16 = vpop.sfrf %2746 }
 0x5d7   :  { %p3338_p1 = scmp.ne.s32.totalorder %s2747_s16, 0 }
 0x5d9   :  { %2751 = shalt.err (%p3338_p1)  }
 0x5da   :  { %2753 = vsyncmov [#allocation5 + $0xf] }
 0x5dd   :  { %s2754_s11 = vpop.sfrf %2753 }
 0x5de   :  { %p3339_p2 = scmp.ne.s32.totalorder %s2754_s11, 0 }
 0x5e0   :  { %2758 = shalt.err (%p3339_p2)  }

</bundles_post_ra>
